<compile_context>
chip_gen: v7x
topology: tpu7x:2x2x1
jax: 0.10.0
libtpu: 0.0.40
codegen_flags: <defaults>
</compile_context>

<pallas_src>
import math

import numpy as np
import jax
import jax.numpy as jnp
from jax.experimental import pallas as pl
from jax.experimental.pallas import tpu as pltpu

# ----------------------- small, forward-consistent config -------------------
IMG = 16            # img_size
PATCH = 8           # patch_size
IN_CHANS = 3
EMBED = 32          # embed_dim
HEADS = 4           # num_heads (EMBED % HEADS == 0)
HEAD_DIM = EMBED // HEADS
DEPTH = 2
MLP_HIDDEN = int(EMBED * 4.0)
NUM_CLASSES = 10
N_PATCHES = (IMG // PATCH) ** 2
SEQ = N_PATCHES + 1
PATCH_K = IN_CHANS * PATCH * PATCH
LN_EPS = 1e-5
SCALE = HEAD_DIM ** (-0.5)

TB = 8                      # images per grid step (batch block)
R_ROWS = TB * SEQ           # token rows per block: TB cls rows + TB*N_PATCHES
OUT_PAD = 128               # lane-dense logits slab width
VEC_PAD = 128               # lane width of the per-layer bias/LN slab
NEG_INF = -1e30
_SOFTMAX_APPROX_RECIPROCAL = True


# ------------------------------ kernel helpers -------------------------------
def _layernorm(x, w, b):
    mu = jnp.mean(x, axis=-1, keepdims=True)
    var = jnp.mean((x - mu) ** 2, axis=-1, keepdims=True)
    return (x - mu) * jax.lax.rsqrt(var + LN_EPS) * w + b


def _gelu(x):
    # exact (erf-based) GELU, matching torch.nn.GELU() default
    return 0.5 * x * (1.0 + jax.lax.erf(x * (1.0 / math.sqrt(2.0))))


# --------------------------- fused forward kernel ----------------------------
def vit_kernel(patches_ref, pe_w_ref, pe_b_ref, init_ref, mask_ref,
               wqkv_ref, wproj_ref, wfc1_ref, wfc2_ref, vecs_ref,
               lnf_ref, headw_ref, headb_ref,
               o_ref, x_scr):
    # One grid step == TB batch elements; everything stays in VMEM/vregs.

    # ---- patch embedding: Conv2d(kernel=stride=patch) as ONE matmul ---------
    emb = (jnp.dot(patches_ref[...], pe_w_ref[...],
                   preferred_element_type=jnp.float32)
           + pe_b_ref[...])                          # (TB*N_PATCHES, EMBED)

    # ---- assemble tokens: [cls rows | patch rows] + pos embedding -----------
    # init_ref rows 0..TB-1 hold (cls_token + pos_embed[0]); rows TB.. hold
    # pos_embed[1:] tiled per sample.  Aligned VMEM-scratch writes, no concat.
    x_scr[pl.ds(0, TB), :] = init_ref[pl.ds(0, TB), :]
    x_scr[pl.ds(TB, TB * N_PATCHES), :] = emb + init_ref[pl.ds(TB, TB * N_PATCHES), :]
    x = x_scr[...]                                   # (R_ROWS, EMBED)
    # pos_drop: identity (inference)

    mask = mask_ref[...]                             # (R_ROWS, R_ROWS) additive

    # ---- transformer blocks (unrolled over DEPTH) ----------------------------
    for d in range(DEPTH):
        vecs = vecs_ref[d]                           # (8, VEC_PAD) bias/LN slab
        ln1w = vecs[0:1, 0:EMBED];       ln1b = vecs[1:2, 0:EMBED]
        qkvb = vecs[2:3, 0:3 * EMBED];   projb = vecs[3:4, 0:EMBED]
        ln2w = vecs[4:5, 0:EMBED];       ln2b = vecs[5:6, 0:EMBED]
        fc1b = vecs[6:7, 0:MLP_HIDDEN];  fc2b = vecs[7:8, 0:EMBED]

        # -------- attention branch --------
        h = _layernorm(x, ln1w, ln1b)                                # (R, C)
        qkv = (jnp.dot(h, wqkv_ref[d],
                       preferred_element_type=jnp.float32) + qkvb)  # (R, 3C)
        heads = []
        for hd in range(HEADS):
            q = qkv[:, hd * HEAD_DIM:(hd + 1) * HEAD_DIM]
            k = qkv[:, EMBED + hd * HEAD_DIM:EMBED + (hd + 1) * HEAD_DIM]
            v = qkv[:, 2 * EMBED + hd * HEAD_DIM:2 * EMBED + (hd + 1) * HEAD_DIM]
            # q @ k^T over the whole block; block-diagonal mask keeps each
            # sample's softmax restricted to its own SEQ tokens.
            s = jax.lax.dot_general(
                q, k, (((1,), (1,)), ((), ())),
                preferred_element_type=jnp.float32) * SCALE + mask   # (R, R)
            s = s - jnp.max(s, axis=-1, keepdims=True)
            p = jnp.exp(s)
            denom = jnp.sum(p, axis=-1, keepdims=True)
            if _SOFTMAX_APPROX_RECIPROCAL:
                p = p * pl.reciprocal(denom, approx=True)
            else:
                p = p / denom
            heads.append(jnp.dot(p, v, preferred_element_type=jnp.float32))
        attn = jnp.concatenate(heads, axis=-1)                       # (R, C)
        x = x + (jnp.dot(attn, wproj_ref[d],
                         preferred_element_type=jnp.float32) + projb)

        # -------- MLP branch --------
        h2 = _layernorm(x, ln2w, ln2b)
        m = (jnp.dot(h2, wfc1_ref[d],
                     preferred_element_type=jnp.float32) + fc1b)
        m = _gelu(m)
        m = (jnp.dot(m, wfc2_ref[d],
                     preferred_element_type=jnp.float32) + fc2b)
        x = x + m

    # ---- final LayerNorm on the TB cls rows + classification head -----------
    cls_tok = x[0:TB, :]                                             # (TB, C)
    hfin = _layernorm(cls_tok, lnf_ref[0:1, :], lnf_ref[1:2, :])
    o_ref[...] = (jnp.dot(hfin, headw_ref[...],
                          preferred_element_type=jnp.float32)
                  + headb_ref[...])                                  # (TB, 128)


# ------------------------------ pallas_call wrapper --------------------------
def vit_forward(x, params):
    """x: (B, C, H, W) float32, NCHW like the PyTorch module."""
    B = x.shape[0]
    nb = -(-B // TB)
    b_pad = nb * TB
    if b_pad != B:
        x = jnp.pad(x, ((0, b_pad - B), (0, 0), (0, 0), (0, 0)))

    # Patch extraction (XLA glue, negligible at this size).
    xp = x.reshape(b_pad, IN_CHANS, IMG // PATCH, PATCH, IMG // PATCH, PATCH)
    xp = xp.transpose(0, 2, 4, 1, 3, 5).reshape(b_pad * N_PATCHES, PATCH_K)

    # Additive token-init rows: cls+pos[0] for cls rows, pos[1:] tiled per sample.
    cls_row = params["cls_token"] + params["pos_embed"][0:1]
    init_rows = jnp.concatenate(
        [jnp.tile(cls_row, (TB, 1)),
         jnp.tile(params["pos_embed"][1:], (TB, 1))], axis=0)        # (R_ROWS, C)

    # Block-diagonal "same sample" additive mask (static, tiny).
    sid = np.concatenate([np.arange(TB), np.repeat(np.arange(TB), N_PATCHES)])
    mask = jnp.asarray(
        np.where(sid[:, None] == sid[None, :], 0.0, NEG_INF).astype(np.float32))

    # Per-layer bias / LN slab: (DEPTH, 8, VEC_PAD), lane-dense.
    def _row(v):
        return jnp.pad(v, ((0, 0), (0, VEC_PAD - v.shape[-1])))[:, None, :]
    vecs = jnp.concatenate([
        _row(params["ln1_w"]), _row(params["ln1_b"]),
        _row(params["qkv_b"]), _row(params["proj_b"]),
        _row(params["ln2_w"]), _row(params["ln2_b"]),
        _row(params["fc1_b"]), _row(params["fc2_b"])], axis=1)

    lnf = jnp.stack([params["norm_w"], params["norm_b"]])            # (2, C)
    head_w = jnp.pad(params["head_w"],
                     ((0, 0), (0, OUT_PAD - NUM_CLASSES)))           # (C, 128)
    head_b = jnp.pad(params["head_b"][None, :],
                     ((0, 0), (0, OUT_PAD - NUM_CLASSES)))           # (1, 128)

    args = (xp, params["pe_w"], params["pe_b"], init_rows, mask,
            params["qkv_w"], params["proj_w"], params["fc1_w"], params["fc2_w"],
            vecs, lnf, head_w, head_b)

    in_specs = [pl.BlockSpec((TB * N_PATCHES, PATCH_K), lambda b: (b, 0))]
    for a in args[1:]:
        in_specs.append(pl.BlockSpec(a.shape, lambda b, _nd=a.ndim: (0,) * _nd))

    out = pl.pallas_call(
        vit_kernel,
        out_shape=jax.ShapeDtypeStruct((b_pad, OUT_PAD), jnp.float32),
        grid=(nb,),
        in_specs=in_specs,
        out_specs=pl.BlockSpec((TB, OUT_PAD), lambda b: (b, 0)),
        scratch_shapes=[pltpu.VMEM((R_ROWS, EMBED), jnp.float32)],
        compiler_params=pltpu.CompilerParams(
            dimension_semantics=("parallel",)),   # v7x: 2nd TC takes half the steps
    )(*args)
    return out[:B, :NUM_CLASSES]


# ------------------------------ parameters -----------------------------------
def _trunc_normal(key, shape, std=0.02):
    return std * jax.random.truncated_normal(key, -2.0, 2.0, shape, jnp.float32)


def init_params(seed=0):
    keys = iter(jax.random.split(jax.random.PRNGKey(seed), 64))
    p = {}
    # Conv2d(in_chans, embed_dim, kernel=stride=patch) as a matmul weight:
    # torch weight is (embed_dim, in_chans, ph, pw) -> flatten -> transpose.
    conv_w = _trunc_normal(next(keys), (EMBED, IN_CHANS, PATCH, PATCH))
    p["pe_w"] = conv_w.reshape(EMBED, PATCH_K).T              # (K, EMBED)
    p["pe_b"] = jnp.zeros((1, EMBED), jnp.float32)
    p["cls_token"] = _trunc_normal(next(keys), (1, EMBED))
    p["pos_embed"] = _trunc_normal(next(keys), (SEQ, EMBED))

    # Per-layer weights in (in, out) layout == torch weight.T; biases zero
    # (torch init).  Lane-dense last dims: qkv fused (C, 3C), proj (C, C).
    p["qkv_w"] = jnp.stack([_trunc_normal(next(keys), (EMBED, 3 * EMBED))
                            for _ in range(DEPTH)])
    p["qkv_b"] = jnp.zeros((DEPTH, 3 * EMBED), jnp.float32)
    p["proj_w"] = jnp.stack([_trunc_normal(next(keys), (EMBED, EMBED))
                             for _ in range(DEPTH)])
    p["proj_b"] = jnp.zeros((DEPTH, EMBED), jnp.float32)
    p["ln1_w"] = jnp.ones((DEPTH, EMBED), jnp.float32)
    p["ln1_b"] = jnp.zeros((DEPTH, EMBED), jnp.float32)
    p["ln2_w"] = jnp.ones((DEPTH, EMBED), jnp.float32)
    p["ln2_b"] = jnp.zeros((DEPTH, EMBED), jnp.float32)
    p["fc1_w"] = jnp.stack([_trunc_normal(next(keys), (EMBED, MLP_HIDDEN))
                            for _ in range(DEPTH)])
    p["fc1_b"] = jnp.zeros((DEPTH, MLP_HIDDEN), jnp.float32)
    p["fc2_w"] = jnp.stack([_trunc_normal(next(keys), (MLP_HIDDEN, EMBED))
                            for _ in range(DEPTH)])
    p["fc2_b"] = jnp.zeros((DEPTH, EMBED), jnp.float32)

    p["norm_w"] = jnp.ones((EMBED,), jnp.float32)
    p["norm_b"] = jnp.zeros((EMBED,), jnp.float32)
    p["head_w"] = _trunc_normal(next(keys), (EMBED, NUM_CLASSES))
    p["head_b"] = jnp.zeros((NUM_CLASSES,), jnp.float32)
    return p


# ------------------------------ main ------------------------------------------
if __name__ == "__main__":
    params = init_params(seed=0)
    # B=16 -> 2 grid steps of TB=8 (keeps >=2 steps so v7x's 2nd core is fed).
    x = jax.random.normal(jax.random.PRNGKey(0), (16, IN_CHANS, IMG, IMG),
                          jnp.float32)
    fwd = jax.jit(lambda inp: vit_forward(inp, params))
    out = fwd(x)
    jax.block_until_ready(out)
    assert out.shape == (16, NUM_CLASSES)
    assert bool(jnp.all(jnp.isfinite(out)))
    print("KERNEL_OK")
</pallas_src>

<mosaic_0001>
module attributes {stable_mosaic.version = 11 : i64} {
  func.func @vit_kernel(%arg0: i32, %arg1: memref<32x192xf32, #tpu.memory_space<vmem>>, %arg2: memref<192x32xf32, #tpu.memory_space<vmem>>, %arg3: memref<1x32xf32, #tpu.memory_space<vmem>>, %arg4: memref<40x32xf32, #tpu.memory_space<vmem>>, %arg5: memref<40x40xf32, #tpu.memory_space<vmem>>, %arg6: memref<2x32x96xf32, #tpu.memory_space<vmem>>, %arg7: memref<2x32x32xf32, #tpu.memory_space<vmem>>, %arg8: memref<2x32x128xf32, #tpu.memory_space<vmem>>, %arg9: memref<2x128x32xf32, #tpu.memory_space<vmem>>, %arg10: memref<2x8x128xf32, #tpu.memory_space<vmem>>, %arg11: memref<2x32xf32, #tpu.memory_space<vmem>>, %arg12: memref<32x128xf32, #tpu.memory_space<vmem>>, %arg13: memref<1x128xf32, #tpu.memory_space<vmem>>, %arg14: memref<8x128xf32, #tpu.memory_space<vmem>>, %arg15: memref<40x32xf32, #tpu.memory_space<vmem>>) attributes {dimension_semantics = [#tpu.dimension_semantics<parallel>], iteration_bounds = array<i64: 2>, scalar_prefetch = 0 : i64, scratch_operands = 1 : i64, tpu.core_type = #tpu.core_type<tc>, window_params = [{transform_indices = @transform_0, window_bounds = array<i64: 32, 192>}, {pipeline_mode = #tpu.pipeline_mode<synchronous>, transform_indices = @transform_1, window_bounds = array<i64: 192, 32>}, {pipeline_mode = #tpu.pipeline_mode<synchronous>, transform_indices = @transform_2, window_bounds = array<i64: 1, 32>}, {pipeline_mode = #tpu.pipeline_mode<synchronous>, transform_indices = @transform_3, window_bounds = array<i64: 40, 32>}, {pipeline_mode = #tpu.pipeline_mode<synchronous>, transform_indices = @transform_4, window_bounds = array<i64: 40, 40>}, {pipeline_mode = #tpu.pipeline_mode<synchronous>, transform_indices = @transform_5, window_bounds = array<i64: 2, 32, 96>}, {pipeline_mode = #tpu.pipeline_mode<synchronous>, transform_indices = @transform_6, window_bounds = array<i64: 2, 32, 32>}, {pipeline_mode = #tpu.pipeline_mode<synchronous>, transform_indices = @transform_7, window_bounds = array<i64: 2, 32, 128>}, {pipeline_mode = #tpu.pipeline_mode<synchronous>, transform_indices = @transform_8, window_bounds = array<i64: 2, 128, 32>}, {pipeline_mode = #tpu.pipeline_mode<synchronous>, transform_indices = @transform_9, window_bounds = array<i64: 2, 8, 128>}, {pipeline_mode = #tpu.pipeline_mode<synchronous>, transform_indices = @transform_10, window_bounds = array<i64: 2, 32>}, {pipeline_mode = #tpu.pipeline_mode<synchronous>, transform_indices = @transform_11, window_bounds = array<i64: 32, 128>}, {pipeline_mode = #tpu.pipeline_mode<synchronous>, transform_indices = @transform_12, window_bounds = array<i64: 1, 128>}, {transform_indices = @transform_13, window_bounds = array<i64: 8, 128>}]} {
    %c0 = arith.constant 0 : index
    %c0_0 = arith.constant 0 : index
    %0 = vector.load %arg1[%c0, %c0_0] : memref<32x192xf32, #tpu.memory_space<vmem>>, vector<32x192xf32>
    %c0_1 = arith.constant 0 : index
    %c0_2 = arith.constant 0 : index
    %1 = vector.load %arg2[%c0_1, %c0_2] : memref<192x32xf32, #tpu.memory_space<vmem>>, vector<192x32xf32>
    %cst = arith.constant dense<0.000000e+00> : vector<32x32xf32>
    %2 = tpu.matmul %0, %1, %cst {dimension_numbers = #tpu.dot_dimension_numbers<[1], [0], [0], [1], [0, 0, 1, 1], [], []>} : vector<32x192xf32>, vector<192x32xf32>, vector<32x32xf32> -> vector<32x32xf32>
    %c0_3 = arith.constant 0 : index
    %c0_4 = arith.constant 0 : index
    %3 = vector.load %arg3[%c0_3, %c0_4] : memref<1x32xf32, #tpu.memory_space<vmem>>, vector<1x32xf32>
    %4 = vector.broadcast %3 : vector<1x32xf32> to vector<32x32xf32>
    %5 = arith.addf %2, %4 : vector<32x32xf32>
    %c0_5 = arith.constant 0 : index
    %c0_6 = arith.constant 0 : index
    %6 = vector.load %arg4[%c0_5, %c0_6] : memref<40x32xf32, #tpu.memory_space<vmem>>, vector<8x32xf32>
    %c0_7 = arith.constant 0 : index
    %c0_8 = arith.constant 0 : index
    %7 = vector.load %arg15[%c0_7, %c0_8] : memref<40x32xf32, #tpu.memory_space<vmem>>, vector<8x32xf32>
    tpu.vector_store %arg15[%c0_7, %c0_8], %6 {strides = array<i32>} : memref<40x32xf32, #tpu.memory_space<vmem>>, vector<8x32xf32>,
    %c8 = arith.constant 8 : index
    %c0_9 = arith.constant 0 : index
    %8 = vector.load %arg4[%c8, %c0_9] : memref<40x32xf32, #tpu.memory_space<vmem>>, vector<32x32xf32>
    %9 = arith.addf %5, %8 : vector<32x32xf32>
    %c8_10 = arith.constant 8 : index
    %c0_11 = arith.constant 0 : index
    %10 = vector.load %arg15[%c8_10, %c0_11] : memref<40x32xf32, #tpu.memory_space<vmem>>, vector<32x32xf32>
    tpu.vector_store %arg15[%c8_10, %c0_11], %9 {strides = array<i32>} : memref<40x32xf32, #tpu.memory_space<vmem>>, vector<32x32xf32>,
    %c0_12 = arith.constant 0 : index
    %c0_13 = arith.constant 0 : index
    %11 = vector.load %arg15[%c0_12, %c0_13] : memref<40x32xf32, #tpu.memory_space<vmem>>, vector<40x32xf32>
    %c0_14 = arith.constant 0 : index
    %c0_15 = arith.constant 0 : index
    %12 = vector.load %arg5[%c0_14, %c0_15] : memref<40x40xf32, #tpu.memory_space<vmem>>, vector<40x40xf32>
    %c0_16 = arith.constant 0 : index
    %c0_17 = arith.constant 0 : index
    %c0_18 = arith.constant 0 : index
    %13 = vector.load %arg10[%c0_16, %c0_17, %c0_18] : memref<2x8x128xf32, #tpu.memory_space<vmem>>, vector<1x8x128xf32>
    %14 = vector.shape_cast %13 : vector<1x8x128xf32> to vector<8x128xf32>
    %15 = vector.extract_strided_slice %14 {offsets = [0, 0], sizes = [1, 32], strides = [1, 1]} : vector<8x128xf32> to vector<1x32xf32>
    %16 = vector.extract_strided_slice %14 {offsets = [1, 0], sizes = [1, 32], strides = [1, 1]} : vector<8x128xf32> to vector<1x32xf32>
    %17 = vector.extract_strided_slice %14 {offsets = [2, 0], sizes = [1, 96], strides = [1, 1]} : vector<8x128xf32> to vector<1x96xf32>
    %18 = vector.extract_strided_slice %14 {offsets = [3, 0], sizes = [1, 32], strides = [1, 1]} : vector<8x128xf32> to vector<1x32xf32>
    %19 = vector.extract_strided_slice %14 {offsets = [4, 0], sizes = [1, 32], strides = [1, 1]} : vector<8x128xf32> to vector<1x32xf32>
    %20 = vector.extract_strided_slice %14 {offsets = [5, 0], sizes = [1, 32], strides = [1, 1]} : vector<8x128xf32> to vector<1x32xf32>
    %21 = vector.extract_strided_slice %14 {offsets = [6, 0], sizes = [1, 128], strides = [1, 1]} : vector<8x128xf32> to vector<1x128xf32>
    %22 = vector.extract_strided_slice %14 {offsets = [7, 0], sizes = [1, 32], strides = [1, 1]} : vector<8x128xf32> to vector<1x32xf32>
    %cst_19 = arith.constant dense<0.000000e+00> : vector<40xf32>
    %23 = vector.multi_reduction <add>, %11, %cst_19 [1] : vector<40x32xf32> to vector<40xf32>
    %24 = vector.shape_cast %23 : vector<40xf32> to vector<40x1xf32>
    %cst_20 = arith.constant 3.200000e+01 : f32
    %25 = vector.broadcast %cst_20 : f32 to vector<40x1xf32>
    %26 = arith.divf %24, %25 : vector<40x1xf32>
    %27 = vector.broadcast %26 : vector<40x1xf32> to vector<40x32xf32>
    %28 = arith.subf %11, %27 : vector<40x32xf32>
    %29 = arith.mulf %28, %28 : vector<40x32xf32>
    %cst_21 = arith.constant dense<0.000000e+00> : vector<40xf32>
    %30 = vector.multi_reduction <add>, %29, %cst_21 [1] : vector<40x32xf32> to vector<40xf32>
    %31 = vector.shape_cast %30 : vector<40xf32> to vector<40x1xf32>
    %cst_22 = arith.constant 3.200000e+01 : f32
    %32 = vector.broadcast %cst_22 : f32 to vector<40x1xf32>
    %33 = arith.divf %31, %32 : vector<40x1xf32>
    %34 = vector.broadcast %26 : vector<40x1xf32> to vector<40x32xf32>
    %35 = arith.subf %11, %34 : vector<40x32xf32>
    %cst_23 = arith.constant 9.99999974E-6 : f32
    %36 = vector.broadcast %cst_23 : f32 to vector<40x1xf32>
    %37 = arith.addf %33, %36 : vector<40x1xf32>
    %38 = math.rsqrt %37 : vector<40x1xf32>
    %39 = vector.broadcast %38 : vector<40x1xf32> to vector<40x32xf32>
    %40 = arith.mulf %35, %39 : vector<40x32xf32>
    %41 = vector.broadcast %15 : vector<1x32xf32> to vector<40x32xf32>
    %42 = arith.mulf %40, %41 : vector<40x32xf32>
    %43 = vector.broadcast %16 : vector<1x32xf32> to vector<40x32xf32>
    %44 = arith.addf %42, %43 : vector<40x32xf32>
    %c0_24 = arith.constant 0 : index
    %c0_25 = arith.constant 0 : index
    %c0_26 = arith.constant 0 : index
    %45 = vector.load %arg6[%c0_24, %c0_25, %c0_26] : memref<2x32x96xf32, #tpu.memory_space<vmem>>, vector<1x32x96xf32>
    %46 = vector.shape_cast %45 : vector<1x32x96xf32> to vector<32x96xf32>
    %cst_27 = arith.constant dense<0.000000e+00> : vector<40x96xf32>
    %47 = tpu.matmul %44, %46, %cst_27 {dimension_numbers = #tpu.dot_dimension_numbers<[1], [0], [0], [1], [0, 0, 1, 1], [], []>} : vector<40x32xf32>, vector<32x96xf32>, vector<40x96xf32> -> vector<40x96xf32>
    %48 = vector.broadcast %17 : vector<1x96xf32> to vector<40x96xf32>
    %49 = arith.addf %47, %48 : vector<40x96xf32>
    %50 = vector.extract_strided_slice %49 {offsets = [0, 0], sizes = [40, 8], strides = [1, 1]} : vector<40x96xf32> to vector<40x8xf32>
    %51 = vector.extract_strided_slice %49 {offsets = [0, 32], sizes = [40, 8], strides = [1, 1]} : vector<40x96xf32> to vector<40x8xf32>
    %52 = vector.extract_strided_slice %49 {offsets = [0, 64], sizes = [40, 8], strides = [1, 1]} : vector<40x96xf32> to vector<40x8xf32>
    %cst_28 = arith.constant dense<0.000000e+00> : vector<40x40xf32>
    %53 = tpu.matmul %50, %51, %cst_28 {dimension_numbers = #tpu.dot_dimension_numbers<[1], [1], [0], [0], [0, 0, 1, 0], [], []>} : vector<40x8xf32>, vector<40x8xf32>, vector<40x40xf32> -> vector<40x40xf32>
    %cst_29 = arith.constant 0.353553385 : f32
    %54 = vector.broadcast %cst_29 : f32 to vector<40x40xf32>
    %55 = arith.mulf %53, %54 : vector<40x40xf32>
    %56 = arith.addf %55, %12 : vector<40x40xf32>
    %cst_30 = arith.constant dense<0xFF800000> : vector<40xf32>
    %57 = vector.multi_reduction <maximumf>, %56, %cst_30 [1] : vector<40x40xf32> to vector<40xf32>
    %58 = vector.shape_cast %57 : vector<40xf32> to vector<40x1xf32>
    %59 = vector.broadcast %58 : vector<40x1xf32> to vector<40x40xf32>
    %60 = arith.subf %56, %59 : vector<40x40xf32>
    %61 = math.exp %60 : vector<40x40xf32>
    %cst_31 = arith.constant dense<0.000000e+00> : vector<40xf32>
    %62 = vector.multi_reduction <add>, %61, %cst_31 [1] : vector<40x40xf32> to vector<40xf32>
    %63 = vector.shape_cast %62 : vector<40xf32> to vector<40x1xf32>
    %64 = tpu.reciprocal %63 {approx = true} : vector<40x1xf32> -> vector<40x1xf32>
    %65 = vector.broadcast %64 : vector<40x1xf32> to vector<40x40xf32>
    %66 = arith.mulf %61, %65 : vector<40x40xf32>
    %cst_32 = arith.constant dense<0.000000e+00> : vector<40x8xf32>
    %67 = tpu.matmul %66, %52, %cst_32 {dimension_numbers = #tpu.dot_dimension_numbers<[1], [0], [0], [1], [0, 0, 1, 1], [], []>} : vector<40x40xf32>, vector<40x8xf32>, vector<40x8xf32> -> vector<40x8xf32>
    %68 = vector.extract_strided_slice %49 {offsets = [0, 8], sizes = [40, 8], strides = [1, 1]} : vector<40x96xf32> to vector<40x8xf32>
    %69 = vector.extract_strided_slice %49 {offsets = [0, 40], sizes = [40, 8], strides = [1, 1]} : vector<40x96xf32> to vector<40x8xf32>
    %70 = vector.extract_strided_slice %49 {offsets = [0, 72], sizes = [40, 8], strides = [1, 1]} : vector<40x96xf32> to vector<40x8xf32>
    %cst_33 = arith.constant dense<0.000000e+00> : vector<40x40xf32>
    %71 = tpu.matmul %68, %69, %cst_33 {dimension_numbers = #tpu.dot_dimension_numbers<[1], [1], [0], [0], [0, 0, 1, 0], [], []>} : vector<40x8xf32>, vector<40x8xf32>, vector<40x40xf32> -> vector<40x40xf32>
    %cst_34 = arith.constant 0.353553385 : f32
    %72 = vector.broadcast %cst_34 : f32 to vector<40x40xf32>
    %73 = arith.mulf %71, %72 : vector<40x40xf32>
    %74 = arith.addf %73, %12 : vector<40x40xf32>
    %cst_35 = arith.constant dense<0xFF800000> : vector<40xf32>
    %75 = vector.multi_reduction <maximumf>, %74, %cst_35 [1] : vector<40x40xf32> to vector<40xf32>
    %76 = vector.shape_cast %75 : vector<40xf32> to vector<40x1xf32>
    %77 = vector.broadcast %76 : vector<40x1xf32> to vector<40x40xf32>
    %78 = arith.subf %74, %77 : vector<40x40xf32>
    %79 = math.exp %78 : vector<40x40xf32>
    %cst_36 = arith.constant dense<0.000000e+00> : vector<40xf32>
    %80 = vector.multi_reduction <add>, %79, %cst_36 [1] : vector<40x40xf32> to vector<40xf32>
    %81 = vector.shape_cast %80 : vector<40xf32> to vector<40x1xf32>
    %82 = tpu.reciprocal %81 {approx = true} : vector<40x1xf32> -> vector<40x1xf32>
    %83 = vector.broadcast %82 : vector<40x1xf32> to vector<40x40xf32>
    %84 = arith.mulf %79, %83 : vector<40x40xf32>
    %cst_37 = arith.constant dense<0.000000e+00> : vector<40x8xf32>
    %85 = tpu.matmul %84, %70, %cst_37 {dimension_numbers = #tpu.dot_dimension_numbers<[1], [0], [0], [1], [0, 0, 1, 1], [], []>} : vector<40x40xf32>, vector<40x8xf32>, vector<40x8xf32> -> vector<40x8xf32>
    %86 = vector.extract_strided_slice %49 {offsets = [0, 16], sizes = [40, 8], strides = [1, 1]} : vector<40x96xf32> to vector<40x8xf32>
    %87 = vector.extract_strided_slice %49 {offsets = [0, 48], sizes = [40, 8], strides = [1, 1]} : vector<40x96xf32> to vector<40x8xf32>
    %88 = vector.extract_strided_slice %49 {offsets = [0, 80], sizes = [40, 8], strides = [1, 1]} : vector<40x96xf32> to vector<40x8xf32>
    %cst_38 = arith.constant dense<0.000000e+00> : vector<40x40xf32>
    %89 = tpu.matmul %86, %87, %cst_38 {dimension_numbers = #tpu.dot_dimension_numbers<[1], [1], [0], [0], [0, 0, 1, 0], [], []>} : vector<40x8xf32>, vector<40x8xf32>, vector<40x40xf32> -> vector<40x40xf32>
    %cst_39 = arith.constant 0.353553385 : f32
    %90 = vector.broadcast %cst_39 : f32 to vector<40x40xf32>
    %91 = arith.mulf %89, %90 : vector<40x40xf32>
    %92 = arith.addf %91, %12 : vector<40x40xf32>
    %cst_40 = arith.constant dense<0xFF800000> : vector<40xf32>
    %93 = vector.multi_reduction <maximumf>, %92, %cst_40 [1] : vector<40x40xf32> to vector<40xf32>
    %94 = vector.shape_cast %93 : vector<40xf32> to vector<40x1xf32>
    %95 = vector.broadcast %94 : vector<40x1xf32> to vector<40x40xf32>
    %96 = arith.subf %92, %95 : vector<40x40xf32>
    %97 = math.exp %96 : vector<40x40xf32>
    %cst_41 = arith.constant dense<0.000000e+00> : vector<40xf32>
    %98 = vector.multi_reduction <add>, %97, %cst_41 [1] : vector<40x40xf32> to vector<40xf32>
    %99 = vector.shape_cast %98 : vector<40xf32> to vector<40x1xf32>
    %100 = tpu.reciprocal %99 {approx = true} : vector<40x1xf32> -> vector<40x1xf32>
    %101 = vector.broadcast %100 : vector<40x1xf32> to vector<40x40xf32>
    %102 = arith.mulf %97, %101 : vector<40x40xf32>
    %cst_42 = arith.constant dense<0.000000e+00> : vector<40x8xf32>
    %103 = tpu.matmul %102, %88, %cst_42 {dimension_numbers = #tpu.dot_dimension_numbers<[1], [0], [0], [1], [0, 0, 1, 1], [], []>} : vector<40x40xf32>, vector<40x8xf32>, vector<40x8xf32> -> vector<40x8xf32>
    %104 = vector.extract_strided_slice %49 {offsets = [0, 24], sizes = [40, 8], strides = [1, 1]} : vector<40x96xf32> to vector<40x8xf32>
    %105 = vector.extract_strided_slice %49 {offsets = [0, 56], sizes = [40, 8], strides = [1, 1]} : vector<40x96xf32> to vector<40x8xf32>
    %106 = vector.extract_strided_slice %49 {offsets = [0, 88], sizes = [40, 8], strides = [1, 1]} : vector<40x96xf32> to vector<40x8xf32>
    %cst_43 = arith.constant dense<0.000000e+00> : vector<40x40xf32>
    %107 = tpu.matmul %104, %105, %cst_43 {dimension_numbers = #tpu.dot_dimension_numbers<[1], [1], [0], [0], [0, 0, 1, 0], [], []>} : vector<40x8xf32>, vector<40x8xf32>, vector<40x40xf32> -> vector<40x40xf32>
    %cst_44 = arith.constant 0.353553385 : f32
    %108 = vector.broadcast %cst_44 : f32 to vector<40x40xf32>
    %109 = arith.mulf %107, %108 : vector<40x40xf32>
    %110 = arith.addf %109, %12 : vector<40x40xf32>
    %cst_45 = arith.constant dense<0xFF800000> : vector<40xf32>
    %111 = vector.multi_reduction <maximumf>, %110, %cst_45 [1] : vector<40x40xf32> to vector<40xf32>
    %112 = vector.shape_cast %111 : vector<40xf32> to vector<40x1xf32>
    %113 = vector.broadcast %112 : vector<40x1xf32> to vector<40x40xf32>
    %114 = arith.subf %110, %113 : vector<40x40xf32>
    %115 = math.exp %114 : vector<40x40xf32>
    %cst_46 = arith.constant dense<0.000000e+00> : vector<40xf32>
    %116 = vector.multi_reduction <add>, %115, %cst_46 [1] : vector<40x40xf32> to vector<40xf32>
    %117 = vector.shape_cast %116 : vector<40xf32> to vector<40x1xf32>
    %118 = tpu.reciprocal %117 {approx = true} : vector<40x1xf32> -> vector<40x1xf32>
    %119 = vector.broadcast %118 : vector<40x1xf32> to vector<40x40xf32>
    %120 = arith.mulf %115, %119 : vector<40x40xf32>
    %cst_47 = arith.constant dense<0.000000e+00> : vector<40x8xf32>
    %121 = tpu.matmul %120, %106, %cst_47 {dimension_numbers = #tpu.dot_dimension_numbers<[1], [0], [0], [1], [0, 0, 1, 1], [], []>} : vector<40x40xf32>, vector<40x8xf32>, vector<40x8xf32> -> vector<40x8xf32>
    %122 = tpu.concatenate %67, %85, %103, %121 in 1 : vector<40x8xf32>, vector<40x8xf32>, vector<40x8xf32>, vector<40x8xf32> -> vector<40x32xf32>
    %c0_48 = arith.constant 0 : index
    %c0_49 = arith.constant 0 : index
    %c0_50 = arith.constant 0 : index
    %123 = vector.load %arg7[%c0_48, %c0_49, %c0_50] : memref<2x32x32xf32, #tpu.memory_space<vmem>>, vector<1x32x32xf32>
    %124 = vector.shape_cast %123 : vector<1x32x32xf32> to vector<32x32xf32>
    %cst_51 = arith.constant dense<0.000000e+00> : vector<40x32xf32>
    %125 = tpu.matmul %122, %124, %cst_51 {dimension_numbers = #tpu.dot_dimension_numbers<[1], [0], [0], [1], [0, 0, 1, 1], [], []>} : vector<40x32xf32>, vector<32x32xf32>, vector<40x32xf32> -> vector<40x32xf32>
    %126 = vector.broadcast %18 : vector<1x32xf32> to vector<40x32xf32>
    %127 = arith.addf %125, %126 : vector<40x32xf32>
    %128 = arith.addf %11, %127 : vector<40x32xf32>
    %cst_52 = arith.constant dense<0.000000e+00> : vector<40xf32>
    %129 = vector.multi_reduction <add>, %128, %cst_52 [1] : vector<40x32xf32> to vector<40xf32>
    %130 = vector.shape_cast %129 : vector<40xf32> to vector<40x1xf32>
    %cst_53 = arith.constant 3.200000e+01 : f32
    %131 = vector.broadcast %cst_53 : f32 to vector<40x1xf32>
    %132 = arith.divf %130, %131 : vector<40x1xf32>
    %133 = vector.broadcast %132 : vector<40x1xf32> to vector<40x32xf32>
    %134 = arith.subf %128, %133 : vector<40x32xf32>
    %135 = arith.mulf %134, %134 : vector<40x32xf32>
    %cst_54 = arith.constant dense<0.000000e+00> : vector<40xf32>
    %136 = vector.multi_reduction <add>, %135, %cst_54 [1] : vector<40x32xf32> to vector<40xf32>
    %137 = vector.shape_cast %136 : vector<40xf32> to vector<40x1xf32>
    %cst_55 = arith.constant 3.200000e+01 : f32
    %138 = vector.broadcast %cst_55 : f32 to vector<40x1xf32>
    %139 = arith.divf %137, %138 : vector<40x1xf32>
    %140 = vector.broadcast %132 : vector<40x1xf32> to vector<40x32xf32>
    %141 = arith.subf %128, %140 : vector<40x32xf32>
    %cst_56 = arith.constant 9.99999974E-6 : f32
    %142 = vector.broadcast %cst_56 : f32 to vector<40x1xf32>
    %143 = arith.addf %139, %142 : vector<40x1xf32>
    %144 = math.rsqrt %143 : vector<40x1xf32>
    %145 = vector.broadcast %144 : vector<40x1xf32> to vector<40x32xf32>
    %146 = arith.mulf %141, %145 : vector<40x32xf32>
    %147 = vector.broadcast %19 : vector<1x32xf32> to vector<40x32xf32>
    %148 = arith.mulf %146, %147 : vector<40x32xf32>
    %149 = vector.broadcast %20 : vector<1x32xf32> to vector<40x32xf32>
    %150 = arith.addf %148, %149 : vector<40x32xf32>
    %c0_57 = arith.constant 0 : index
    %c0_58 = arith.constant 0 : index
    %c0_59 = arith.constant 0 : index
    %151 = vector.load %arg8[%c0_57, %c0_58, %c0_59] : memref<2x32x128xf32, #tpu.memory_space<vmem>>, vector<1x32x128xf32>
    %152 = vector.shape_cast %151 : vector<1x32x128xf32> to vector<32x128xf32>
    %cst_60 = arith.constant dense<0.000000e+00> : vector<40x128xf32>
    %153 = tpu.matmul %150, %152, %cst_60 {dimension_numbers = #tpu.dot_dimension_numbers<[1], [0], [0], [1], [0, 0, 1, 1], [], []>} : vector<40x32xf32>, vector<32x128xf32>, vector<40x128xf32> -> vector<40x128xf32>
    %154 = vector.broadcast %21 : vector<1x128xf32> to vector<40x128xf32>
    %155 = arith.addf %153, %154 : vector<40x128xf32>
    %cst_61 = arith.constant 5.000000e-01 : f32
    %156 = vector.broadcast %cst_61 : f32 to vector<40x128xf32>
    %157 = arith.mulf %156, %155 : vector<40x128xf32>
    %cst_62 = arith.constant 0.707106769 : f32
    %158 = vector.broadcast %cst_62 : f32 to vector<40x128xf32>
    %159 = arith.mulf %155, %158 : vector<40x128xf32>
    %160 = math.erf %159 : vector<40x128xf32>
    %cst_63 = arith.constant 1.000000e+00 : f32
    %161 = vector.broadcast %cst_63 : f32 to vector<40x128xf32>
    %162 = arith.addf %161, %160 : vector<40x128xf32>
    %163 = arith.mulf %157, %162 : vector<40x128xf32>
    %c0_64 = arith.constant 0 : index
    %c0_65 = arith.constant 0 : index
    %c0_66 = arith.constant 0 : index
    %164 = vector.load %arg9[%c0_64, %c0_65, %c0_66] : memref<2x128x32xf32, #tpu.memory_space<vmem>>, vector<1x128x32xf32>
    %165 = vector.shape_cast %164 : vector<1x128x32xf32> to vector<128x32xf32>
    %cst_67 = arith.constant dense<0.000000e+00> : vector<40x32xf32>
    %166 = tpu.matmul %163, %165, %cst_67 {dimension_numbers = #tpu.dot_dimension_numbers<[1], [0], [0], [1], [0, 0, 1, 1], [], []>} : vector<40x128xf32>, vector<128x32xf32>, vector<40x32xf32> -> vector<40x32xf32>
    %167 = vector.broadcast %22 : vector<1x32xf32> to vector<40x32xf32>
    %168 = arith.addf %166, %167 : vector<40x32xf32>
    %169 = arith.addf %128, %168 : vector<40x32xf32>
    %c1 = arith.constant 1 : index
    %c0_68 = arith.constant 0 : index
    %c0_69 = arith.constant 0 : index
    %170 = vector.load %arg10[%c1, %c0_68, %c0_69] : memref<2x8x128xf32, #tpu.memory_space<vmem>>, vector<1x8x128xf32>
    %171 = vector.shape_cast %170 : vector<1x8x128xf32> to vector<8x128xf32>
    %172 = vector.extract_strided_slice %171 {offsets = [0, 0], sizes = [1, 32], strides = [1, 1]} : vector<8x128xf32> to vector<1x32xf32>
    %173 = vector.extract_strided_slice %171 {offsets = [1, 0], sizes = [1, 32], strides = [1, 1]} : vector<8x128xf32> to vector<1x32xf32>
    %174 = vector.extract_strided_slice %171 {offsets = [2, 0], sizes = [1, 96], strides = [1, 1]} : vector<8x128xf32> to vector<1x96xf32>
    %175 = vector.extract_strided_slice %171 {offsets = [3, 0], sizes = [1, 32], strides = [1, 1]} : vector<8x128xf32> to vector<1x32xf32>
    %176 = vector.extract_strided_slice %171 {offsets = [4, 0], sizes = [1, 32], strides = [1, 1]} : vector<8x128xf32> to vector<1x32xf32>
    %177 = vector.extract_strided_slice %171 {offsets = [5, 0], sizes = [1, 32], strides = [1, 1]} : vector<8x128xf32> to vector<1x32xf32>
    %178 = vector.extract_strided_slice %171 {offsets = [6, 0], sizes = [1, 128], strides = [1, 1]} : vector<8x128xf32> to vector<1x128xf32>
    %179 = vector.extract_strided_slice %171 {offsets = [7, 0], sizes = [1, 32], strides = [1, 1]} : vector<8x128xf32> to vector<1x32xf32>
    %cst_70 = arith.constant dense<0.000000e+00> : vector<40xf32>
    %180 = vector.multi_reduction <add>, %169, %cst_70 [1] : vector<40x32xf32> to vector<40xf32>
    %181 = vector.shape_cast %180 : vector<40xf32> to vector<40x1xf32>
    %cst_71 = arith.constant 3.200000e+01 : f32
    %182 = vector.broadcast %cst_71 : f32 to vector<40x1xf32>
    %183 = arith.divf %181, %182 : vector<40x1xf32>
    %184 = vector.broadcast %183 : vector<40x1xf32> to vector<40x32xf32>
    %185 = arith.subf %169, %184 : vector<40x32xf32>
    %186 = arith.mulf %185, %185 : vector<40x32xf32>
    %cst_72 = arith.constant dense<0.000000e+00> : vector<40xf32>
    %187 = vector.multi_reduction <add>, %186, %cst_72 [1] : vector<40x32xf32> to vector<40xf32>
    %188 = vector.shape_cast %187 : vector<40xf32> to vector<40x1xf32>
    %cst_73 = arith.constant 3.200000e+01 : f32
    %189 = vector.broadcast %cst_73 : f32 to vector<40x1xf32>
    %190 = arith.divf %188, %189 : vector<40x1xf32>
    %191 = vector.broadcast %183 : vector<40x1xf32> to vector<40x32xf32>
    %192 = arith.subf %169, %191 : vector<40x32xf32>
    %cst_74 = arith.constant 9.99999974E-6 : f32
    %193 = vector.broadcast %cst_74 : f32 to vector<40x1xf32>
    %194 = arith.addf %190, %193 : vector<40x1xf32>
    %195 = math.rsqrt %194 : vector<40x1xf32>
    %196 = vector.broadcast %195 : vector<40x1xf32> to vector<40x32xf32>
    %197 = arith.mulf %192, %196 : vector<40x32xf32>
    %198 = vector.broadcast %172 : vector<1x32xf32> to vector<40x32xf32>
    %199 = arith.mulf %197, %198 : vector<40x32xf32>
    %200 = vector.broadcast %173 : vector<1x32xf32> to vector<40x32xf32>
    %201 = arith.addf %199, %200 : vector<40x32xf32>
    %c1_75 = arith.constant 1 : index
    %c0_76 = arith.constant 0 : index
    %c0_77 = arith.constant 0 : index
    %202 = vector.load %arg6[%c1_75, %c0_76, %c0_77] : memref<2x32x96xf32, #tpu.memory_space<vmem>>, vector<1x32x96xf32>
    %203 = vector.shape_cast %202 : vector<1x32x96xf32> to vector<32x96xf32>
    %cst_78 = arith.constant dense<0.000000e+00> : vector<40x96xf32>
    %204 = tpu.matmul %201, %203, %cst_78 {dimension_numbers = #tpu.dot_dimension_numbers<[1], [0], [0], [1], [0, 0, 1, 1], [], []>} : vector<40x32xf32>, vector<32x96xf32>, vector<40x96xf32> -> vector<40x96xf32>
    %205 = vector.broadcast %174 : vector<1x96xf32> to vector<40x96xf32>
    %206 = arith.addf %204, %205 : vector<40x96xf32>
    %207 = vector.extract_strided_slice %206 {offsets = [0, 0], sizes = [40, 8], strides = [1, 1]} : vector<40x96xf32> to vector<40x8xf32>
    %208 = vector.extract_strided_slice %206 {offsets = [0, 32], sizes = [40, 8], strides = [1, 1]} : vector<40x96xf32> to vector<40x8xf32>
    %209 = vector.extract_strided_slice %206 {offsets = [0, 64], sizes = [40, 8], strides = [1, 1]} : vector<40x96xf32> to vector<40x8xf32>
    %cst_79 = arith.constant dense<0.000000e+00> : vector<40x40xf32>
    %210 = tpu.matmul %207, %208, %cst_79 {dimension_numbers = #tpu.dot_dimension_numbers<[1], [1], [0], [0], [0, 0, 1, 0], [], []>} : vector<40x8xf32>, vector<40x8xf32>, vector<40x40xf32> -> vector<40x40xf32>
    %cst_80 = arith.constant 0.353553385 : f32
    %211 = vector.broadcast %cst_80 : f32 to vector<40x40xf32>
    %212 = arith.mulf %210, %211 : vector<40x40xf32>
    %213 = arith.addf %212, %12 : vector<40x40xf32>
    %cst_81 = arith.constant dense<0xFF800000> : vector<40xf32>
    %214 = vector.multi_reduction <maximumf>, %213, %cst_81 [1] : vector<40x40xf32> to vector<40xf32>
    %215 = vector.shape_cast %214 : vector<40xf32> to vector<40x1xf32>
    %216 = vector.broadcast %215 : vector<40x1xf32> to vector<40x40xf32>
    %217 = arith.subf %213, %216 : vector<40x40xf32>
    %218 = math.exp %217 : vector<40x40xf32>
    %cst_82 = arith.constant dense<0.000000e+00> : vector<40xf32>
    %219 = vector.multi_reduction <add>, %218, %cst_82 [1] : vector<40x40xf32> to vector<40xf32>
    %220 = vector.shape_cast %219 : vector<40xf32> to vector<40x1xf32>
    %221 = tpu.reciprocal %220 {approx = true} : vector<40x1xf32> -> vector<40x1xf32>
    %222 = vector.broadcast %221 : vector<40x1xf32> to vector<40x40xf32>
    %223 = arith.mulf %218, %222 : vector<40x40xf32>
    %cst_83 = arith.constant dense<0.000000e+00> : vector<40x8xf32>
    %224 = tpu.matmul %223, %209, %cst_83 {dimension_numbers = #tpu.dot_dimension_numbers<[1], [0], [0], [1], [0, 0, 1, 1], [], []>} : vector<40x40xf32>, vector<40x8xf32>, vector<40x8xf32> -> vector<40x8xf32>
    %225 = vector.extract_strided_slice %206 {offsets = [0, 8], sizes = [40, 8], strides = [1, 1]} : vector<40x96xf32> to vector<40x8xf32>
    %226 = vector.extract_strided_slice %206 {offsets = [0, 40], sizes = [40, 8], strides = [1, 1]} : vector<40x96xf32> to vector<40x8xf32>
    %227 = vector.extract_strided_slice %206 {offsets = [0, 72], sizes = [40, 8], strides = [1, 1]} : vector<40x96xf32> to vector<40x8xf32>
    %cst_84 = arith.constant dense<0.000000e+00> : vector<40x40xf32>
    %228 = tpu.matmul %225, %226, %cst_84 {dimension_numbers = #tpu.dot_dimension_numbers<[1], [1], [0], [0], [0, 0, 1, 0], [], []>} : vector<40x8xf32>, vector<40x8xf32>, vector<40x40xf32> -> vector<40x40xf32>
    %cst_85 = arith.constant 0.353553385 : f32
    %229 = vector.broadcast %cst_85 : f32 to vector<40x40xf32>
    %230 = arith.mulf %228, %229 : vector<40x40xf32>
    %231 = arith.addf %230, %12 : vector<40x40xf32>
    %cst_86 = arith.constant dense<0xFF800000> : vector<40xf32>
    %232 = vector.multi_reduction <maximumf>, %231, %cst_86 [1] : vector<40x40xf32> to vector<40xf32>
    %233 = vector.shape_cast %232 : vector<40xf32> to vector<40x1xf32>
    %234 = vector.broadcast %233 : vector<40x1xf32> to vector<40x40xf32>
    %235 = arith.subf %231, %234 : vector<40x40xf32>
    %236 = math.exp %235 : vector<40x40xf32>
    %cst_87 = arith.constant dense<0.000000e+00> : vector<40xf32>
    %237 = vector.multi_reduction <add>, %236, %cst_87 [1] : vector<40x40xf32> to vector<40xf32>
    %238 = vector.shape_cast %237 : vector<40xf32> to vector<40x1xf32>
    %239 = tpu.reciprocal %238 {approx = true} : vector<40x1xf32> -> vector<40x1xf32>
    %240 = vector.broadcast %239 : vector<40x1xf32> to vector<40x40xf32>
    %241 = arith.mulf %236, %240 : vector<40x40xf32>
    %cst_88 = arith.constant dense<0.000000e+00> : vector<40x8xf32>
    %242 = tpu.matmul %241, %227, %cst_88 {dimension_numbers = #tpu.dot_dimension_numbers<[1], [0], [0], [1], [0, 0, 1, 1], [], []>} : vector<40x40xf32>, vector<40x8xf32>, vector<40x8xf32> -> vector<40x8xf32>
    %243 = vector.extract_strided_slice %206 {offsets = [0, 16], sizes = [40, 8], strides = [1, 1]} : vector<40x96xf32> to vector<40x8xf32>
    %244 = vector.extract_strided_slice %206 {offsets = [0, 48], sizes = [40, 8], strides = [1, 1]} : vector<40x96xf32> to vector<40x8xf32>
    %245 = vector.extract_strided_slice %206 {offsets = [0, 80], sizes = [40, 8], strides = [1, 1]} : vector<40x96xf32> to vector<40x8xf32>
    %cst_89 = arith.constant dense<0.000000e+00> : vector<40x40xf32>
    %246 = tpu.matmul %243, %244, %cst_89 {dimension_numbers = #tpu.dot_dimension_numbers<[1], [1], [0], [0], [0, 0, 1, 0], [], []>} : vector<40x8xf32>, vector<40x8xf32>, vector<40x40xf32> -> vector<40x40xf32>
    %cst_90 = arith.constant 0.353553385 : f32
    %247 = vector.broadcast %cst_90 : f32 to vector<40x40xf32>
    %248 = arith.mulf %246, %247 : vector<40x40xf32>
    %249 = arith.addf %248, %12 : vector<40x40xf32>
    %cst_91 = arith.constant dense<0xFF800000> : vector<40xf32>
    %250 = vector.multi_reduction <maximumf>, %249, %cst_91 [1] : vector<40x40xf32> to vector<40xf32>
    %251 = vector.shape_cast %250 : vector<40xf32> to vector<40x1xf32>
    %252 = vector.broadcast %251 : vector<40x1xf32> to vector<40x40xf32>
    %253 = arith.subf %249, %252 : vector<40x40xf32>
    %254 = math.exp %253 : vector<40x40xf32>
    %cst_92 = arith.constant dense<0.000000e+00> : vector<40xf32>
    %255 = vector.multi_reduction <add>, %254, %cst_92 [1] : vector<40x40xf32> to vector<40xf32>
    %256 = vector.shape_cast %255 : vector<40xf32> to vector<40x1xf32>
    %257 = tpu.reciprocal %256 {approx = true} : vector<40x1xf32> -> vector<40x1xf32>
    %258 = vector.broadcast %257 : vector<40x1xf32> to vector<40x40xf32>
    %259 = arith.mulf %254, %258 : vector<40x40xf32>
    %cst_93 = arith.constant dense<0.000000e+00> : vector<40x8xf32>
    %260 = tpu.matmul %259, %245, %cst_93 {dimension_numbers = #tpu.dot_dimension_numbers<[1], [0], [0], [1], [0, 0, 1, 1], [], []>} : vector<40x40xf32>, vector<40x8xf32>, vector<40x8xf32> -> vector<40x8xf32>
    %261 = vector.extract_strided_slice %206 {offsets = [0, 24], sizes = [40, 8], strides = [1, 1]} : vector<40x96xf32> to vector<40x8xf32>
    %262 = vector.extract_strided_slice %206 {offsets = [0, 56], sizes = [40, 8], strides = [1, 1]} : vector<40x96xf32> to vector<40x8xf32>
    %263 = vector.extract_strided_slice %206 {offsets = [0, 88], sizes = [40, 8], strides = [1, 1]} : vector<40x96xf32> to vector<40x8xf32>
    %cst_94 = arith.constant dense<0.000000e+00> : vector<40x40xf32>
    %264 = tpu.matmul %261, %262, %cst_94 {dimension_numbers = #tpu.dot_dimension_numbers<[1], [1], [0], [0], [0, 0, 1, 0], [], []>} : vector<40x8xf32>, vector<40x8xf32>, vector<40x40xf32> -> vector<40x40xf32>
    %cst_95 = arith.constant 0.353553385 : f32
    %265 = vector.broadcast %cst_95 : f32 to vector<40x40xf32>
    %266 = arith.mulf %264, %265 : vector<40x40xf32>
    %267 = arith.addf %266, %12 : vector<40x40xf32>
    %cst_96 = arith.constant dense<0xFF800000> : vector<40xf32>
    %268 = vector.multi_reduction <maximumf>, %267, %cst_96 [1] : vector<40x40xf32> to vector<40xf32>
    %269 = vector.shape_cast %268 : vector<40xf32> to vector<40x1xf32>
    %270 = vector.broadcast %269 : vector<40x1xf32> to vector<40x40xf32>
    %271 = arith.subf %267, %270 : vector<40x40xf32>
    %272 = math.exp %271 : vector<40x40xf32>
    %cst_97 = arith.constant dense<0.000000e+00> : vector<40xf32>
    %273 = vector.multi_reduction <add>, %272, %cst_97 [1] : vector<40x40xf32> to vector<40xf32>
    %274 = vector.shape_cast %273 : vector<40xf32> to vector<40x1xf32>
    %275 = tpu.reciprocal %274 {approx = true} : vector<40x1xf32> -> vector<40x1xf32>
    %276 = vector.broadcast %275 : vector<40x1xf32> to vector<40x40xf32>
    %277 = arith.mulf %272, %276 : vector<40x40xf32>
    %cst_98 = arith.constant dense<0.000000e+00> : vector<40x8xf32>
    %278 = tpu.matmul %277, %263, %cst_98 {dimension_numbers = #tpu.dot_dimension_numbers<[1], [0], [0], [1], [0, 0, 1, 1], [], []>} : vector<40x40xf32>, vector<40x8xf32>, vector<40x8xf32> -> vector<40x8xf32>
    %279 = tpu.concatenate %224, %242, %260, %278 in 1 : vector<40x8xf32>, vector<40x8xf32>, vector<40x8xf32>, vector<40x8xf32> -> vector<40x32xf32>
    %c1_99 = arith.constant 1 : index
    %c0_100 = arith.constant 0 : index
    %c0_101 = arith.constant 0 : index
    %280 = vector.load %arg7[%c1_99, %c0_100, %c0_101] : memref<2x32x32xf32, #tpu.memory_space<vmem>>, vector<1x32x32xf32>
    %281 = vector.shape_cast %280 : vector<1x32x32xf32> to vector<32x32xf32>
    %cst_102 = arith.constant dense<0.000000e+00> : vector<40x32xf32>
    %282 = tpu.matmul %279, %281, %cst_102 {dimension_numbers = #tpu.dot_dimension_numbers<[1], [0], [0], [1], [0, 0, 1, 1], [], []>} : vector<40x32xf32>, vector<32x32xf32>, vector<40x32xf32> -> vector<40x32xf32>
    %283 = vector.broadcast %175 : vector<1x32xf32> to vector<40x32xf32>
    %284 = arith.addf %282, %283 : vector<40x32xf32>
    %285 = arith.addf %169, %284 : vector<40x32xf32>
    %cst_103 = arith.constant dense<0.000000e+00> : vector<40xf32>
    %286 = vector.multi_reduction <add>, %285, %cst_103 [1] : vector<40x32xf32> to vector<40xf32>
    %287 = vector.shape_cast %286 : vector<40xf32> to vector<40x1xf32>
    %cst_104 = arith.constant 3.200000e+01 : f32
    %288 = vector.broadcast %cst_104 : f32 to vector<40x1xf32>
    %289 = arith.divf %287, %288 : vector<40x1xf32>
    %290 = vector.broadcast %289 : vector<40x1xf32> to vector<40x32xf32>
    %291 = arith.subf %285, %290 : vector<40x32xf32>
    %292 = arith.mulf %291, %291 : vector<40x32xf32>
    %cst_105 = arith.constant dense<0.000000e+00> : vector<40xf32>
    %293 = vector.multi_reduction <add>, %292, %cst_105 [1] : vector<40x32xf32> to vector<40xf32>
    %294 = vector.shape_cast %293 : vector<40xf32> to vector<40x1xf32>
    %cst_106 = arith.constant 3.200000e+01 : f32
    %295 = vector.broadcast %cst_106 : f32 to vector<40x1xf32>
    %296 = arith.divf %294, %295 : vector<40x1xf32>
    %297 = vector.broadcast %289 : vector<40x1xf32> to vector<40x32xf32>
    %298 = arith.subf %285, %297 : vector<40x32xf32>
    %cst_107 = arith.constant 9.99999974E-6 : f32
    %299 = vector.broadcast %cst_107 : f32 to vector<40x1xf32>
    %300 = arith.addf %296, %299 : vector<40x1xf32>
    %301 = math.rsqrt %300 : vector<40x1xf32>
    %302 = vector.broadcast %301 : vector<40x1xf32> to vector<40x32xf32>
    %303 = arith.mulf %298, %302 : vector<40x32xf32>
    %304 = vector.broadcast %176 : vector<1x32xf32> to vector<40x32xf32>
    %305 = arith.mulf %303, %304 : vector<40x32xf32>
    %306 = vector.broadcast %177 : vector<1x32xf32> to vector<40x32xf32>
    %307 = arith.addf %305, %306 : vector<40x32xf32>
    %c1_108 = arith.constant 1 : index
    %c0_109 = arith.constant 0 : index
    %c0_110 = arith.constant 0 : index
    %308 = vector.load %arg8[%c1_108, %c0_109, %c0_110] : memref<2x32x128xf32, #tpu.memory_space<vmem>>, vector<1x32x128xf32>
    %309 = vector.shape_cast %308 : vector<1x32x128xf32> to vector<32x128xf32>
    %cst_111 = arith.constant dense<0.000000e+00> : vector<40x128xf32>
    %310 = tpu.matmul %307, %309, %cst_111 {dimension_numbers = #tpu.dot_dimension_numbers<[1], [0], [0], [1], [0, 0, 1, 1], [], []>} : vector<40x32xf32>, vector<32x128xf32>, vector<40x128xf32> -> vector<40x128xf32>
    %311 = vector.broadcast %178 : vector<1x128xf32> to vector<40x128xf32>
    %312 = arith.addf %310, %311 : vector<40x128xf32>
    %cst_112 = arith.constant 5.000000e-01 : f32
    %313 = vector.broadcast %cst_112 : f32 to vector<40x128xf32>
    %314 = arith.mulf %313, %312 : vector<40x128xf32>
    %cst_113 = arith.constant 0.707106769 : f32
    %315 = vector.broadcast %cst_113 : f32 to vector<40x128xf32>
    %316 = arith.mulf %312, %315 : vector<40x128xf32>
    %317 = math.erf %316 : vector<40x128xf32>
    %cst_114 = arith.constant 1.000000e+00 : f32
    %318 = vector.broadcast %cst_114 : f32 to vector<40x128xf32>
    %319 = arith.addf %318, %317 : vector<40x128xf32>
    %320 = arith.mulf %314, %319 : vector<40x128xf32>
    %c1_115 = arith.constant 1 : index
    %c0_116 = arith.constant 0 : index
    %c0_117 = arith.constant 0 : index
    %321 = vector.load %arg9[%c1_115, %c0_116, %c0_117] : memref<2x128x32xf32, #tpu.memory_space<vmem>>, vector<1x128x32xf32>
    %322 = vector.shape_cast %321 : vector<1x128x32xf32> to vector<128x32xf32>
    %cst_118 = arith.constant dense<0.000000e+00> : vector<40x32xf32>
    %323 = tpu.matmul %320, %322, %cst_118 {dimension_numbers = #tpu.dot_dimension_numbers<[1], [0], [0], [1], [0, 0, 1, 1], [], []>} : vector<40x128xf32>, vector<128x32xf32>, vector<40x32xf32> -> vector<40x32xf32>
    %324 = vector.broadcast %179 : vector<1x32xf32> to vector<40x32xf32>
    %325 = arith.addf %323, %324 : vector<40x32xf32>
    %326 = arith.addf %285, %325 : vector<40x32xf32>
    %327 = vector.extract_strided_slice %326 {offsets = [0, 0], sizes = [8, 32], strides = [1, 1]} : vector<40x32xf32> to vector<8x32xf32>
    %c0_119 = arith.constant 0 : index
    %c0_120 = arith.constant 0 : index
    %328 = vector.load %arg11[%c0_119, %c0_120] : memref<2x32xf32, #tpu.memory_space<vmem>>, vector<1x32xf32>
    %c1_121 = arith.constant 1 : index
    %c0_122 = arith.constant 0 : index
    %329 = vector.load %arg11[%c1_121, %c0_122] : memref<2x32xf32, #tpu.memory_space<vmem>>, vector<1x32xf32>
    %cst_123 = arith.constant dense<0.000000e+00> : vector<8xf32>
    %330 = vector.multi_reduction <add>, %327, %cst_123 [1] : vector<8x32xf32> to vector<8xf32>
    %331 = vector.shape_cast %330 : vector<8xf32> to vector<8x1xf32>
    %cst_124 = arith.constant 3.200000e+01 : f32
    %332 = vector.broadcast %cst_124 : f32 to vector<8x1xf32>
    %333 = arith.divf %331, %332 : vector<8x1xf32>
    %334 = vector.broadcast %333 : vector<8x1xf32> to vector<8x32xf32>
    %335 = arith.subf %327, %334 : vector<8x32xf32>
    %336 = arith.mulf %335, %335 : vector<8x32xf32>
    %cst_125 = arith.constant dense<0.000000e+00> : vector<8xf32>
    %337 = vector.multi_reduction <add>, %336, %cst_125 [1] : vector<8x32xf32> to vector<8xf32>
    %338 = vector.shape_cast %337 : vector<8xf32> to vector<8x1xf32>
    %cst_126 = arith.constant 3.200000e+01 : f32
    %339 = vector.broadcast %cst_126 : f32 to vector<8x1xf32>
    %340 = arith.divf %338, %339 : vector<8x1xf32>
    %341 = vector.broadcast %333 : vector<8x1xf32> to vector<8x32xf32>
    %342 = arith.subf %327, %341 : vector<8x32xf32>
    %cst_127 = arith.constant 9.99999974E-6 : f32
    %343 = vector.broadcast %cst_127 : f32 to vector<8x1xf32>
    %344 = arith.addf %340, %343 : vector<8x1xf32>
    %345 = math.rsqrt %344 : vector<8x1xf32>
    %346 = vector.broadcast %345 : vector<8x1xf32> to vector<8x32xf32>
    %347 = arith.mulf %342, %346 : vector<8x32xf32>
    %348 = vector.broadcast %328 : vector<1x32xf32> to vector<8x32xf32>
    %349 = arith.mulf %347, %348 : vector<8x32xf32>
    %350 = vector.broadcast %329 : vector<1x32xf32> to vector<8x32xf32>
    %351 = arith.addf %349, %350 : vector<8x32xf32>
    %c0_128 = arith.constant 0 : index
    %c0_129 = arith.constant 0 : index
    %352 = vector.load %arg12[%c0_128, %c0_129] : memref<32x128xf32, #tpu.memory_space<vmem>>, vector<32x128xf32>
    %cst_130 = arith.constant dense<0.000000e+00> : vector<8x128xf32>
    %353 = tpu.matmul %351, %352, %cst_130 {dimension_numbers = #tpu.dot_dimension_numbers<[1], [0], [0], [1], [0, 0, 1, 1], [], []>} : vector<8x32xf32>, vector<32x128xf32>, vector<8x128xf32> -> vector<8x128xf32>
    %c0_131 = arith.constant 0 : index
    %c0_132 = arith.constant 0 : index
    %354 = vector.load %arg13[%c0_131, %c0_132] : memref<1x128xf32, #tpu.memory_space<vmem>>, vector<1x128xf32>
    %355 = vector.broadcast %354 : vector<1x128xf32> to vector<8x128xf32>
    %356 = arith.addf %353, %355 : vector<8x128xf32>
    %c0_133 = arith.constant 0 : index
    %c0_134 = arith.constant 0 : index
    %357 = vector.load %arg14[%c0_133, %c0_134] : memref<8x128xf32, #tpu.memory_space<vmem>>, vector<8x128xf32>
    tpu.vector_store %arg14[%c0_133, %c0_134], %356 {strides = array<i32>} : memref<8x128xf32, #tpu.memory_space<vmem>>, vector<8x128xf32>,
    return
  }
  func.func @transform_0(%arg0: i32) -> (i32, i32) {
    %c0_i32 = arith.constant 0 : i32
    %c0_i32_0 = arith.constant 0 : i32
    return %arg0, %c0_i32 : i32, i32
  }
  func.func @transform_1(%arg0: i32) -> (i32, i32) {
    %c0_i32 = arith.constant 0 : i32
    %c0_i32_0 = arith.constant 0 : i32
    %c0_i32_1 = arith.constant 0 : i32
    return %c0_i32, %c0_i32_0 : i32, i32
  }
  func.func @transform_2(%arg0: i32) -> (i32, i32) {
    %c0_i32 = arith.constant 0 : i32
    %c0_i32_0 = arith.constant 0 : i32
    %c0_i32_1 = arith.constant 0 : i32
    return %c0_i32, %c0_i32_0 : i32, i32
  }
  func.func @transform_3(%arg0: i32) -> (i32, i32) {
    %c0_i32 = arith.constant 0 : i32
    %c0_i32_0 = arith.constant 0 : i32
    %c0_i32_1 = arith.constant 0 : i32
    return %c0_i32, %c0_i32_0 : i32, i32
  }
  func.func @transform_4(%arg0: i32) -> (i32, i32) {
    %c0_i32 = arith.constant 0 : i32
    %c0_i32_0 = arith.constant 0 : i32
    %c0_i32_1 = arith.constant 0 : i32
    return %c0_i32, %c0_i32_0 : i32, i32
  }
  func.func @transform_5(%arg0: i32) -> (i32, i32, i32) {
    %c0_i32 = arith.constant 0 : i32
    %c0_i32_0 = arith.constant 0 : i32
    %c0_i32_1 = arith.constant 0 : i32
    %c0_i32_2 = arith.constant 0 : i32
    return %c0_i32, %c0_i32_0, %c0_i32_1 : i32, i32, i32
  }
  func.func @transform_6(%arg0: i32) -> (i32, i32, i32) {
    %c0_i32 = arith.constant 0 : i32
    %c0_i32_0 = arith.constant 0 : i32
    %c0_i32_1 = arith.constant 0 : i32
    %c0_i32_2 = arith.constant 0 : i32
    return %c0_i32, %c0_i32_0, %c0_i32_1 : i32, i32, i32
  }
  func.func @transform_7(%arg0: i32) -> (i32, i32, i32) {
    %c0_i32 = arith.constant 0 : i32
    %c0_i32_0 = arith.constant 0 : i32
    %c0_i32_1 = arith.constant 0 : i32
    %c0_i32_2 = arith.constant 0 : i32
    return %c0_i32, %c0_i32_0, %c0_i32_1 : i32, i32, i32
  }
  func.func @transform_8(%arg0: i32) -> (i32, i32, i32) {
    %c0_i32 = arith.constant 0 : i32
    %c0_i32_0 = arith.constant 0 : i32
    %c0_i32_1 = arith.constant 0 : i32
    %c0_i32_2 = arith.constant 0 : i32
    return %c0_i32, %c0_i32_0, %c0_i32_1 : i32, i32, i32
  }
  func.func @transform_9(%arg0: i32) -> (i32, i32, i32) {
    %c0_i32 = arith.constant 0 : i32
    %c0_i32_0 = arith.constant 0 : i32
    %c0_i32_1 = arith.constant 0 : i32
    %c0_i32_2 = arith.constant 0 : i32
    return %c0_i32, %c0_i32_0, %c0_i32_1 : i32, i32, i32
  }
  func.func @transform_10(%arg0: i32) -> (i32, i32) {
    %c0_i32 = arith.constant 0 : i32
    %c0_i32_0 = arith.constant 0 : i32
    %c0_i32_1 = arith.constant 0 : i32
    return %c0_i32, %c0_i32_0 : i32, i32
  }
  func.func @transform_11(%arg0: i32) -> (i32, i32) {
    %c0_i32 = arith.constant 0 : i32
    %c0_i32_0 = arith.constant 0 : i32
    %c0_i32_1 = arith.constant 0 : i32
    return %c0_i32, %c0_i32_0 : i32, i32
  }
  func.func @transform_12(%arg0: i32) -> (i32, i32) {
    %c0_i32 = arith.constant 0 : i32
    %c0_i32_0 = arith.constant 0 : i32
    %c0_i32_1 = arith.constant 0 : i32
    return %c0_i32, %c0_i32_0 : i32, i32
  }
  func.func @transform_13(%arg0: i32) -> (i32, i32) {
    %c0_i32 = arith.constant 0 : i32
    %c0_i32_0 = arith.constant 0 : i32
    return %arg0, %c0_i32 : i32, i32
  }
}

</mosaic_0001>

<bundles_post_ra>
// kernel: _lambda_.1
= control target key start
LH: loop header
LB: loop body
LE: loop exit
PB: predicated region body
PF: predicated region fallthrough
CT: control target
= control target key end

     0   :  { %18 = vsyncpa [#allocation4], 0  ;;  %s8633_s0 = inlined_call_operand.vmem [shape: f32[64,192], index: 0, kind: input, shape index: {}]   ;;  %s8634_s1 = inlined_call_operand.vmem [shape: f32[192,32], index: 1, kind: input, shape index: {}]   ;;  %s8635_s2 = inlined_call_operand.vmem [shape: f32[1,32], index: 2, kind: input, shape index: {}]   ;;  %s8636_s3 = inlined_call_operand.vmem [shape: f32[40,32], index: 3, kind: input, shape index: {}]   ;;  %s8637_s4 = inlined_call_operand.vmem [shape: f32[40,40], index: 4, kind: input, shape index: {}]   ;;  %s8638_s5 = inlined_call_operand.vmem [shape: f32[2,32,96], index: 5, kind: input, shape index: {}]   ;;  %s8639_s6 = inlined_call_operand.vmem [shape: f32[2,32,32], index: 6, kind: input, shape index: {}]   ;;  %s8640_s7 = inlined_call_operand.vmem [shape: f32[2,32,128], index: 7, kind: input, shape index: {}]   ;;  %s8641_s8 = inlined_call_operand.vmem [shape: f32[2,128,32], index: 8, kind: input, shape index: {}]   ;;  %s8642_s9 = inlined_call_operand.vmem [shape: f32[2,8,128], index: 9, kind: input, shape index: {}]   ;;  %s8643_s10 = inlined_call_operand.vmem [shape: f32[2,32], index: 10, kind: input, shape index: {}]   ;;  %s8644_s11 = inlined_call_operand.vmem [shape: f32[32,128], index: 11, kind: input, shape index: {}]   ;;  %s8645_s12 = inlined_call_operand.vmem [shape: f32[1,128], index: 12, kind: input, shape index: {}]   ;;  %s8646_s13 = inlined_call_operand.hbm [shape: f32[16,128], index: 13, kind: output, shape index: {}]  }
   0x1   :  { %20 = vsyncpa [#allocation4 + $0x1], 0  ;;  %s6704_s25 = smov 0   ;;  %s6706_s26 = smov 0  }
   0x2   :  { %s6708_s27 = smov 0   ;;  %s6710_s28 = smov 0  }
   0x3 LB: > { %8674 = sst [smem:[#allocation6_spill]] %s6610_s27  ;;  %s6725_s29 = sadd.s32 4294967295, %s6614_s28   ;;  %s6614_s28 = sphi %s6710_s28, %s8693_s28   ;;  %s6610_s27 = sphi %s6708_s27, %s8695_s27   ;;  %s6606_s26 = sphi %s6706_s26, %s8697_s26   ;;  %s6602_s25 = sphi %s6704_s25, %s8696_s25  }
   0x4   : > { %s4753_s30 = sadd.s32 4294967294, %s6614_s28   ;;  %s6729_s14 = sadd.s32 1, %s6614_s28  }
   0x5   : > { %8675 = sst [smem:[#allocation7_spill]] %s6729_s14  ;;  %s311_s15 = sadd.s32 1, %s6610_s27 }
   0x6   : > { %s308_s16 = ssub.s32 %s6614_s28, %s6729_s14  ;;  %p321_p0 = scmp.ne.s32.totalorder %s6610_s27, %s6606_s26 }
   0x7   : > { %p309_p1 = scmp.eq.s32.totalorder %s308_s16, 0  ;;  %p322_p2 = scmp.eq.s32.totalorder %s6725_s29, 1 }
   0x8   : > { %p327_p3 = scmp.ne.s32.totalorder %s6606_s26, %s6602_s25  ;;  %p328_p4 = scmp.eq.s32.totalorder %s4753_s30, 1 }
   0x9   : > { %s6740_s17 = scalar_select %p309_p1, %s6610_s27, %s311_s15  }
   0xa   : > { %p6742_p5 = por %p322_p2, %p321_p0  ;;  %p6746_p6 = por %p328_p4, %p327_p3 }
   0xb   : > { %8676 = sst [smem:[#allocation8_spill]] %s6740_s17  ;;  %p4756_p7 = scmp.ge.s32.totalorder %s6614_s28, 1 }
   0xc   : > { %p392_p8 = scmp.lt.s32.totalorder %s6614_s28, 3 }
   0xe   : > { %p393_p9 = pnand %p4756_p7, %p392_p8 }
   0xf   : > { %v452_v0 = vld [vmem:[%s8634_s1] sm:$0xff] (!%p393_p9)  ;;  %v453_v1 = vld [vmem:[%s8634_s1 + $0x8] sm:$0xff] (!%p393_p9)  ;;  %v454_v2 = vld [vmem:[%s8634_s1 + $0x10] sm:$0xff] (!%p393_p9)  ;;  %s4758_s15 = sshll.u32 (!%p393_p9), %s6725_s29, 2  ;;  %v6616_v3 = vmov (!%p393_p9), 0.0|0.0   ;;  %vm483_vm0 = vcmask (!%p393_p9), 523264  }
  0x10   : > { %396 = sbr.rel (%p393_p9) target bundleno = 6156 (0x180c), region = 72  ;;  %5858 = vmatprep.subr.bf16.mxu0 (!%p393_p9), %v6616_v3  ;;  %v5859_v4 = vpack.c.bf16 (!%p393_p9), %v453_v1, %v452_v0  ;;  %v455_v5 = vld [vmem:[%s8634_s1 + $0x18] sm:$0xff] (!%p393_p9)  ;;  %p438_p10 = scmp.lt.s32.totalorder (!%p393_p9), %s4758_s15, 7  ;;  %5894 = vmatprep.subr.bf16.mxu1 (!%p393_p9), %v6616_v3  ;;  %v456_v7 = vld [vmem:[%s8634_s1 + $0x20] sm:$0xff] (!%p393_p9)  ;;  %v457_v8 = vld [vmem:[%s8634_s1 + $0x28] sm:$0xff] (!%p393_p9)  ;;  %vm582_vm1 = vcmask (!%p393_p9), 261120  }
  0x11   : > { %v5862_v6 = vpack.c.bf16 (!%p393_p9), %v455_v5, %v454_v2  ;;  %v5865_v9 = vpack.c.bf16 (!%p393_p9), %v457_v8, %v456_v7  ;;  %v458_v10 = vld [vmem:[%s8634_s1 + $0x30] sm:$0xff] (!%p393_p9)  ;;  %v459_v11 = vld [vmem:[%s8634_s1 + $0x38] sm:$0xff] (!%p393_p9)  ;;  %v581_v13 = vld [vmem:[%s8636_s3] sm:$0xff] (!%p393_p9)  ;;  %vm6617_vm2 = vmmov (!%p393_p9), 0   ;;  %s6619_s27 = smov (!%p393_p9), 96   ;;  %s6620_s14 = smov (!%p393_p9), 88  }
  0x12   : > { %5860 = vmatpush1.bf16.msra.mxu0 (!%p393_p9), %v5859_v4  ;;  %v5868_v14 = vpack.c.bf16 (!%p393_p9), %v459_v11, %v458_v10  ;;  %583 = vst.msk [vmem:[#allocation2] sm:$0xff] (!%p393_p9), %vm582_vm1, %v581_v13  ;;  %v460_v15 = vld [vmem:[%s8634_s1 + $0x40] sm:$0xff] (!%p393_p9)  ;;  %v461_v16 = vld [vmem:[%s8634_s1 + $0x48] sm:$0xff] (!%p393_p9)  ;;  %v462_v18 = vld [vmem:[%s8634_s1 + $0x50] sm:$0xff] (!%p393_p9)  ;;  %s8666_s23 = smov (!%p393_p9), 80   ;;  %s8662_s30 = smov (!%p393_p9), 72  }
  0x13   : > { %5861 = vmatprep.subr.bf16.mxu0 (!%p393_p9), %v6616_v3  ;;  %v5871_v17 = vpack.c.bf16 (!%p393_p9), %v461_v16, %v460_v15  ;;  %v463_v19 = vld [vmem:[%s8634_s1 + $0x58] sm:$0xff] (!%p393_p9)  ;;  %v464_v23 = vld [vmem:[%s8634_s1 + $0x60] sm:$0xff] (!%p393_p9)  ;;  %v465_v24 = vld [vmem:[%s8634_s1 + $0x68] sm:$0xff] (!%p393_p9)  ;;  %s8660_s17 = smov (!%p393_p9), 112   ;;  %s8658_s20 = smov (!%p393_p9), 104   ;;  %vm819_vm3 = vcmask (!%p393_p9), 64512  }
  0x14   : > { %v5874_v21 = vpack.c.bf16 (!%p393_p9), %v463_v19, %v462_v18  ;;  %v5877_v25 = vpack.c.bf16 (!%p393_p9), %v465_v24, %v464_v23  ;;  %v466_v26 = vld [vmem:[%s8634_s1 + $0x70] sm:$0xff] (!%p393_p9)  ;;  %v467_v27 = vld [vmem:[%s8634_s1 + $0x78] sm:$0xff] (!%p393_p9)  ;;  %v468_v29 = vld [vmem:[%s8634_s1 + $0x80] sm:$0xff] (!%p393_p9)  ;;  %v6618_v24 = vmov (!%p393_p9), 0.0   ;;  %s8652_s21 = smov (!%p393_p9), 64   ;;  %vm940_vm5 = vcmask (!%p393_p9), 326656  }
  0x15   : > { %v5880_v28 = vpack.c.bf16 (!%p393_p9), %v467_v27, %v466_v26  ;;  %v469_v30 = vld [vmem:[%s8634_s1 + $0x88] sm:$0xff] (!%p393_p9)  ;;  %v470_v32 = vld [vmem:[%s8634_s1 + $0x90] sm:$0xff] (!%p393_p9)  ;;  %v471_v33 = vld [vmem:[%s8634_s1 + $0x98] sm:$0xff] (!%p393_p9)  ;;  %5223 = vmatprep.mubr.msk.f32.mxu1 (!%p393_p9), %vm6617_vm2, %v6618_v24  ;;  %s8670_s22 = smov (!%p393_p9), 8   ;;  %vm2126_vm6 = vcmask (!%p393_p9), 130048   ;;  %vm2132_vm7 = vcmask (!%p393_p9), 195584  }
  0x16   : > { %5863 = vmatpush1.bf16.msra.mxu0 (!%p393_p9), %v5862_v6  ;;  %v5883_v31 = vpack.c.bf16 (!%p393_p9), %v469_v30, %v468_v29  ;;  %v5886_v34 = vpack.c.bf16 (!%p393_p9), %v471_v33, %v470_v32  ;;  %v472_v35 = vld [vmem:[%s8634_s1 + $0xa0] sm:$0xff] (!%p393_p9)  ;;  %v473_v36 = vld [vmem:[%s8634_s1 + $0xa8] sm:$0xff] (!%p393_p9)  ;;  %v474_v38 = vld [vmem:[%s8634_s1 + $0xb0] sm:$0xff] (!%p393_p9) }
  0x17   : > { %s8699_s15 = smov (!%p438_p10, %s4758_s15), 7  ;;  %5864 = vmatprep.subr.bf16.mxu0 %v6616_v3  ;;  %v5889_v37 = vpack.c.bf16 %v473_v36, %v472_v35  ;;  %v475_v39 = vld [vmem:[%s8634_s1 + $0xb8] sm:$0xff]  ;;  %v4761_v48 = vld [vmem:[%s8635_s2] ss:$0 sm:$0xff]  ;;  %v584_v50 = vld [vmem:[%s8636_s3 + $0x8] sm:$0xff] }
  0x18   : > { %s4953_s24 = sshll.u32 %s8699_s15, 4  ;;  %v5892_v40 = vpack.c.bf16 %v475_v39, %v474_v38  ;;  %v585_v55 = vld [vmem:[%s8636_s3 + $0x10] sm:$0xff]  ;;  %v586_v60 = vld [vmem:[%s8636_s3 + $0x18] sm:$0xff]  ;;  %v587_v4 = vld [vmem:[%s8636_s3 + $0x20] sm:$0xff]  ;;  %s8681_s15 = smov 80  }
  0x19   : > { %s6777_s16 = scalar_lea.vmem %s8633_s0, %s4953_s24  ;;  %v6806_v20 = vld [vmem:[#allocation2] sm:$0xff]  ;;  %v694_v23 = vld [vmem:[%s8638_s5 + $0x18] sm:$0xff]  ;;  %s8664_s24 = smov 120   ;;  %vm7031_vm4 = vmpackc.low %vm819_vm3, %vm819_vm3 }
  0x1a   : > { %v445_v12 = vld [vmem:[%s6777_s16 + $0x8] sm:$0xff]  ;;  %5866 = vmatpush1.bf16.msra.mxu0 %v5865_v9  ;;  %v607_v22 = vsel %vm582_vm1, %v6806_v20, 0.0  ;;  %v444_v41 = vld [vmem:[%s6777_s16] sm:$0xff]  ;;  %v447_v42 = vld [vmem:[%s6777_s16 + $0x18] sm:$0xff] }
  0x1b   : > { %4762 = vmatprep.mubr.msk.f32.mxu0 %vm483_vm0, %v445_v12  ;;  %5867 = vmatprep.subr.bf16.mxu0 %v6616_v3  ;;  %v446_v43 = vld [vmem:[%s6777_s16 + $0x10] sm:$0xff]  ;;  %v449_v44 = vld [vmem:[%s6777_s16 + $0x28] sm:$0xff]  ;;  %v448_v45 = vld [vmem:[%s6777_s16 + $0x20] sm:$0xff] }
  0x1c   : > { %608 = vadd.xlane.f32.xlu0 %v607_v22  ;;  %v451_v46 = vld [vmem:[%s6777_s16 + $0x38] sm:$0xff]  ;;  %v450_v47 = vld [vmem:[%s6777_s16 + $0x30] sm:$0xff]  ;;  %v691_v19 = vld [vmem:[%s8638_s5] sm:$0xff]  ;;  %s8650_s16 = smov 56  }
  0x1e   : > { %5869 = vmatpush1.bf16.msra.mxu0 %v5868_v14 }
  0x1f   : > { %5870 = vmatprep.subr.bf16.mxu0 %v6616_v3 }
  0x22   : > { %5872 = vmatpush1.bf16.msra.mxu0 %v5871_v17 }
  0x23   : > { %5873 = vmatprep.subr.bf16.mxu0 %v6616_v3 }
  0x26   : > { %5875 = vmatpush1.bf16.msra.mxu0 %v5874_v21  ;;  %v693_v21 = vld [vmem:[%s8638_s5 + $0x10] sm:$0xff] }
  0x27   : > { %5876 = vmatprep.subr.bf16.mxu0 %v6616_v3 }
  0x2a   : > { %5878 = vmatpush1.bf16.msra.mxu0 %v5877_v25  ;;  %v5898_v25 = vpack.c.bf16 %v694_v23, %v693_v21 }
  0x2b   : > { %5879 = vmatprep.subr.bf16.mxu0 %v6616_v3 }
  0x2e   : > { %5881 = vmatpush1.bf16.msra.mxu0 %v5880_v28 }
  0x2f   : > { %5882 = vmatprep.subr.bf16.mxu0 %v6616_v3 }
  0x32   : > { %5884 = vmatpush1.bf16.msra.mxu0 %v5883_v31 }
  0x33   : > { %5885 = vmatprep.subr.bf16.mxu0 %v6616_v3 }
  0x36   : > { %5887 = vmatpush1.bf16.msra.mxu0 %v5886_v34 }
  0x37   : > { %5888 = vmatprep.subr.bf16.mxu0 %v6616_v3 }
  0x3a   : > { %5890 = vmatpush1.bf16.msra.mxu0 %v5889_v37 }
  0x3b   : > { %5891 = vmatprep.subr.bf16.mxu0 %v6616_v3 }
  0x3e   : > { %5893 = vmatpush1.bf16.msra.mxu0 %v5892_v40 }
  0x3f   : > { %5914 = vmatprep.subr.bf16.mxu0 %v6616_v3 }
  0x41   : > { %561 = vmatmul.mubr.f32.vlgmr.msra.gmra.mrb[0].mxu0 %v444_v41 }
  0x42   : > { %4763 = vmatprep.mubr.msk.f32.mxu0 %vm483_vm0, %v447_v42 }
  0x45   : > { %566 = vmatmul.mubr.f32.gmra.mrb[2].mxu0 %v446_v43 }
  0x46   : > { %4764 = vmatprep.mubr.msk.f32.mxu0 %vm483_vm0, %v449_v44  ;;  %v673_v44 = vlaneseq }
  0x49   : > { %571 = vmatmul.mubr.f32.gmra.mrb[4].mxu0 %v448_v45 }
  0x4a   : > { %4765 = vmatprep.mubr.msk.f32.mxu0 %vm483_vm0, %v451_v46 }
  0x4d   : > { %576 = vmatmul.mubr.f32.gmra.mrb[6].mxu0 %v450_v47 }
  0x4e   : > { %5298 = vmatprep.mubr.msk.f32.mxu0 %vm6617_vm2, %v6618_v24 }
  0xa9   : > { %v609_v61 = vpop.xlane.xlu0 %608 }
  0xaa   : > { %v623_v1 = vmul.f32 0.03125, %v609_v61 }
  0xac   : > { %v6884_v10 = vsub.f32 %v6806_v20, %v623_v1  ;;  %v692_v20 = vld [vmem:[%s8638_s5 + $0x8] sm:$0xff] }
  0xad   : > { %v5895_v22 = vpack.c.bf16 %v692_v20, %v691_v19 }
  0xae   : > { %v633_v13 = vmul.f32 %v6884_v10, %v6884_v10 }
  0xaf   : > { %5896 = vmatpush3.bf16.msra.mxu1 %v5895_v22 }
  0xb0   : > { %v638_v16 = vsel %vm582_vm1, %v633_v13, 0.0  ;;  %5897 = vmatprep.subr.bf16.mxu1 %v6616_v3 }
  0xb3   : > { %5899 = vmatpush3.bf16.msra.mxu1 %v5898_v25 }
  0xb4   : > { %5900 = vmatprep.subr.bf16.mxu1 %v6616_v3 }
 0x114   : > { %v562_v49 = vpop.f32.mrb[0].mxu0 }
 0x115   : > { %v563_v51 = vadd.f32 %v4761_v48, %v562_v49  ;;  %v564_v52 = vpop.f32.mrb[1].mxu0  ;;  %v6914_v49 = vshrl.u32 %v673_v44, 7 }
 0x116   : > { %v606_v52 = vld [vmem:[%s8642_s9] sm:$0xff] }
 0x117   : > { %v588_v53 = vadd.f32 %v584_v50, %v563_v51  ;;  %v675_v51 = vsub.s32 0, %v6914_v49 }
 0x118   : > { %v567_v54 = vpop.f32.mrb[2].mxu0 }
 0x119   : > { %592 = vst.msk [vmem:[#allocation2 + $0x8] sm:$0xff] %vm582_vm1, %v588_v53  ;;  %v568_v56 = vadd.f32 %v4761_v48, %v567_v54  ;;  %v569_v57 = vpop.f32.mrb[3].mxu0  ;;  %v684_v53 = vsub.s32 1, %v6914_v49  ;;  %v676_v54 = vrot.slane %v606_v52, %v675_v51 }
 0x11b   : > { %v589_v58 = vadd.f32 %v585_v55, %v568_v56  ;;  %v685_v57 = vrot.slane %v606_v52, %v684_v53 }
 0x11c   : > { %v572_v59 = vpop.f32.mrb[4].mxu0 }
 0x11d   : > { %593 = vst.msk [vmem:[#allocation2 + $0x10] sm:$0xff] %vm582_vm1, %v589_v58  ;;  %v573_v62 = vadd.f32 %v4761_v48, %v572_v59  ;;  %v574_v63 = vpop.f32.mrb[5].mxu0 }
 0x11f   : > { %v590_v0 = vadd.f32 %v586_v60, %v573_v62 }
 0x120   : > { %v577_v2 = vpop.f32.mrb[6].mxu0  ;;  %v597_v5 = vld [vmem:[#allocation2 + $0x8] sm:$0xff] }
 0x121   : > { %594 = vst.msk [vmem:[#allocation2 + $0x18] sm:$0xff] %vm582_vm1, %v590_v0  ;;  %v578_v6 = vadd.f32 %v4761_v48, %v577_v2  ;;  %v610_v7 = vsel %vm582_vm1, %v597_v5, 0.0  ;;  %v579_v8 = vpop.f32.mrb[7].mxu0 }
 0x122   : > { %611 = vadd.xlane.f32.xlu0 %v610_v7 }
 0x123   : > { %v591_v9 = vadd.f32 %v587_v4, %v578_v6 }
 0x124   : > { %v598_v11 = vld [vmem:[#allocation2 + $0x10] sm:$0xff] }
 0x125   : > { %595 = vst.msk [vmem:[#allocation2 + $0x20] sm:$0xff] %vm582_vm1, %v591_v9  ;;  %v613_v12 = vsel %vm582_vm1, %v598_v11, 0.0 }
 0x126   : > { %614 = vadd.xlane.f32.xlu1 %v613_v12 }
 0x128   : > { %v599_v14 = vld [vmem:[#allocation2 + $0x18] sm:$0xff] }
 0x129   : > { %v616_v15 = vsel %vm582_vm1, %v599_v14, 0.0 }
 0x12a   : > { %617 = vadd.xlane.f32.xlu1 %v616_v15 }
 0x12c   : > { %v600_v17 = vld [vmem:[#allocation2 + $0x20] sm:$0xff] }
 0x12d   : > { %v619_v18 = vsel %vm582_vm1, %v600_v17, 0.0 }
 0x12e   : > { %639 = vadd.xlane.f32.xlu1 %v638_v16  ;;  %620 = vadd.xlane.f32.xlu0 %v619_v18 }
 0x1af   : > { %v612_v26 = vpop.xlane.xlu0 %611 }
 0x1b0   : > { %v624_v27 = vmul.f32 0.03125, %v612_v26 }
 0x1b2   : > { %v629_v28 = vsub.f32 %v597_v5, %v624_v27 }
 0x1b3   : > { %v615_v29 = vpop.xlane.xlu1 %614 }
 0x1b4   : > { %v625_v30 = vmul.f32 0.03125, %v615_v29  ;;  %v634_v31 = vmul.f32 %v629_v28, %v629_v28 }
 0x1b6   : > { %v630_v32 = vsub.f32 %v598_v11, %v625_v30  ;;  %v641_v33 = vsel %vm582_vm1, %v634_v31, 0.0 }
 0x1b7   : > { %v618_v34 = vpop.xlane.xlu1 %617  ;;  %642 = vadd.xlane.f32.xlu0 %v641_v33 }
 0x1b8   : > { %v626_v35 = vmul.f32 0.03125, %v618_v34  ;;  %v635_v36 = vmul.f32 %v630_v32, %v630_v32 }
 0x1ba   : > { %v631_v37 = vsub.f32 %v599_v14, %v626_v35  ;;  %v644_v38 = vsel %vm582_vm1, %v635_v36, 0.0 }
 0x1bb   : > { %645 = vadd.xlane.f32.xlu1 %v644_v38  ;;  %v640_v39 = vpop.xlane.xlu1 %639  ;;  %v621_v40 = vpop.xlane.xlu0 %620 }
 0x1bc   : > { %v653_v41 = vmul.f32 0.03125, %v640_v39  ;;  %v627_v42 = vmul.f32 0.03125, %v621_v40  ;;  %v636_v43 = vmul.f32 %v631_v37, %v631_v37 }
 0x1be   : > { %v658_v45 = vadd.f32 1e-05, %v653_v41  ;;  %v632_v46 = vsub.f32 %v600_v17, %v627_v42  ;;  %v647_v47 = vsel %vm582_vm1, %v636_v43, 0.0 }
 0x1bf   : > { %648 = vadd.xlane.f32.xlu0 %v647_v47 }
 0x1c0   : > { %6318 = vrsqrt.f32 %v658_v45  ;;  %v637_v48 = vmul.f32 %v632_v46, %v632_v46 }
 0x1c2   : > { %v650_v50 = vsel %vm582_vm1, %v637_v48, 0.0 }
 0x1c3   : > { %651 = vadd.xlane.f32.xlu1 %v650_v50 }
 0x1ca   : > { %v6319_v55 = vpop.eup %6318 }
 0x1cb   : > { %v668_v56 = vmul.f32 %v6319_v55, %v6884_v10 }
 0x1cd   : > { %v677_v58 = vmul.f32 %v676_v54, %v668_v56 }
 0x1cf   : > { %v686_v59 = vadd.f32 %v685_v57, %v677_v58 }
 0x1d1   : > { %5224 = vmatmul.mubr.msk.f32.vlgmr.msra.gmra.mrb[0].mxu1 %vm582_vm1, %v686_v59 }
 0x1d2   : > { %5226 = vmatprep.mubr.msk.f32.mxu1 %vm6617_vm2, %v6618_v24 }
 0x244   : > { %v643_v60 = vpop.xlane.xlu0 %642 }
 0x245   : > { %v654_v61 = vmul.f32 0.03125, %v643_v60 }
 0x247   : > { %v659_v62 = vadd.f32 1e-05, %v654_v61 }
 0x248   : > { %v646_v63 = vpop.xlane.xlu1 %645 }
 0x249   : > { %6320 = vrsqrt.f32 %v659_v62  ;;  %v655_v0 = vmul.f32 0.03125, %v646_v63 }
 0x24b   : > { %v660_v1 = vadd.f32 1e-05, %v655_v0 }
 0x24c   : > { %v649_v2 = vpop.xlane.xlu0 %648 }
 0x24d   : > { %6322 = vrsqrt.f32 %v660_v1  ;;  %v656_v4 = vmul.f32 0.03125, %v649_v2 }
 0x24f   : > { %v661_v5 = vadd.f32 1e-05, %v656_v4 }
 0x250   : > { %v652_v6 = vpop.xlane.xlu1 %651 }
 0x251   : > { %6324 = vrsqrt.f32 %v661_v5  ;;  %v657_v7 = vmul.f32 0.03125, %v652_v6 }
 0x253   : > { %v6321_v8 = vpop.eup %6320  ;;  %v662_v9 = vadd.f32 1e-05, %v657_v7 }
 0x254   : > { %v669_v10 = vmul.f32 %v6321_v8, %v629_v28  ;;  %v697_v28 = vsub.s32 2, %v6914_v49 }
 0x255   : > { %6326 = vrsqrt.f32 %v662_v9 }
 0x256   : > { %v678_v11 = vmul.f32 %v676_v54, %v669_v10  ;;  %v698_v29 = vrot.slane %v606_v52, %v697_v28 }
 0x257   : > { %v6323_v12 = vpop.eup %6322 }
 0x258   : > { %v687_v13 = vadd.f32 %v685_v57, %v678_v11  ;;  %v670_v14 = vmul.f32 %v6323_v12, %v630_v32 }
 0x25a   : > { %5227 = vmatmul.mubr.msk.f32.gmra.mrb[2].mxu1 %vm582_vm1, %v687_v13  ;;  %v679_v15 = vmul.f32 %v676_v54, %v670_v14 }
 0x25b   : > { %v6325_v16 = vpop.eup %6324  ;;  %5229 = vmatprep.mubr.msk.f32.mxu1 %vm6617_vm2, %v6618_v24 }
 0x25c   : > { %v688_v17 = vadd.f32 %v685_v57, %v679_v15  ;;  %v671_v18 = vmul.f32 %v6325_v16, %v631_v37 }
 0x25e   : > { %5230 = vmatmul.mubr.msk.f32.gmra.mrb[4].mxu1 %vm582_vm1, %v688_v17  ;;  %v680_v19 = vmul.f32 %v676_v54, %v671_v18 }
 0x25f   : > { %v6327_v20 = vpop.eup %6326  ;;  %5232 = vmatprep.mubr.msk.f32.mxu1 %vm6617_vm2, %v6618_v24 }
 0x260   : > { %v689_v21 = vadd.f32 %v685_v57, %v680_v19  ;;  %v672_v22 = vmul.f32 %v6327_v20, %v632_v46 }
 0x262   : > { %5233 = vmatmul.mubr.msk.f32.gmra.mrb[6].mxu1 %vm582_vm1, %v689_v21  ;;  %v681_v23 = vmul.f32 %v676_v54, %v672_v22 }
 0x263   : > { %5235 = vmatprep.mubr.msk.f32.mxu1 %vm6617_vm2, %v6618_v24 }
 0x264   : > { %v690_v25 = vadd.f32 %v685_v57, %v681_v23 }
 0x266   : > { %5236 = vmatmul.mubr.msk.f32.gmra.mrb[8].mxu1 %vm582_vm1, %v690_v25 }
 0x267   : > { %5248 = vmatprep.mubr.msk.f32.mxu1 %vm6617_vm2, %v6618_v24 }
 0x2a4   : > { %v780_v26 = vpop.f32.mrb[0].mxu1 }
 0x2a5   : > { %v5225_v27 = vpop.f32.mrb[1].mxu1  ;;  %v6945_v31 = vadd.f32 %v780_v26, %v698_v29 }
 0x32d   : > { %v785_v30 = vpop.f32.mrb[2].mxu1 }
 0x32e   : > { %v6947_v32 = vadd.f32 %v785_v30, %v698_v29  ;;  %v5228_v33 = vpop.f32.mrb[3].mxu1 }
 0x330   : > { %v6951_v34 = vpack.i.bf16 %v6947_v32, %v6945_v31 }
 0x331   : > { %v790_v35 = vpop.f32.mrb[4].mxu1 }
 0x332   : > { %6159 = vrot.lane.b32.xlu0 %v6951_v34, %s6619_s27  ;;  %v5231_v36 = vpop.f32.mrb[5].mxu1  ;;  %v6955_v38 = vadd.f32 %v790_v35, %v698_v29 }
 0x335   : > { %v795_v37 = vpop.f32.mrb[6].mxu1 }
 0x336   : > { %v6957_v39 = vadd.f32 %v795_v37, %v698_v29  ;;  %v5234_v40 = vpop.f32.mrb[7].mxu1 }
 0x338   : > { %v6961_v41 = vpack.i.bf16 %v6957_v39, %v6955_v38 }
 0x339   : > { %v800_v42 = vpop.f32.mrb[8].mxu1 }
 0x33a   : > { %6174 = vrot.lane.b32.xlu0 %v6961_v41, %s6620_s14  ;;  %6164 = vrot.lane.b32.xlu1 %v6961_v41, %s6619_s27  ;;  %v5237_v43 = vpop.f32.mrb[9].mxu1  ;;  %v6971_v44 = vadd.f32 %v800_v42, %v698_v29 }
 0x33e   : > { %6179 = vrot.lane.b32.xlu0 %v6951_v34, %s8666_s23  ;;  %6169 = vrot.lane.b32.xlu1 %v6951_v34, %s6620_s14 }
 0x342   : > { %1118 = vrot.lane.b32.xlu0 %v6947_v32, %s8664_s24  ;;  %817 = vrot.lane.b32.xlu1 %v6971_v44, %s6619_s27 }
 0x346   : > { %1120 = vrot.lane.b32.xlu0 %v6955_v38, %s8664_s24  ;;  %1134 = vrot.lane.b32.xlu1 %v6971_v44, %s6620_s14 }
 0x34a   : > { %1124 = vrot.lane.b32.xlu0 %v6971_v44, %s8664_s24  ;;  %1116 = vrot.lane.b32.xlu1 %v6945_v31, %s8664_s24 }
 0x34e   : > { %6189 = vrot.lane.b32.xlu0 %v6951_v34, %s8662_s30  ;;  %6184 = vrot.lane.b32.xlu1 %v6961_v41, %s8666_s23 }
 0x352   : > { %1433 = vrot.lane.b32.xlu0 %v6947_v32, %s8660_s17  ;;  %1122 = vrot.lane.b32.xlu1 %v6957_v39, %s8664_s24  ;;  %s8682_s24 = smov 120  }
 0x356   : > { %1435 = vrot.lane.b32.xlu0 %v6955_v38, %s8660_s17  ;;  %1449 = vrot.lane.b32.xlu1 %v6971_v44, %s8666_s23  ;;  %s8668_s23 = smov 24  }
 0x35a   : > { %1439 = vrot.lane.b32.xlu0 %v6971_v44, %s8660_s17  ;;  %1431 = vrot.lane.b32.xlu1 %v6945_v31, %s8660_s17 }
 0x35e   : > { %1746 = vrot.lane.b32.xlu0 %v6945_v31, %s8658_s20  ;;  %6194 = vrot.lane.b32.xlu1 %v6961_v41, %s8662_s30 }
 0x362   : > { %1750 = vrot.lane.b32.xlu0 %v6955_v38, %s8658_s20  ;;  %1437 = vrot.lane.b32.xlu1 %v6957_v39, %s8660_s17  ;;  %s8683_s17 = smov 72  }
 0x366   : > { %1754 = vrot.lane.b32.xlu0 %v6971_v44, %s8658_s20  ;;  %1764 = vrot.lane.b32.xlu1 %v6971_v44, %s8662_s30  ;;  %s8672_s30 = smov 16  }
 0x36a   : > { %6199 = vrot.lane.b32.xlu0 %v6951_v34, %s8652_s21  ;;  %1748 = vrot.lane.b32.xlu1 %v6947_v32, %s8658_s20 }
 0x36e   : > { %6214 = vrot.lane.b32.xlu0 %v6961_v41, %s8650_s16  ;;  %1752 = vrot.lane.b32.xlu1 %v6957_v39, %s8658_s20  ;;  %s8684_s20 = smov 112  }
 0x372   : > { %1004 = vrot.lane.b32.xlu0 %v6971_v44, %s8652_s21  ;;  %6204 = vrot.lane.b32.xlu1 %v6961_v41, %s8652_s21  ;;  %s8656_s21 = smov 48  }
 0x376   : > { %1319 = vrot.lane.b32.xlu0 %v6971_v44, %s8650_s16  ;;  %6209 = vrot.lane.b32.xlu1 %v6951_v34, %s8650_s16  ;;  %s8654_s16 = smov 40  }
 0x3a4   : > { %v6160_v45 = vpop.permute.xlu0 %6159 }
 0x3a5   : > { %v6162_v46 = vunpack.i.h.bf16 %v6160_v45  ;;  %v6161_v47 = vunpack.i.l.bf16 %v6160_v45 }
 0x3a7   : > { %v5901_v50 = vpack.c.bf16 %v6162_v46, %v6161_v47 }
 0x3a9   : > { %5903 = vmatpush3.bf16.xpose.msk.msra.mxu1 %vm7031_vm4, %v5901_v50 }
 0x3aa   : > { %5904 = vmatprep.subr.bf16.mxu1 %v6616_v3 }
 0x3ac   : > { %v6165_v52 = vpop.permute.xlu1 %6164  ;;  %v6175_v54 = vpop.permute.xlu0 %6174 }
 0x3ad   : > { %v6167_v55 = vunpack.i.h.bf16 %v6165_v52  ;;  %v6166_v56 = vunpack.i.l.bf16 %v6165_v52  ;;  %v6177_v1 = vunpack.i.h.bf16 %v6175_v54  ;;  %v6176_v2 = vunpack.i.l.bf16 %v6175_v54 }
 0x3af   : > { %v5905_v57 = vpack.c.bf16 %v6167_v55, %v6166_v56  ;;  %v5919_v6 = vpack.c.bf16 %v6177_v1, %v6176_v2 }
 0x3b0   : > { %v6170_v58 = vpop.permute.xlu1 %6169  ;;  %v6180_v59 = vpop.permute.xlu0 %6179 }
 0x3b1   : > { %v6172_v60 = vunpack.i.h.bf16 %v6170_v58  ;;  %v6171_v61 = vunpack.i.l.bf16 %v6170_v58  ;;  %5907 = vmatpush3.bf16.xpose.msk.msra.mxu1 %vm7031_vm4, %v5905_v57  ;;  %v6182_v11 = vunpack.i.h.bf16 %v6180_v59  ;;  %v6181_v12 = vunpack.i.l.bf16 %v6180_v59  ;;  %v7140_v57 = vld [vmem:[%s8637_s4] sm:$0xff] }
 0x3b2   : > { %5246 = vmatprep.subr.mxu1 %v6618_v24 }
 0x3b3   : > { %v5915_v62 = vpack.c.bf16 %v6172_v60, %v6171_v61  ;;  %v5929_v15 = vpack.c.bf16 %v6182_v11, %v6181_v12 }
 0x3b4   : > { %v818_v63 = vpop.permute.xlu1 %817  ;;  %v1119_v0 = vpop.permute.xlu0 %1118 }
 0x3b5   : > { %5917 = vmatpush3.bf16.xpose.msk.msra.mxu0 %vm7031_vm4, %v5915_v62 }
 0x3b6   : > { %5918 = vmatprep.subr.bf16.mxu0 %v6616_v3 }
 0x3b8   : > { %v1135_v4 = vpop.permute.xlu1 %1134  ;;  %v1121_v5 = vpop.permute.xlu0 %1120 }
 0x3b9   : > { %5247 = vmatpush3.xpose.msk.msra.mxu1 %vm819_vm3, %v818_v63 }
 0x3ba   : > { %5908 = vmatprep.subr.bf16.mxu1 %v6616_v3 }
 0x3bc   : > { %v1117_v7 = vpop.permute.xlu1 %1116  ;;  %v1125_v8 = vpop.permute.xlu0 %1124  ;;  %5249 = vmatmul.mubr.msk.f32.vlgmr.msra.gmra.mrb[10].mxu1 %vm819_vm3, %v6945_v31 }
 0x3bd   : > { %5921 = vmatpush3.bf16.xpose.msk.msra.mxu0 %vm7031_vm4, %v5919_v6  ;;  %5251 = vmatprep.mubr.msk.f32.mxu1 %vm6617_vm2, %v6618_v24 }
 0x3be   : > { %5296 = vmatprep.subr.mxu0 %v6618_v24 }
 0x3c0   : > { %v6185_v9 = vpop.permute.xlu1 %6184  ;;  %v6190_v10 = vpop.permute.xlu0 %6189  ;;  %5252 = vmatmul.mubr.msk.f32.gmra.mrb[12].mxu1 %vm819_vm3, %v6947_v32 }
 0x3c1   : > { %5254 = vmatprep.mubr.msk.f32.mxu1 %vm6617_vm2, %v6618_v24  ;;  %v6187_v18 = vunpack.i.h.bf16 %v6185_v9  ;;  %v6186_v19 = vunpack.i.l.bf16 %v6185_v9  ;;  %v6192_v29 = vunpack.i.h.bf16 %v6190_v10  ;;  %v6191_v30 = vunpack.i.l.bf16 %v6190_v10  ;;  %v7153_v10 = vld [vmem:[%s8637_s4 + $0x8] sm:$0xff] }
 0x3c3   : > { %v5933_v22 = vpack.c.bf16 %v6187_v18, %v6186_v19  ;;  %v5943_v33 = vpack.c.bf16 %v6192_v29, %v6191_v30 }
 0x3c4   : > { %v1123_v13 = vpop.permute.xlu1 %1122  ;;  %v1434_v14 = vpop.permute.xlu0 %1433  ;;  %5255 = vmatmul.mubr.msk.f32.gmra.mrb[14].mxu1 %vm819_vm3, %v6955_v38 }
 0x3c5   : > { %5297 = vmatpush3.xpose.msk.msra.mxu0 %vm819_vm3, %v1135_v4  ;;  %5257 = vmatprep.mubr.msk.f32.mxu1 %vm6617_vm2, %v6618_v24 }
 0x3c6   : > { %5928 = vmatprep.subr.bf16.mxu0 %v6616_v3 }
 0x3c8   : > { %v1450_v16 = vpop.permute.xlu1 %1449  ;;  %v1436_v17 = vpop.permute.xlu0 %1435  ;;  %5258 = vmatmul.mubr.msk.f32.gmra.mrb[16].mxu1 %vm819_vm3, %v6957_v39  ;;  %5299 = vmatmul.mubr.msk.f32.vlgmr.msra.gmra.mrb[8].mxu0 %vm819_vm3, %v1117_v7 }
 0x3c9   : > { %5931 = vmatpush3.bf16.xpose.msk.msra.mxu0 %vm7031_vm4, %v5929_v15  ;;  %5260 = vmatprep.mubr.msk.f32.mxu1 %vm6617_vm2, %v6618_v24 }
 0x3ca   : > { %5301 = vmatprep.mubr.msk.f32.mxu0 %vm6617_vm2, %v6618_v24  ;;  %5932 = vmatprep.subr.bf16.mxu0 %v6616_v3 }
 0x3cc   : > { %v1432_v20 = vpop.permute.xlu1 %1431  ;;  %v1440_v21 = vpop.permute.xlu0 %1439  ;;  %5261 = vmatmul.mubr.msk.f32.gmra.mrb[18].mxu1 %vm819_vm3, %v6971_v44  ;;  %5302 = vmatmul.mubr.msk.f32.gmra.mrb[10].mxu0 %vm819_vm3, %v1119_v0 }
 0x3cd   : > { %5304 = vmatprep.mubr.msk.f32.mxu0 %vm6617_vm2, %v6618_v24  ;;  %5273 = vmatprep.mubr.msk.f32.mxu1 %vm6617_vm2, %v6618_v24 }
 0x3d0   : > { %v6195_v23 = vpop.permute.xlu1 %6194  ;;  %v1747_v25 = vpop.permute.xlu0 %1746  ;;  %5305 = vmatmul.mubr.msk.f32.gmra.mrb[12].mxu0 %vm819_vm3, %v1121_v5 }
 0x3d1   : > { %5935 = vmatpush3.bf16.xpose.msk.msra.mxu0 %vm7031_vm4, %v5933_v22  ;;  %5307 = vmatprep.mubr.msk.f32.mxu0 %vm6617_vm2, %v6618_v24  ;;  %v6197_v39 = vunpack.i.h.bf16 %v6195_v23  ;;  %v6196_v40 = vunpack.i.l.bf16 %v6195_v23 }
 0x3d2   : > { %5346 = vmatprep.subr.mxu0 %v6618_v24 }
 0x3d3   : > { %v5947_v45 = vpack.c.bf16 %v6197_v39, %v6196_v40 }
 0x3d4   : > { %v1438_v26 = vpop.permute.xlu1 %1437  ;;  %v1751_v27 = vpop.permute.xlu0 %1750  ;;  %5308 = vmatmul.mubr.msk.f32.gmra.mrb[14].mxu0 %vm819_vm3, %v1123_v13 }
 0x3d5   : > { %5310 = vmatprep.mubr.msk.f32.mxu0 %vm6617_vm2, %v6618_v24 }
 0x3d8   : > { %v1765_v31 = vpop.permute.xlu1 %1764  ;;  %v1755_v32 = vpop.permute.xlu0 %1754  ;;  %5311 = vmatmul.mubr.msk.f32.gmra.mrb[16].mxu0 %vm819_vm3, %v1125_v8 }
 0x3d9   : > { %5347 = vmatpush3.xpose.msk.msra.mxu0 %vm819_vm3, %v1450_v16  ;;  %5348 = vmatprep.mubr.msk.f32.mxu0 %vm6617_vm2, %v6618_v24 }
 0x3da   : > { %5942 = vmatprep.subr.bf16.mxu0 %v6616_v3 }
 0x3dc   : > { %v1749_v35 = vpop.permute.xlu1 %1748  ;;  %v6200_v36 = vpop.permute.xlu0 %6199  ;;  %5349 = vmatmul.mubr.msk.f32.vlgmr.msra.gmra.mrb[18].mxu0 %vm819_vm3, %v1432_v20  ;;  %v7166_v20 = vld [vmem:[%s8637_s4 + $0x10] sm:$0xff] }
 0x3dd   : > { %v6202_v37 = vunpack.i.h.bf16 %v6200_v36  ;;  %v6201_v38 = vunpack.i.l.bf16 %v6200_v36  ;;  %5945 = vmatpush3.bf16.xpose.msk.msra.mxu0 %vm7031_vm4, %v5943_v33  ;;  %5351 = vmatprep.mubr.msk.f32.mxu0 %vm6617_vm2, %v6618_v24  ;;  %v7180_v36 = vld [vmem:[%s8637_s4 + $0x18] sm:$0xff] }
 0x3de   : > { %5946 = vmatprep.subr.bf16.mxu0 %v6616_v3 }
 0x3df   : > { %v5909_v42 = vpack.c.bf16 %v6202_v37, %v6201_v38  ;;  %v7188_v38 = vld [vmem:[%s8637_s4 + $0x20] sm:$0xff] }
 0x3e0   : > { %v1753_v43 = vpop.permute.xlu1 %1752  ;;  %5352 = vmatmul.mubr.msk.f32.gmra.mrb[20].mxu0 %vm819_vm3, %v1434_v14  ;;  %v7109_v52 = vpop.permute.xlu0 %6214 }
 0x3e1   : > { %5910 = vmatpush3.bf16.msra.mxu1 %v5909_v42  ;;  %5354 = vmatprep.mubr.msk.f32.mxu0 %vm6617_vm2, %v6618_v24 }
 0x3e2   : > { %5911 = vmatprep.subr.bf16.mxu1 %v6616_v3 }
 0x3e4   : > { %v6205_v46 = vpop.permute.xlu1 %6204  ;;  %5355 = vmatmul.mubr.msk.f32.gmra.mrb[22].mxu0 %vm819_vm3, %v1436_v17  ;;  %v1005_v55 = vpop.permute.xlu0 %1004 }
 0x3e5   : > { %v6207_v47 = vunpack.i.h.bf16 %v6205_v46  ;;  %v6206_v50 = vunpack.i.l.bf16 %v6205_v46  ;;  %5949 = vmatpush3.bf16.xpose.msk.msra.mxu0 %vm7031_vm4, %v5947_v45  ;;  %5357 = vmatprep.mubr.msk.f32.mxu0 %vm6617_vm2, %v6618_v24 }
 0x3e6   : > { %5396 = vmatprep.subr.mxu0 %v6618_v24 }
 0x3e7   : > { %v5912_v54 = vpack.c.bf16 %v6207_v47, %v6206_v50 }
 0x3e8   : > { %5358 = vmatmul.mubr.msk.f32.gmra.mrb[24].mxu0 %vm819_vm3, %v1438_v26 }
 0x3e9   : > { %5913 = vmatpush3.bf16.msra.mxu1 %v5912_v54  ;;  %5360 = vmatprep.mubr.msk.f32.mxu0 %vm6617_vm2, %v6618_v24 }
 0x3ea   : > { %5271 = vmatprep.subr.mxu1 %v6618_v24 }
 0x3ec   : > { %5361 = vmatmul.mubr.msk.f32.gmra.mrb[26].mxu0 %vm819_vm3, %v1440_v21 }
 0x3ed   : > { %5272 = vmatpush3.msra.mxu1 %v1005_v55  ;;  %5397 = vmatpush3.xpose.msk.msra.mxu0 %vm819_vm3, %v1765_v31 }
 0x3ee   : > { %5398 = vmatprep.mubr.msk.f32.mxu0 %vm6617_vm2, %v6618_v24  ;;  %5922 = vmatprep.subr.bf16.mxu1 %v6616_v3 }
 0x3ef   : > { %5950 = vmatprep.subr.bf16.mxu0 %v6616_v3 }
 0x3f0   : > { %5399 = vmatmul.mubr.msk.f32.vlgmr.msra.gmra.mrb[28].mxu0 %vm819_vm3, %v1747_v25 }
 0x3f1   : > { %5401 = vmatprep.mubr.msk.f32.mxu0 %vm6617_vm2, %v6618_v24 }
 0x3f4   : > { %5402 = vmatmul.mubr.msk.f32.gmra.mrb[30].mxu0 %vm819_vm3, %v1749_v35 }
 0x3f5   : > { %5404 = vmatprep.mubr.msk.f32.mxu0 %vm6617_vm2, %v6618_v24 }
 0x3f8   : > { %5405 = vmatmul.mubr.msk.f32.gmra.mrb[32].mxu0 %vm819_vm3, %v1751_v27 }
 0x3f9   : > { %5407 = vmatprep.mubr.msk.f32.mxu0 %vm6617_vm2, %v6618_v24 }
 0x3fc   : > { %5408 = vmatmul.mubr.msk.f32.gmra.mrb[34].mxu0 %vm819_vm3, %v1753_v43 }
 0x3fd   : > { %5410 = vmatprep.mubr.msk.f32.mxu0 %vm6617_vm2, %v6618_v24 }
 0x400   : > { %5411 = vmatmul.mubr.msk.f32.gmra.mrb[36].mxu0 %vm819_vm3, %v1755_v32 }
 0x401   : > { %5423 = vmatprep.mubr.msk.f32.mxu0 %vm6617_vm2, %v6618_v24 }
 0x48f   : > { %v906_v56 = vpop.f32.mrb[10].mxu1 }
 0x490   : > { %v930_v58 = vmul.f32 0.35355338, %v906_v56  ;;  %v5250_v59 = vpop.f32.mrb[11].mxu1 }
 0x492   : > { %v7143_v60 = vadd.f32 %v930_v58, %v7140_v57 }
 0x493   : > { %v911_v61 = vpop.f32.mrb[12].mxu1 }
 0x494   : > { %v5253_v62 = vpop.f32.mrb[13].mxu1  ;;  %v941_v63 = vsel %vm940_vm5, %v7143_v60, -inf  ;;  %v931_v8 = vmul.f32 0.35355338, %v911_v61 }
 0x495   : > { %942 = vmax.xlane.f32.xlu1 %v941_v63 }
 0x496   : > { %v7158_v18 = vadd.f32 %v931_v8, %v7153_v10 }
 0x497   : > { %v916_v0 = vpop.f32.mrb[14].mxu1 }
 0x498   : > { %v5256_v1 = vpop.f32.mrb[15].mxu1  ;;  %v932_v16 = vmul.f32 0.35355338, %v916_v0  ;;  %v944_v26 = vsel %vm940_vm5, %v7158_v18, -inf }
 0x49a   : > { %v7173_v27 = vadd.f32 %v932_v16, %v7166_v20 }
 0x49b   : > { %v921_v2 = vpop.f32.mrb[16].mxu1  ;;  %v1222_v4 = vpop.f32.mrb[8].mxu0 }
 0x49c   : > { %v1246_v5 = vmul.f32 0.35355338, %v1222_v4  ;;  %v5259_v6 = vpop.f32.mrb[17].mxu1  ;;  %v5300_v7 = vpop.f32.mrb[9].mxu0  ;;  %v933_v33 = vmul.f32 0.35355338, %v921_v2 }
 0x49d   : > { %v947_v35 = vsel %vm940_vm5, %v7173_v27, -inf }
 0x49e   : > { %v7148_v9 = vadd.f32 %v1246_v5, %v7140_v57  ;;  %v7201_v50 = vadd.f32 %v933_v33, %v7180_v36 }
 0x49f   : > { %v926_v11 = vpop.f32.mrb[18].mxu1  ;;  %v1227_v12 = vpop.f32.mrb[10].mxu0 }
 0x4a0   : > { %v1247_v13 = vmul.f32 0.35355338, %v1227_v12  ;;  %v5262_v14 = vpop.f32.mrb[19].mxu1  ;;  %v5303_v15 = vpop.f32.mrb[11].mxu0  ;;  %v1256_v17 = vsel %vm940_vm5, %v7148_v9, -inf  ;;  %v950_v59 = vsel %vm940_vm5, %v7201_v50, -inf }
 0x4a1   : > { %1257 = vmax.xlane.f32.xlu0 %v1256_v17  ;;  %v934_v30 = vmul.f32 0.35355338, %v926_v11 }
 0x4a2   : > { %v7161_v19 = vadd.f32 %v1247_v13, %v7153_v10 }
 0x4a3   : > { %v1232_v21 = vpop.f32.mrb[12].mxu0  ;;  %v7196_v45 = vadd.f32 %v934_v30, %v7188_v38 }
 0x4a4   : > { %v5306_v22 = vpop.f32.mrb[13].mxu0  ;;  %v1259_v23 = vsel %vm940_vm5, %v7161_v19, -inf  ;;  %v1248_v25 = vmul.f32 0.35355338, %v1232_v21 }
 0x4a5   : > { %1260 = vmax.xlane.f32.xlu1 %v1259_v23  ;;  %945 = vmax.xlane.f32.xlu0 %v944_v26  ;;  %v953_v58 = vsel %vm940_vm5, %v7196_v45, -inf }
 0x4a6   : > { %v7183_v37 = vadd.f32 %v1248_v25, %v7166_v20 }
 0x4a7   : > { %v1237_v29 = vpop.f32.mrb[14].mxu0 }
 0x4a8   : > { %v1249_v31 = vmul.f32 0.35355338, %v1237_v29  ;;  %v5309_v32 = vpop.f32.mrb[15].mxu0  ;;  %v1262_v47 = vsel %vm940_vm5, %v7183_v37, -inf }
 0x4a9   : > { %948 = vmax.xlane.f32.xlu0 %v947_v35 }
 0x4aa   : > { %v7191_v39 = vadd.f32 %v1249_v31, %v7180_v36 }
 0x4ab   : > { %v1242_v40 = vpop.f32.mrb[16].mxu0 }
 0x4ac   : > { %v5312_v42 = vpop.f32.mrb[17].mxu0  ;;  %v1265_v43 = vsel %vm940_vm5, %v7191_v39, -inf  ;;  %v1250_v46 = vmul.f32 0.35355338, %v1242_v40 }
 0x4ad   : > { %1266 = vmax.xlane.f32.xlu1 %v1265_v43  ;;  %1263 = vmax.xlane.f32.xlu0 %v1262_v47 }
 0x4ae   : > { %v7208_v61 = vadd.f32 %v1250_v46, %v7188_v38 }
 0x4af   : > { %v1537_v54 = vpop.f32.mrb[18].mxu0 }
 0x4b0   : > { %v1561_v55 = vmul.f32 0.35355338, %v1537_v54  ;;  %v5350_v56 = vpop.f32.mrb[19].mxu0  ;;  %v1268_v4 = vsel %vm940_vm5, %v7208_v61, -inf }
 0x4b1   : > { %954 = vmax.xlane.f32.xlu1 %v953_v58  ;;  %951 = vmax.xlane.f32.xlu0 %v950_v59 }
 0x4b2   : > { %v7211_v62 = vadd.f32 %v1561_v55, %v7140_v57 }
 0x4b3   : > { %v1542_v63 = vpop.f32.mrb[20].mxu0 }
 0x4b4   : > { %v1562_v0 = vmul.f32 0.35355338, %v1542_v63  ;;  %v5353_v1 = vpop.f32.mrb[21].mxu0  ;;  %v1571_v2 = vsel %vm940_vm5, %v7211_v62, -inf }
 0x4b5   : > { %1572 = vmax.xlane.f32.xlu1 %v1571_v2  ;;  %1269 = vmax.xlane.f32.xlu0 %v1268_v4 }
 0x4b6   : > { %v7218_v5 = vadd.f32 %v1562_v0, %v7153_v10 }
 0x4b7   : > { %v1547_v6 = vpop.f32.mrb[22].mxu0 }
 0x4b8   : > { %v1563_v7 = vmul.f32 0.35355338, %v1547_v6  ;;  %v5356_v8 = vpop.f32.mrb[23].mxu0  ;;  %v1574_v11 = vsel %vm940_vm5, %v7218_v5, -inf }
 0x4b9   : > { %1575 = vmax.xlane.f32.xlu0 %v1574_v11 }
 0x4ba   : > { %v7223_v12 = vadd.f32 %v1563_v7, %v7166_v20 }
 0x4bb   : > { %v1552_v13 = vpop.f32.mrb[24].mxu0 }
 0x4bc   : > { %v1564_v14 = vmul.f32 0.35355338, %v1552_v13  ;;  %v5359_v15 = vpop.f32.mrb[25].mxu0  ;;  %v1577_v16 = vsel %vm940_vm5, %v7223_v12, -inf }
 0x4bd   : > { %1578 = vmax.xlane.f32.xlu1 %v1577_v16 }
 0x4be   : > { %v7228_v17 = vadd.f32 %v1564_v14, %v7180_v36  ;;  %v7267_v14 = vpop.permute.xlu0 %1319 }
 0x4bf   : > { %v1557_v21 = vpop.f32.mrb[26].mxu0 }
 0x4c0   : > { %v1565_v22 = vmul.f32 0.35355338, %v1557_v21  ;;  %v5362_v23 = vpop.f32.mrb[27].mxu0  ;;  %v1580_v25 = vsel %vm940_vm5, %v7228_v17, -inf }
 0x4c1   : > { %1581 = vmax.xlane.f32.xlu0 %v1580_v25 }
 0x4c2   : > { %v7233_v26 = vadd.f32 %v1565_v22, %v7188_v38 }
 0x4c3   : > { %v1852_v29 = vpop.f32.mrb[28].mxu0 }
 0x4c4   : > { %v1876_v30 = vmul.f32 0.35355338, %v1852_v29  ;;  %v5400_v31 = vpop.f32.mrb[29].mxu0  ;;  %v1583_v32 = vsel %vm940_vm5, %v7233_v26, -inf }
 0x4c5   : > { %1584 = vmax.xlane.f32.xlu0 %v1583_v32 }
 0x4c6   : > { %v7238_v33 = vadd.f32 %v1876_v30, %v7140_v57 }
 0x4c7   : > { %v1857_v35 = vpop.f32.mrb[30].mxu0 }
 0x4c8   : > { %v1877_v40 = vmul.f32 0.35355338, %v1857_v35  ;;  %v5403_v42 = vpop.f32.mrb[31].mxu0  ;;  %v1886_v43 = vsel %vm940_vm5, %v7238_v33, -inf }
 0x4c9   : > { %1887 = vmax.xlane.f32.xlu1 %v1886_v43 }
 0x4ca   : > { %v7243_v46 = vadd.f32 %v1877_v40, %v7153_v10 }
 0x4cb   : > { %v1862_v47 = vpop.f32.mrb[32].mxu0 }
 0x4cc   : > { %v1878_v54 = vmul.f32 0.35355338, %v1862_v47  ;;  %v5406_v55 = vpop.f32.mrb[33].mxu0  ;;  %v1889_v56 = vsel %vm940_vm5, %v7243_v46, -inf }
 0x4cd   : > { %1890 = vmax.xlane.f32.xlu1 %v1889_v56 }
 0x4ce   : > { %v7248_v57 = vadd.f32 %v1878_v54, %v7166_v20 }
 0x4cf   : > { %v1867_v58 = vpop.f32.mrb[34].mxu0 }
 0x4d0   : > { %v1879_v59 = vmul.f32 0.35355338, %v1867_v58  ;;  %v5409_v63 = vpop.f32.mrb[35].mxu0  ;;  %v1892_v0 = vsel %vm940_vm5, %v7248_v57, -inf }
 0x4d1   : > { %1893 = vmax.xlane.f32.xlu0 %v1892_v0 }
 0x4d2   : > { %v7253_v10 = vadd.f32 %v1879_v59, %v7180_v36  ;;  %v7264_v36 = vpop.permute.xlu1 %6209 }
 0x4d3   : > { %v1872_v1 = vpop.f32.mrb[36].mxu0 }
 0x4d4   : > { %v5412_v2 = vpop.f32.mrb[37].mxu0  ;;  %v1895_v4 = vsel %vm940_vm5, %v7253_v10, -inf  ;;  %v1880_v20 = vmul.f32 0.35355338, %v1872_v1 }
 0x4d5   : > { %1896 = vmax.xlane.f32.xlu1 %v1895_v4 }
 0x4d6   : > { %v7260_v6 = vadd.f32 %v1880_v20, %v7188_v38 }
 0x4d8   : > { %v1898_v7 = vsel %vm940_vm5, %v7260_v6, -inf }
 0x4e7   : > { %6219 = vrot.lane.b32.xlu0 %v6951_v34, %s8656_s21 }
 0x506   : > { %1899 = vmax.xlane.f32.xlu0 %v1898_v7 }
 0x522   : > { %v943_v8 = vpop.xlane.xlu1 %942 }
 0x523   : > { %v956_v11 = vsub.f32 %v7143_v60, %v943_v8 }
 0x525   : > { %v961_v13 = vmul.f32 1.442695, %v956_v11 }
 0x527   : > { %6328 = vpow2.f32 %v961_v13 }
 0x52e   : > { %v1258_v15 = vpop.xlane.xlu0 %1257 }
 0x52f   : > { %v1271_v16 = vsub.f32 %v7148_v9, %v1258_v15 }
 0x531   : > { %v7270_v21 = vpop.eup %6328  ;;  %v1276_v38 = vmul.f32 1.442695, %v1271_v16 }
 0x532   : > { %v1261_v22 = vpop.xlane.xlu1 %1260  ;;  %v971_v23 = vsel %vm940_vm5, %v7270_v21, 0.0  ;;  %v946_v29 = vpop.xlane.xlu0 %945 }
 0x533   : > { %v1272_v25 = vsub.f32 %v7161_v19, %v1261_v22  ;;  %972 = vadd.xlane.f32.xlu1 %v971_v23  ;;  %6330 = vpow2.f32 %v1276_v38  ;;  %v957_v60 = vsub.f32 %v7158_v18, %v946_v29 }
 0x535   : > { %v1278_v30 = vmul.f32 1.442695, %v1272_v25  ;;  %v963_v31 = vmul.f32 1.442695, %v957_v60 }
 0x536   : > { %v949_v32 = vpop.xlane.xlu0 %948 }
 0x537   : > { %6332 = vpow2.f32 %v963_v31  ;;  %v958_v9 = vsub.f32 %v7173_v27, %v949_v32 }
 0x538   : > { %6334 = vpow2.f32 %v1278_v30 }
 0x539   : > { %v965_v35 = vmul.f32 1.442695, %v958_v9 }
 0x53a   : > { %v1267_v40 = vpop.xlane.xlu1 %1266  ;;  %v1264_v43 = vpop.xlane.xlu0 %1263 }
 0x53b   : > { %v1274_v42 = vsub.f32 %v7191_v39, %v1267_v40  ;;  %6336 = vpow2.f32 %v965_v35  ;;  %v1273_v19 = vsub.f32 %v7183_v37, %v1264_v43 }
 0x53d   : > { %v7279_v47 = vpop.eup %6330  ;;  %v1282_v54 = vmul.f32 1.442695, %v1274_v42  ;;  %v1280_v55 = vmul.f32 1.442695, %v1273_v19 }
 0x53e   : > { %v955_v18 = vpop.xlane.xlu1 %954  ;;  %v952_v56 = vpop.xlane.xlu0 %951  ;;  %v1286_v27 = vsel %vm940_vm5, %v7279_v47, 0.0 }
 0x53f   : > { %v960_v58 = vsub.f32 %v7196_v45, %v955_v18  ;;  %6338 = vpow2.f32 %v1280_v55  ;;  %v959_v59 = vsub.f32 %v7201_v50, %v952_v56  ;;  %1287 = vadd.xlane.f32.xlu1 %v1286_v27 }
 0x540   : > { %6340 = vpow2.f32 %v1282_v54 }
 0x541   : > { %v7285_v39 = vpop.eup %6332  ;;  %v967_v63 = vmul.f32 1.442695, %v959_v59  ;;  %v969_v37 = vmul.f32 1.442695, %v960_v58 }
 0x542   : > { %v1573_v0 = vpop.xlane.xlu1 %1572  ;;  %v1270_v1 = vpop.xlane.xlu0 %1269  ;;  %v974_v4 = vsel %vm940_vm5, %v7285_v39, 0.0 }
 0x543   : > { %v1586_v2 = vsub.f32 %v7211_v62, %v1573_v0  ;;  %v7290_v45 = vpop.eup %6334  ;;  %6342 = vpow2.f32 %v967_v63  ;;  %v1275_v20 = vsub.f32 %v7208_v61, %v1270_v1  ;;  %975 = vadd.xlane.f32.xlu0 %v974_v4 }
 0x544   : > { %6344 = vpow2.f32 %v969_v37  ;;  %v1289_v11 = vsel %vm940_vm5, %v7290_v45, 0.0 }
 0x545   : > { %v1591_v50 = vmul.f32 1.442695, %v1586_v2  ;;  %v7293_v7 = vpop.eup %6336  ;;  %v1284_v8 = vmul.f32 1.442695, %v1275_v20 }
 0x546   : > { %v977_v62 = vsel %vm940_vm5, %v7293_v7, 0.0  ;;  %v1576_v19 = vpop.xlane.xlu0 %1575 }
 0x547   : > { %6346 = vpow2.f32 %v1591_v50  ;;  %1290 = vadd.xlane.f32.xlu0 %v1289_v11  ;;  %978 = vadd.xlane.f32.xlu1 %v977_v62  ;;  %v1587_v54 = vsub.f32 %v7218_v5, %v1576_v19 }
 0x548   : > { %6348 = vpow2.f32 %v1284_v8 }
 0x549   : > { %v7299_v13 = vpop.eup %6338  ;;  %v1593_v18 = vmul.f32 1.442695, %v1587_v54 }
 0x54a   : > { %v1292_v61 = vsel %vm940_vm5, %v7299_v13, 0.0  ;;  %v7303_v15 = vpop.eup %6340  ;;  %v1579_v32 = vpop.xlane.xlu1 %1578 }
 0x54b   : > { %1293 = vadd.xlane.f32.xlu1 %v1292_v61  ;;  %v1295_v22 = vsel %vm940_vm5, %v7303_v15, 0.0  ;;  %v1588_v56 = vsub.f32 %v7223_v12, %v1579_v32 }
 0x54d   : > { %v7305_v16 = vpop.eup %6342  ;;  %v1595_v58 = vmul.f32 1.442695, %v1588_v56 }
 0x54e   : > { %v980_v38 = vsel %vm940_vm5, %v7305_v16, 0.0  ;;  %v7311_v23 = vpop.eup %6344  ;;  %v1582_v55 = vpop.xlane.xlu0 %1581 }
 0x54f   : > { %981 = vadd.xlane.f32.xlu0 %v980_v38  ;;  %1296 = vadd.xlane.f32.xlu1 %v1295_v22  ;;  %v983_v60 = vsel %vm940_vm5, %v7311_v23, 0.0  ;;  %v1589_v27 = vsub.f32 %v7228_v17, %v1582_v55  ;;  %v6217_v55 = vunpack.i.h.bf16 %v7109_v52 }
 0x551   : > { %v7313_v25 = vpop.eup %6346 }
 0x552   : > { %v1601_v29 = vsel %vm940_vm5, %v7313_v25, 0.0  ;;  %v7319_v30 = vpop.eup %6348  ;;  %v1585_v59 = vpop.xlane.xlu0 %1584 }
 0x553   : > { %984 = vadd.xlane.f32.xlu1 %v983_v60  ;;  %1602 = vadd.xlane.f32.xlu0 %v1601_v29  ;;  %v1298_v31 = vsel %vm940_vm5, %v7319_v30, 0.0 }
 0x556   : > { %v1888_v9 = vpop.xlane.xlu1 %1887 }
 0x557   : > { %1299 = vadd.xlane.f32.xlu1 %v1298_v31  ;;  %v1901_v0 = vsub.f32 %v7238_v33, %v1888_v9 }
 0x559   : > { %v1906_v1 = vmul.f32 1.442695, %v1901_v0 }
 0x55a   : > { %v1891_v35 = vpop.xlane.xlu1 %1890 }
 0x55b   : > { %v1902_v17 = vsub.f32 %v7243_v46, %v1891_v35 }
 0x55e   : > { %v1894_v2 = vpop.xlane.xlu0 %1893 }
 0x55f   : > { %v1903_v50 = vsub.f32 %v7248_v57, %v1894_v2 }
 0x561   : > { %v1910_v11 = vmul.f32 1.442695, %v1903_v50 }
 0x562   : > { %v1897_v40 = vpop.xlane.xlu1 %1896  ;;  %v7373_v32 = vpop.permute.xlu0 %6219 }
 0x563   : > { %v1904_v42 = vsub.f32 %v7253_v10, %v1897_v40  ;;  %v1590_v10 = vsub.f32 %v7233_v26, %v1585_v59  ;;  %v1908_v26 = vmul.f32 1.442695, %v1902_v17  ;;  %v6212_v40 = vunpack.i.h.bf16 %v7264_v36 }
 0x565   : > { %v1912_v43 = vmul.f32 1.442695, %v1904_v42  ;;  %v1599_v5 = vmul.f32 1.442695, %v1590_v10  ;;  %v6211_v42 = vunpack.i.l.bf16 %v7264_v36 }
 0x567   : > { %6350 = vpow2.f32 %v1912_v43 }
 0x568   : > { %1634 = vrot.lane.b32.xlu1 %v6971_v44, %s8656_s21  ;;  %6352 = vpow2.f32 %v1593_v18  ;;  %v6216_v18 = vunpack.i.l.bf16 %v7109_v52 }
 0x569   : > { %6224 = vrot.lane.b32.xlu0 %v6961_v41, %s8656_s21  ;;  %6354 = vpow2.f32 %v1595_v58  ;;  %s8686_s21 = smov 64  }
 0x56c   : > { %6229 = vrot.lane.b32.xlu1 %v6951_v34, %s8654_s16  ;;  %v1597_v34 = vmul.f32 1.442695, %v1589_v27 }
 0x56e   : > { %6356 = vpow2.f32 %v1597_v34 }
 0x56f   : > { %6358 = vpow2.f32 %v1599_v5 }
 0x570   : > { %6360 = vpow2.f32 %v1906_v1 }
 0x571   : > { %v7333_v63 = vpop.eup %6350  ;;  %6362 = vpow2.f32 %v1908_v26 }
 0x572   : > { %v1925_v37 = vsel %vm940_vm5, %v7333_v63, 0.0  ;;  %v7339_v12 = vpop.eup %6352  ;;  %6364 = vpow2.f32 %v1910_v11 }
 0x573   : > { %v1604_v4 = vsel %vm940_vm5, %v7339_v12, 0.0  ;;  %v7344_v20 = vpop.eup %6354 }
 0x574   : > { %v1607_v33 = vsel %vm940_vm5, %v7344_v20, 0.0 }
 0x578   : > { %v7349_v8 = vpop.eup %6356 }
 0x579   : > { %v1610_v46 = vsel %vm940_vm5, %v7349_v8, 0.0  ;;  %v7353_v62 = vpop.eup %6358 }
 0x57a   : > { %v1613_v61 = vsel %vm940_vm5, %v7353_v62, 0.0  ;;  %v7357_v38 = vpop.eup %6360 }
 0x57b   : > { %v1916_v57 = vsel %vm940_vm5, %v7357_v38, 0.0  ;;  %v7363_v22 = vpop.eup %6362 }
 0x57c   : > { %v1919_v29 = vsel %vm940_vm5, %v7363_v22, 0.0  ;;  %v7367_v60 = vpop.eup %6364 }
 0x57d   : > { %v1922_v31 = vsel %vm940_vm5, %v7367_v60, 0.0 }
 0x588   : > { %1926 = vadd.xlane.f32.xlu0 %v1925_v37 }
 0x590   : > { %1605 = vadd.xlane.f32.xlu1 %v1604_v4 }
 0x593   : > { %v1900_v9 = vpop.xlane.xlu0 %1899 }
 0x594   : > { %1608 = vadd.xlane.f32.xlu1 %v1607_v33  ;;  %v1905_v35 = vsub.f32 %v7260_v6, %v1900_v9  ;;  %v5926_v6 = vpack.c.bf16 %v6217_v55, %v6216_v18 }
 0x596   : > { %v1914_v19 = vmul.f32 1.442695, %v1905_v35 }
 0x598   : > { %1611 = vadd.xlane.f32.xlu1 %v1610_v46 }
 0x59c   : > { %1614 = vadd.xlane.f32.xlu1 %v1613_v61 }
 0x59e   : > { %1949 = vrot.lane.b32.xlu0 %v6971_v44, %s8654_s16 }
 0x5a0   : > { %1917 = vadd.xlane.f32.xlu1 %v1916_v57  ;;  %v6222_v57 = vunpack.i.h.bf16 %v7373_v32 }
 0x5a4   : > { %1920 = vadd.xlane.f32.xlu1 %v1919_v29  ;;  %v6221_v29 = vunpack.i.l.bf16 %v7373_v32 }
 0x5a6   : > { %v5937_v35 = vpack.c.bf16 %v6222_v57, %v6221_v29 }
 0x5a8   : > { %1923 = vadd.xlane.f32.xlu1 %v1922_v31 }
 0x5b9   : > { %6234 = vrot.lane.b32.xlu1 %v6961_v41, %s8654_s16  ;;  %v5923_v41 = vpack.c.bf16 %v6212_v40, %v6211_v42 }
 0x5c0   : > { %v973_v44 = vpop.xlane.xlu1 %972 }
 0x5c1   : > { %6366 = vrcp.f32 %v973_v44 }
 0x5c2   : > { %6368 = vpow2.f32 %v1914_v19 }
 0x5cb   : > { %v6367_v43 = vpop.eup %6366 }
 0x5cc   : > { %v991_v54 = vmul.f32 %v6367_v43, %v7270_v21  ;;  %v1288_v36 = vpop.xlane.xlu1 %1287  ;;  %v7388_v27 = vpop.eup %6368 }
 0x5cd   : > { %v1928_v37 = vsel %vm940_vm5, %v7388_v27, 0.0 }
 0x5ce   : > { %5274 = vmatmul.mubr.msk.f32.vlgmr.msra.gmra.mrb[20].mxu1 %vm940_vm5, %v991_v54 }
 0x5cf   : > { %5924 = vmatpush3.bf16.msra.mxu1 %v5923_v41  ;;  %5276 = vmatprep.mubr.msk.f32.mxu1 %vm6617_vm2, %v6618_v24 }
 0x5d0   : > { %5925 = vmatprep.subr.bf16.mxu1 %v6616_v3  ;;  %v976_v56 = vpop.xlane.xlu0 %975 }
 0x5d1   : > { %6370 = vrcp.f32 %v976_v56 }
 0x5d3   : > { %5927 = vmatpush3.bf16.msra.mxu1 %v5926_v6 }
 0x5d4   : > { %5321 = vmatprep.subr.mxu1 %v6618_v24  ;;  %v979_v21 = vpop.xlane.xlu1 %978  ;;  %v1291_v52 = vpop.xlane.xlu0 %1290 }
 0x5d5   : > { %6372 = vrcp.f32 %v979_v21 }
 0x5d7   : > { %5322 = vmatpush3.msra.mxu1 %v7267_v14 }
 0x5d8   : > { %5936 = vmatprep.subr.bf16.mxu1 %v6616_v3  ;;  %v1294_v58 = vpop.xlane.xlu1 %1293 }
 0x5db   : > { %v6371_v59 = vpop.eup %6370 }
 0x5dc   : > { %v982_v34 = vpop.xlane.xlu0 %981  ;;  %v1297_v10 = vpop.xlane.xlu1 %1296  ;;  %v992_v5 = vmul.f32 %v6371_v59, %v7285_v39 }
 0x5dd   : > { %6374 = vrcp.f32 %v982_v34  ;;  %1929 = vadd.xlane.f32.xlu1 %v1928_v37 }
 0x5de   : > { %5277 = vmatmul.mubr.msk.f32.gmra.mrb[22].mxu1 %vm940_vm5, %v992_v5 }
 0x5df   : > { %5279 = vmatprep.mubr.msk.f32.mxu1 %vm6617_vm2, %v6618_v24  ;;  %v6373_v14 = vpop.eup %6372 }
 0x5e0   : > { %v985_v0 = vpop.xlane.xlu1 %984  ;;  %v993_v1 = vmul.f32 %v6373_v14, %v7293_v7  ;;  %v1603_v26 = vpop.xlane.xlu0 %1602 }
 0x5e1   : > { %6376 = vrcp.f32 %v985_v0 }
 0x5e2   : > { %5280 = vmatmul.mubr.msk.f32.gmra.mrb[24].mxu1 %vm940_vm5, %v993_v1  ;;  %6378 = vrcp.f32 %v1288_v36 }
 0x5e3   : > { %5282 = vmatprep.mubr.msk.f32.mxu1 %vm6617_vm2, %v6618_v24  ;;  %6380 = vrcp.f32 %v1291_v52 }
 0x5e4   : > { %v1300_v17 = vpop.xlane.xlu1 %1299  ;;  %6382 = vrcp.f32 %v1294_v58  ;;  %v6225_v31 = vpop.permute.xlu0 %6224 }
 0x5e5   : > { %6384 = vrcp.f32 %v1297_v10  ;;  %v6227_v40 = vunpack.i.h.bf16 %v6225_v31 }
 0x5e6   : > { %6386 = vrcp.f32 %v1300_v17 }
 0x5e7   : > { %v6375_v39 = vpop.eup %6374  ;;  %6388 = vrcp.f32 %v1603_v26 }
 0x5e8   : > { %v1635_v2 = vpop.permute.xlu1 %1634  ;;  %v994_v4 = vmul.f32 %v6375_v39, %v7305_v16 }
 0x5ea   : > { %5283 = vmatmul.mubr.msk.f32.gmra.mrb[26].mxu1 %vm940_vm5, %v994_v4 }
 0x5eb   : > { %5285 = vmatprep.mubr.msk.f32.mxu1 %vm6617_vm2, %v6618_v24  ;;  %v6377_v7 = vpop.eup %6376 }
 0x5ec   : > { %v6230_v50 = vpop.permute.xlu1 %6229  ;;  %v995_v46 = vmul.f32 %v6377_v7, %v7311_v23  ;;  %v6379_v61 = vpop.eup %6378  ;;  %v6226_v23 = vunpack.i.l.bf16 %v6225_v31 }
 0x5ed   : > { %v6232_v33 = vunpack.i.h.bf16 %v6230_v50  ;;  %v6231_v11 = vunpack.i.l.bf16 %v6230_v50  ;;  %v1306_v44 = vmul.f32 %v6379_v61, %v7279_v47  ;;  %v6381_v9 = vpop.eup %6380 }
 0x5ee   : > { %5286 = vmatmul.mubr.msk.f32.gmra.mrb[28].mxu1 %vm940_vm5, %v995_v46  ;;  %v1307_v32 = vmul.f32 %v6381_v9, %v7290_v45  ;;  %v6383_v42 = vpop.eup %6382  ;;  %v5940_v47 = vpack.c.bf16 %v6227_v40, %v6226_v23 }
 0x5ef   : > { %v5951_v16 = vpack.c.bf16 %v6232_v33, %v6231_v11  ;;  %5323 = vmatprep.mubr.msk.f32.mxu1 %vm6617_vm2, %v6618_v24  ;;  %v1308_v43 = vmul.f32 %v6383_v42, %v7299_v13  ;;  %v6385_v19 = vpop.eup %6384  ;;  %v2139_v42 = vld [vmem:[%s8639_s6 + $0x8] sm:$0xff] }
 0x5f0   : > { %v1309_v45 = vmul.f32 %v6385_v19, %v7303_v15  ;;  %v6387_v54 = vpop.eup %6386 }
 0x5f1   : > { %5952 = vmatpush3.bf16.msra.mxu0 %v5951_v16  ;;  %v1310_v55 = vmul.f32 %v6387_v54, %v7319_v30  ;;  %v6389_v13 = vpop.eup %6388 }
 0x5f2   : > { %5953 = vmatprep.subr.bf16.mxu0 %v6616_v3  ;;  %5324 = vmatmul.mubr.msk.f32.vlgmr.msra.gmra.mrb[30].mxu1 %vm940_vm5, %v1306_v44  ;;  %v1621_v18 = vmul.f32 %v6389_v13, %v7313_v25 }
 0x5f3   : > { %5938 = vmatpush3.bf16.msra.mxu1 %v5937_v35  ;;  %5326 = vmatprep.mubr.msk.f32.mxu1 %vm6617_vm2, %v6618_v24 }
 0x5f4   : > { %5939 = vmatprep.subr.bf16.mxu1 %v6616_v3 }
 0x5f6   : > { %5327 = vmatmul.mubr.msk.f32.gmra.mrb[32].mxu1 %vm940_vm5, %v1307_v32  ;;  %v2138_v32 = vld [vmem:[%s8639_s6] sm:$0xff] }
 0x5f7   : > { %5941 = vmatpush3.bf16.msra.mxu1 %v5940_v47  ;;  %5329 = vmatprep.mubr.msk.f32.mxu1 %vm6617_vm2, %v6618_v24  ;;  %v2140_v47 = vld [vmem:[%s8639_s6 + $0x10] sm:$0xff]  ;;  %v5957_v19 = vpack.c.bf16 %v2139_v42, %v2138_v32 }
 0x5f8   : > { %5371 = vmatprep.subr.mxu1 %v6618_v24 }
 0x5fa   : > { %5330 = vmatmul.mubr.msk.f32.gmra.mrb[34].mxu1 %vm940_vm5, %v1308_v43 }
 0x5fb   : > { %5372 = vmatpush3.msra.mxu1 %v1635_v2  ;;  %5332 = vmatprep.mubr.msk.f32.mxu1 %vm6617_vm2, %v6618_v24 }
 0x5fc   : > { %6096 = vmatprep.subr.bf16.mxu1 %v6616_v3 }
 0x5fe   : > { %5333 = vmatmul.mubr.msk.f32.gmra.mrb[36].mxu1 %vm940_vm5, %v1309_v45  ;;  %v2141_v45 = vld [vmem:[%s8639_s6 + $0x18] sm:$0xff] }
 0x5ff   : > { %5335 = vmatprep.mubr.msk.f32.mxu1 %vm6617_vm2, %v6618_v24  ;;  %v5960_v54 = vpack.c.bf16 %v2141_v45, %v2140_v47  ;;  %v2144_v45 = vsub.s32 3, %v6914_v49 }
 0x602   : > { %5336 = vmatmul.mubr.msk.f32.gmra.mrb[38].mxu1 %vm940_vm5, %v1310_v55 }
 0x603   : > { %5373 = vmatprep.mubr.msk.f32.mxu1 %vm6617_vm2, %v6618_v24 }
 0x606   : > { %5374 = vmatmul.mubr.msk.f32.vlgmr.msra.gmra.mrb[40].mxu1 %vm940_vm5, %v1621_v18 }
 0x607   : > { %6099 = vmatpush3.bf16.msra.mxu1 %v5951_v16  ;;  %5376 = vmatprep.mubr.msk.f32.mxu1 %vm6617_vm2, %v6618_v24 }
 0x608   : > { %6097 = vmatprep.subr.bf16.mxu1 %v6616_v3 }
 0x615   : > { %v1927_v10 = vpop.xlane.xlu0 %1926 }
 0x619   : > { %v1950_v39 = vpop.permute.xlu0 %1949 }
 0x61d   : > { %v1606_v15 = vpop.xlane.xlu1 %1605 }
 0x61e   : > { %6390 = vrcp.f32 %v1606_v15 }
 0x621   : > { %v1609_v41 = vpop.xlane.xlu1 %1608 }
 0x622   : > { %6392 = vrcp.f32 %v1609_v41 }
 0x625   : > { %v1612_v30 = vpop.xlane.xlu1 %1611 }
 0x626   : > { %6394 = vrcp.f32 %v1612_v30 }
 0x628   : > { %v6391_v6 = vpop.eup %6390 }
 0x629   : > { %v1615_v36 = vpop.xlane.xlu1 %1614  ;;  %v1622_v56 = vmul.f32 %v6391_v6, %v7339_v12 }
 0x62a   : > { %6396 = vrcp.f32 %v1615_v36 }
 0x62b   : > { %5377 = vmatmul.mubr.msk.f32.gmra.mrb[42].mxu1 %vm940_vm5, %v1622_v56 }
 0x62c   : > { %v6393_v25 = vpop.eup %6392  ;;  %5379 = vmatprep.mubr.msk.f32.mxu1 %vm6617_vm2, %v6618_v24 }
 0x62d   : > { %v1918_v21 = vpop.xlane.xlu1 %1917  ;;  %v1623_v52 = vmul.f32 %v6393_v25, %v7344_v20 }
 0x62e   : > { %6398 = vrcp.f32 %v1918_v21 }
 0x62f   : > { %5380 = vmatmul.mubr.msk.f32.gmra.mrb[44].mxu1 %vm940_vm5, %v1623_v52 }
 0x630   : > { %v6395_v58 = vpop.eup %6394  ;;  %5382 = vmatprep.mubr.msk.f32.mxu1 %vm6617_vm2, %v6618_v24 }
 0x631   : > { %v1921_v59 = vpop.xlane.xlu1 %1920  ;;  %v1624_v34 = vmul.f32 %v6395_v58, %v7349_v8 }
 0x633   : > { %5383 = vmatmul.mubr.msk.f32.gmra.mrb[46].mxu1 %vm940_vm5, %v1624_v34 }
 0x634   : > { %v6397_v12 = vpop.eup %6396  ;;  %5385 = vmatprep.mubr.msk.f32.mxu1 %vm6617_vm2, %v6618_v24 }
 0x635   : > { %v1924_v37 = vpop.xlane.xlu1 %1923  ;;  %v1625_v20 = vmul.f32 %v6397_v12, %v7353_v62 }
 0x636   : > { %6400 = vrcp.f32 %v1924_v37 }
 0x637   : > { %6402 = vrcp.f32 %v1927_v10  ;;  %5386 = vmatmul.mubr.msk.f32.gmra.mrb[48].mxu1 %vm940_vm5, %v1625_v20 }
 0x638   : > { %6404 = vrcp.f32 %v1921_v59  ;;  %5429 = vmatprep.mubr.msk.f32.mxu1 %vm6617_vm2, %v6618_v24  ;;  %v6399_v1 = vpop.eup %6398 }
 0x639   : > { %v6235_v8 = vpop.permute.xlu1 %6234  ;;  %v1936_v2 = vmul.f32 %v6399_v1, %v7357_v38 }
 0x63a   : > { %v6237_v5 = vunpack.i.h.bf16 %v6235_v8  ;;  %v6236_v14 = vunpack.i.l.bf16 %v6235_v8 }
 0x63c   : > { %v5954_v0 = vpack.c.bf16 %v6237_v5, %v6236_v14 }
 0x63e   : > { %5955 = vmatpush3.bf16.msra.mxu0 %v5954_v0  ;;  %6100 = vmatpush3.bf16.msra.mxu1 %v5954_v0 }
 0x63f   : > { %5421 = vmatprep.subr.mxu0 %v6618_v24  ;;  %6098 = vmatprep.subr.mxu1 %v6618_v24 }
 0x640   : > { %v6401_v62 = vpop.eup %6400 }
 0x641   : > { %v6403_v17 = vpop.eup %6402  ;;  %v1938_v4 = vmul.f32 %v6401_v62, %v7367_v60 }
 0x642   : > { %v6405_v26 = vpop.eup %6404  ;;  %5422 = vmatpush3.msra.mxu0 %v1950_v39  ;;  %6101 = vmatpush3.msra.mxu1 %v1950_v39  ;;  %v1939_v50 = vmul.f32 %v6403_v17, %v7333_v63 }
 0x643   : > { %5424 = vmatmul.mubr.msk.f32.vlgmr.msra.gmra.mrb[38].mxu0 %vm940_vm5, %v1936_v2  ;;  %5430 = vmatmul.mubr.msk.f32.vlgmr.msra.gmra.mrb[50].mxu1 %vm940_vm5, %v1938_v4  ;;  %v1937_v7 = vmul.f32 %v6405_v26, %v7363_v22 }
 0x644   : > { %5426 = vmatprep.mubr.msk.f32.mxu0 %vm6617_vm2, %v6618_v24  ;;  %5432 = vmatprep.mubr.msk.f32.mxu1 %vm6617_vm2, %v6618_v24 }
 0x645   : > { %5956 = vmatprep.subr.bf16.mxu0 %v6616_v3  ;;  %5962 = vmatprep.subr.bf16.mxu1 %v6616_v3 }
 0x646   : > { %5958 = vmatpush3.bf16.msra.mxu0 %v5957_v19 }
 0x647   : > { %5427 = vmatmul.mubr.msk.f32.gmra.mrb[40].mxu0 %vm940_vm5, %v1937_v7  ;;  %5433 = vmatmul.mubr.msk.f32.gmra.mrb[52].mxu1 %vm940_vm5, %v1939_v50 }
 0x648   : > { %5435 = vmatprep.mubr.msk.f32.mxu1 %vm6617_vm2, %v6618_v24  ;;  %5446 = vmatprep.mubr.msk.f32.mxu0 %vm6617_vm2, %v6618_v24 }
 0x649   : > { %5959 = vmatprep.subr.bf16.mxu0 %v6616_v3 }
 0x64a   : > { %5961 = vmatpush3.bf16.msra.mxu0 %v5960_v54  ;;  %v7557_v54 = vld [vmem:[%s8642_s9] sm:$0xff] }
 0x64b   : > { %5968 = vmatprep.subr.bf16.mxu0 %v6616_v3 }
 0x66a   : > { %v1930_v38 = vpop.xlane.xlu1 %1929 }
 0x66b   : > { %6406 = vrcp.f32 %v1930_v38 }
 0x675   : > { %v6407_v60 = vpop.eup %6406 }
 0x676   : > { %v1940_v22 = vmul.f32 %v6407_v60, %v7388_v27 }
 0x678   : > { %5436 = vmatmul.mubr.msk.f32.gmra.mrb[54].mxu1 %vm940_vm5, %v1940_v22 }
 0x679   : > { %5469 = vmatprep.mubr.msk.f32.mxu1 %vm6617_vm2, %v6618_v24 }
 0x6a1   : > { %v7479_v63 = vpop.f32.mrb[20].mxu1 }
 0x6a2   : > { %v5275_v33 = vpop.f32.mrb[21].mxu1 }
 0x6b1   : > { %v7481_v11 = vpop.f32.mrb[22].mxu1 }
 0x6b2   : > { %v5278_v46 = vpop.f32.mrb[23].mxu1 }
 0x6b5   : > { %v7483_v61 = vpop.f32.mrb[24].mxu1 }
 0x6b6   : > { %v5281_v57 = vpop.f32.mrb[25].mxu1 }
 0x6bd   : > { %v7485_v29 = vpop.f32.mrb[26].mxu1 }
 0x6be   : > { %v5284_v31 = vpop.f32.mrb[27].mxu1 }
 0x6c1   : > { %v7487_v16 = vpop.f32.mrb[28].mxu1 }
 0x6c2   : > { %v5287_v27 = vpop.f32.mrb[29].mxu1 }
 0x6c5   : > { %v1407_v44 = vpop.f32.mrb[30].mxu1 }
 0x6c6   : > { %2066 = vrot.lane.b32.xlu0 %v1407_v44, %s8670_s22  ;;  %v5325_v9 = vpop.f32.mrb[31].mxu1 }
 0x6c9   : > { %v1412_v35 = vpop.f32.mrb[32].mxu1 }
 0x6ca   : > { %2068 = vrot.lane.b32.xlu1 %v1412_v35, %s8670_s22  ;;  %v5328_v40 = vpop.f32.mrb[33].mxu1 }
 0x6cd   : > { %v1417_v23 = vpop.f32.mrb[34].mxu1 }
 0x6ce   : > { %2070 = vrot.lane.b32.xlu0 %v1417_v23, %s8670_s22  ;;  %v5331_v43 = vpop.f32.mrb[35].mxu1 }
 0x6d1   : > { %v1422_v55 = vpop.f32.mrb[36].mxu1 }
 0x6d2   : > { %v5334_v13 = vpop.f32.mrb[37].mxu1 }
 0x6d5   : > { %v1427_v18 = vpop.f32.mrb[38].mxu1 }
 0x6d6   : > { %v5337_v15 = vpop.f32.mrb[39].mxu1 }
 0x6d7   : > { %v6541_v15 = vld [vmem:[#allocation2] sm:$0xff] }
 0x6d9   : > { %v1722_v41 = vpop.f32.mrb[40].mxu1 }
 0x6da   : > { %2086 = vrot.lane.b32.xlu0 %v1722_v41, %s8672_s30  ;;  %v5375_v30 = vpop.f32.mrb[41].mxu1 }
 0x6fe   : > { %v1727_v6 = vpop.f32.mrb[42].mxu1 }
 0x6ff   : > { %v5378_v36 = vpop.f32.mrb[43].mxu1 }
 0x702   : > { %v1732_v56 = vpop.f32.mrb[44].mxu1 }
 0x703   : > { %v5381_v25 = vpop.f32.mrb[45].mxu1 }
 0x704   : > { %v6542_v25 = vld [vmem:[#allocation2 + $0x8] sm:$0xff] }
 0x706   : > { %v1737_v21 = vpop.f32.mrb[46].mxu1 }
 0x707   : > { %v5384_v52 = vpop.f32.mrb[47].mxu1 }
 0x70a   : > { %v1742_v58 = vpop.f32.mrb[48].mxu1 }
 0x70b   : > { %v5387_v59 = vpop.f32.mrb[49].mxu1 }
 0x716   : > { %v2037_v34 = vpop.f32.mrb[38].mxu0  ;;  %v2047_v12 = vpop.f32.mrb[50].mxu1 }
 0x717   : > { %v5425_v10 = vpop.f32.mrb[39].mxu0  ;;  %2106 = vrot.lane.b32.xlu0 %v2037_v34, %s8668_s23  ;;  %2110 = vrot.lane.b32.xlu1 %v2047_v12, %s8668_s23  ;;  %v5431_v37 = vpop.f32.mrb[51].mxu1  ;;  %v6543_v12 = vld [vmem:[#allocation2 + $0x10] sm:$0xff] }
 0x71a   : > { %v2042_v20 = vpop.f32.mrb[40].mxu0  ;;  %v2052_v8 = vpop.f32.mrb[52].mxu1 }
 0x71b   : > { %v5428_v5 = vpop.f32.mrb[41].mxu0  ;;  %2088 = vrot.lane.b32.xlu0 %v1727_v6, %s8672_s30  ;;  %2092 = vrot.lane.b32.xlu1 %v1737_v21, %s8672_s30  ;;  %v5434_v14 = vpop.f32.mrb[53].mxu1 }
 0x71c   : > { %v6544_v14 = vld [vmem:[#allocation2 + $0x18] sm:$0xff] }
 0x71f   : > { %2108 = vrot.lane.b32.xlu0 %v2042_v20, %s8668_s23  ;;  %2074 = vrot.lane.b32.xlu1 %v1427_v18, %s8670_s22 }
 0x723   : > { %2090 = vrot.lane.b32.xlu0 %v1732_v56, %s8672_s30 }
 0x727   : > { %2072 = vrot.lane.b32.xlu0 %v1422_v55, %s8670_s22 }
 0x72b   : > { %2112 = vrot.lane.b32.xlu0 %v2052_v8, %s8668_s23 }
 0x72f   : > { %2094 = vrot.lane.b32.xlu0 %v1742_v58, %s8672_s30  ;;  %s8688_s30 = smov 48  }
 0x738   : > { %v2067_v62 = vpop.permute.xlu0 %2066 }
 0x739   : > { %v2121_v2 = vsel %vm819_vm3, %v7479_v63, %v2067_v62 }
 0x73c   : > { %v2069_v50 = vpop.permute.xlu1 %2068 }
 0x73d   : > { %v2122_v60 = vsel %vm819_vm3, %v7481_v11, %v2069_v50 }
 0x740   : > { %v2071_v17 = vpop.permute.xlu0 %2070 }
 0x741   : > { %v2123_v46 = vsel %vm819_vm3, %v7483_v61, %v2071_v17 }
 0x74b   : > { %v2057_v0 = vpop.f32.mrb[54].mxu1 }
 0x74c   : > { %2114 = vrot.lane.b32.xlu1 %v2057_v0, %s8668_s23  ;;  %v5437_v1 = vpop.f32.mrb[55].mxu1  ;;  %v2087_v39 = vpop.permute.xlu0 %2086  ;;  %s8691_s23 = smov 8  }
 0x74d   : > { %v2127_v4 = vsel %vm2126_vm6, %v2121_v2, %v2087_v39  ;;  %v6545_v2 = vld [vmem:[#allocation2 + $0x20] sm:$0xff] }
 0x789   : > { %v2107_v26 = vpop.permute.xlu0 %2106  ;;  %v2111_v31 = vpop.permute.xlu1 %2110 }
 0x78a   : > { %v2133_v7 = vsel %vm2132_vm7, %v2127_v4, %v2107_v26 }
 0x78b   : > { %5447 = vmatmul.mubr.msk.f32.vlgmr.msra.gmra.mrb[42].mxu0 %vm582_vm1, %v2133_v7 }
 0x78c   : > { %5449 = vmatprep.mubr.msk.f32.mxu0 %vm6617_vm2, %v6618_v24 }
 0x78d   : > { %v2089_v38 = vpop.permute.xlu0 %2088  ;;  %v2093_v35 = vpop.permute.xlu1 %2092 }
 0x78e   : > { %v2128_v22 = vsel %vm2126_vm6, %v2122_v60, %v2089_v38 }
 0x791   : > { %v2109_v33 = vpop.permute.xlu0 %2108  ;;  %v2075_v32 = vpop.permute.xlu1 %2074 }
 0x792   : > { %v2134_v63 = vsel %vm2132_vm7, %v2128_v22, %v2109_v33  ;;  %v2125_v47 = vsel %vm819_vm3, %v7487_v16, %v2075_v32  ;;  %v2145_v16 = vrot.slane %v7557_v54, %v2144_v45 }
 0x793   : > { %5450 = vmatmul.mubr.msk.f32.gmra.mrb[44].mxu0 %vm582_vm1, %v2134_v63 }
 0x794   : > { %5452 = vmatprep.mubr.msk.f32.mxu0 %vm6617_vm2, %v6618_v24 }
 0x795   : > { %v2091_v57 = vpop.permute.xlu0 %2090 }
 0x796   : > { %v2129_v27 = vsel %vm2126_vm6, %v2123_v46, %v2091_v57 }
 0x797   : > { %v2135_v44 = vsel %vm2132_vm7, %v2129_v27, %v2111_v31 }
 0x798   : > { %5453 = vmatmul.mubr.msk.f32.gmra.mrb[46].mxu0 %vm582_vm1, %v2135_v44 }
 0x799   : > { %v2073_v11 = vpop.permute.xlu0 %2072  ;;  %5455 = vmatprep.mubr.msk.f32.mxu0 %vm6617_vm2, %v6618_v24 }
 0x79a   : > { %v2124_v9 = vsel %vm819_vm3, %v7485_v29, %v2073_v11 }
 0x79b   : > { %v2130_v40 = vsel %vm2126_vm6, %v2124_v9, %v2093_v35 }
 0x79d   : > { %v2113_v23 = vpop.permute.xlu0 %2112 }
 0x79e   : > { %v2136_v61 = vsel %vm2132_vm7, %v2130_v40, %v2113_v23 }
 0x79f   : > { %5456 = vmatmul.mubr.msk.f32.gmra.mrb[48].mxu0 %vm582_vm1, %v2136_v61 }
 0x7a0   : > { %5458 = vmatprep.mubr.msk.f32.mxu0 %vm6617_vm2, %v6618_v24 }
 0x7a1   : > { %v2095_v42 = vpop.permute.xlu0 %2094 }
 0x7a2   : > { %v2131_v43 = vsel %vm2126_vm6, %v2125_v47, %v2095_v42  ;;  %v2339_v47 = vld [vmem:[%s8640_s7] sm:$0xff] }
 0x7be   : > { %v2115_v19 = vpop.permute.xlu1 %2114 }
 0x7bf   : > { %v2137_v29 = vsel %vm2132_vm7, %v2131_v43, %v2115_v19  ;;  %v2340_v43 = vld [vmem:[%s8640_s7 + $0x8] sm:$0xff] }
 0x7c0   : > { %5459 = vmatmul.mubr.msk.f32.gmra.mrb[50].mxu0 %vm582_vm1, %v2137_v29  ;;  %v5963_v19 = vpack.c.bf16 %v2340_v43, %v2339_v47  ;;  %v2341_v29 = vld [vmem:[%s8640_s7 + $0x10] sm:$0xff] }
 0x7c1   : > { %5516 = vmatprep.mubr.msk.f32.mxu0 %vm6617_vm2, %v6618_v24 }
 0x7c2   : > { %5964 = vmatpush3.bf16.msra.mxu1 %v5963_v19 }
 0x7c3   : > { %5965 = vmatprep.subr.bf16.mxu1 %v6616_v3 }
 0x85e   : > { %v2227_v55 = vpop.f32.mrb[42].mxu0 }
 0x85f   : > { %v2228_v13 = vadd.f32 %v2227_v55, %v2145_v16  ;;  %v5448_v18 = vpop.f32.mrb[43].mxu0 }
 0x861   : > { %v7562_v41 = vadd.f32 %v6541_v15, %v2228_v13 }
 0x863   : > { %v2256_v30 = vsel %vm582_vm1, %v7562_v41, 0.0 }
 0x864   : > { %2257 = vadd.xlane.f32.xlu0 %v2256_v30 }
 0x866   : > { %v2232_v6 = vpop.f32.mrb[44].mxu0 }
 0x867   : > { %v2233_v36 = vadd.f32 %v2232_v6, %v2145_v16  ;;  %v5451_v56 = vpop.f32.mrb[45].mxu0 }
 0x868   : > { %v2478_v56 = vld [vmem:[%s8641_s8 + $0x8] sm:$0xff] }
 0x869   : > { %v7566_v21 = vadd.f32 %v6542_v25, %v2233_v36  ;;  %v2477_v36 = vld [vmem:[%s8641_s8] sm:$0xff]  ;;  %v2479_v25 = vld [vmem:[%s8641_s8 + $0x10] sm:$0xff] }
 0x86b   : > { %v2237_v52 = vpop.f32.mrb[46].mxu0  ;;  %v2259_v58 = vsel %vm582_vm1, %v7566_v21, 0.0 }
 0x86c   : > { %v2238_v59 = vadd.f32 %v2237_v52, %v2145_v16  ;;  %v5454_v34 = vpop.f32.mrb[47].mxu0  ;;  %2260 = vadd.xlane.f32.xlu1 %v2259_v58  ;;  %v5969_v52 = vpack.c.bf16 %v2478_v56, %v2477_v36  ;;  %v2480_v58 = vld [vmem:[%s8641_s8 + $0x18] sm:$0xff] }
 0x86d   : > { %v2481_v34 = vld [vmem:[%s8641_s8 + $0x20] sm:$0xff]  ;;  %v2484_v36 = vld [vmem:[%s8641_s8 + $0x38] sm:$0xff] }
 0x86e   : > { %v7570_v10 = vadd.f32 %v6543_v12, %v2238_v59  ;;  %5970 = vmatpush3.bf16.msra.mxu0 %v5969_v52  ;;  %v5972_v59 = vpack.c.bf16 %v2480_v58, %v2479_v25  ;;  %v2482_v12 = vld [vmem:[%s8641_s8 + $0x28] sm:$0xff]  ;;  %v2487_v58 = vld [vmem:[%s8641_s8 + $0x50] sm:$0xff] }
 0x86f   : > { %5971 = vmatprep.subr.bf16.mxu0 %v6616_v3  ;;  %v2486_v25 = vld [vmem:[%s8641_s8 + $0x48] sm:$0xff] }
 0x870   : > { %v2262_v37 = vsel %vm582_vm1, %v7570_v10, 0.0 }
 0x871   : > { %2263 = vadd.xlane.f32.xlu0 %v2262_v37  ;;  %v5975_v37 = vpack.c.bf16 %v2482_v12, %v2481_v34  ;;  %v2489_v12 = vld [vmem:[%s8641_s8 + $0x60] sm:$0xff] }
 0x872   : > { %v2242_v20 = vpop.f32.mrb[48].mxu0  ;;  %5973 = vmatpush3.bf16.msra.mxu0 %v5972_v59  ;;  %v2488_v59 = vld [vmem:[%s8641_s8 + $0x58] sm:$0xff] }
 0x873   : > { %v2243_v8 = vadd.f32 %v2242_v20, %v2145_v16  ;;  %v5457_v5 = vpop.f32.mrb[49].mxu0  ;;  %5974 = vmatprep.subr.bf16.mxu0 %v6616_v3  ;;  %v5984_v34 = vpack.c.bf16 %v2488_v59, %v2487_v58 }
 0x875   : > { %v7574_v0 = vadd.f32 %v6544_v14, %v2243_v8 }
 0x876   : > { %5976 = vmatpush3.bf16.msra.mxu0 %v5975_v37  ;;  %v2490_v37 = vld [vmem:[%s8641_s8 + $0x68] sm:$0xff] }
 0x877   : > { %v2265_v1 = vsel %vm582_vm1, %v7574_v0, 0.0  ;;  %5977 = vmatprep.subr.bf16.mxu0 %v6616_v3 }
 0x878   : > { %2266 = vadd.xlane.f32.xlu0 %v2265_v1 }
 0x893   : > { %v2247_v62 = vpop.f32.mrb[50].mxu0 }
 0x894   : > { %v2248_v17 = vadd.f32 %v2247_v62, %v2145_v16  ;;  %v5460_v39 = vpop.f32.mrb[51].mxu0  ;;  %v2342_v16 = vld [vmem:[%s8640_s7 + $0x18] sm:$0xff]  ;;  %v2323_v62 = vsub.s32 4, %v6914_v49 }
 0x895   : > { %v5966_v55 = vpack.c.bf16 %v2342_v16, %v2341_v29  ;;  %v2332_v39 = vsub.s32 5, %v6914_v49 }
 0x896   : > { %v7578_v4 = vadd.f32 %v6545_v2, %v2248_v17 }
 0x897   : > { %5967 = vmatpush3.bf16.msra.mxu1 %v5966_v55 }
 0x898   : > { %v2268_v26 = vsel %vm582_vm1, %v7578_v4, 0.0  ;;  %5992 = vmatprep.subr.bf16.mxu1 %v6616_v3 }
 0x899   : > { %2269 = vadd.xlane.f32.xlu0 %v2268_v26  ;;  %v2324_v26 = vrot.slane %v7557_v54, %v2323_v62 }
 0x8f1   : > { %v2258_v7 = vpop.xlane.xlu0 %2257 }
 0x8f2   : > { %v2271_v50 = vmul.f32 0.03125, %v2258_v7 }
 0x8f4   : > { %v7583_v38 = vsub.f32 %v7562_v41, %v2271_v50 }
 0x8f6   : > { %v2281_v60 = vmul.f32 %v7583_v38, %v7583_v38 }
 0x8f8   : > { %v2286_v22 = vsel %vm582_vm1, %v2281_v60, 0.0 }
 0x8f9   : > { %2287 = vadd.xlane.f32.xlu1 %v2286_v22  ;;  %v2261_v33 = vpop.xlane.xlu1 %2260 }
 0x8fa   : > { %v2272_v63 = vmul.f32 0.03125, %v2261_v33  ;;  %v2333_v33 = vrot.slane %v7557_v54, %v2332_v39 }
 0x8fc   : > { %v7589_v46 = vsub.f32 %v7566_v21, %v2272_v63 }
 0x8fe   : > { %v2264_v57 = vpop.xlane.xlu0 %2263  ;;  %v2282_v31 = vmul.f32 %v7589_v46, %v7589_v46 }
 0x8ff   : > { %v2273_v27 = vmul.f32 0.03125, %v2264_v57 }
 0x900   : > { %v2289_v44 = vsel %vm582_vm1, %v2282_v31, 0.0 }
 0x901   : > { %v7595_v11 = vsub.f32 %v7570_v10, %v2273_v27  ;;  %2290 = vadd.xlane.f32.xlu0 %v2289_v44 }
 0x903   : > { %v2283_v9 = vmul.f32 %v7595_v11, %v7595_v11 }
 0x905   : > { %v2267_v35 = vpop.xlane.xlu0 %2266  ;;  %v2292_v40 = vsel %vm582_vm1, %v2283_v9, 0.0 }
 0x906   : > { %v2274_v23 = vmul.f32 0.03125, %v2267_v35  ;;  %2293 = vadd.xlane.f32.xlu1 %v2292_v40 }
 0x908   : > { %v7601_v61 = vsub.f32 %v7574_v0, %v2274_v23 }
 0x90a   : > { %v2284_v32 = vmul.f32 %v7601_v61, %v7601_v61 }
 0x90c   : > { %v2295_v42 = vsel %vm582_vm1, %v2284_v32, 0.0 }
 0x90d   : > { %2296 = vadd.xlane.f32.xlu0 %v2295_v42 }
 0x926   : > { %v2270_v13 = vpop.xlane.xlu0 %2269 }
 0x927   : > { %v2275_v18 = vmul.f32 0.03125, %v2270_v13 }
 0x929   : > { %v7621_v15 = vsub.f32 %v7578_v4, %v2275_v18 }
 0x92b   : > { %v2285_v30 = vmul.f32 %v7621_v15, %v7621_v15 }
 0x92d   : > { %v2298_v6 = vsel %vm582_vm1, %v2285_v30, 0.0 }
 0x92e   : > { %2299 = vadd.xlane.f32.xlu1 %v2298_v6 }
 0x986   : > { %v2288_v20 = vpop.xlane.xlu1 %2287 }
 0x987   : > { %v2301_v8 = vmul.f32 0.03125, %v2288_v20  ;;  %v5987_v20 = vpack.c.bf16 %v2490_v37, %v2489_v12  ;;  %v2495_v12 = vsub.s32 7, %v6914_v49 }
 0x989   : > { %v2306_v5 = vadd.f32 1e-05, %v2301_v8  ;;  %v2491_v8 = vld [vmem:[%s8641_s8 + $0x70] sm:$0xff]  ;;  %v2496_v37 = vrot.slane %v7557_v54, %v2495_v12 }
 0x98b   : > { %6408 = vrsqrt.f32 %v2306_v5  ;;  %v2492_v5 = vld [vmem:[%s8641_s8 + $0x78] sm:$0xff] }
 0x98e   : > { %v2291_v14 = vpop.xlane.xlu0 %2290 }
 0x98f   : > { %v2302_v1 = vmul.f32 0.03125, %v2291_v14  ;;  %v5990_v14 = vpack.c.bf16 %v2492_v5, %v2491_v8 }
 0x991   : > { %v2307_v17 = vadd.f32 1e-05, %v2302_v1  ;;  %v2345_v1 = vsub.s32 6, %v6914_v49 }
 0x993   : > { %6410 = vrsqrt.f32 %v2307_v17  ;;  %v2294_v2 = vpop.xlane.xlu1 %2293  ;;  %v2346_v17 = vrot.slane %v7557_v54, %v2345_v1 }
 0x994   : > { %v2303_v7 = vmul.f32 0.03125, %v2294_v2 }
 0x995   : > { %v6409_v50 = vpop.eup %6408 }
 0x996   : > { %v2316_v60 = vmul.f32 %v6409_v50, %v7583_v38  ;;  %v2308_v22 = vadd.f32 1e-05, %v2303_v7 }
 0x998   : > { %v2325_v63 = vmul.f32 %v2324_v26, %v2316_v60  ;;  %6412 = vrsqrt.f32 %v2308_v22 }
 0x99a   : > { %v2297_v57 = vpop.xlane.xlu0 %2296  ;;  %v2334_v31 = vadd.f32 %v2333_v33, %v2325_v63 }
 0x99b   : > { %v2304_v27 = vmul.f32 0.03125, %v2297_v57 }
 0x99c   : > { %5470 = vmatmul.mubr.msk.f32.vlgmr.msra.gmra.mrb[56].mxu1 %vm582_vm1, %v2334_v31 }
 0x99d   : > { %v6411_v44 = vpop.eup %6410  ;;  %v2309_v9 = vadd.f32 1e-05, %v2304_v27  ;;  %5472 = vmatprep.mubr.msk.f32.mxu1 %vm6617_vm2, %v6618_v24 }
 0x99e   : > { %v2317_v35 = vmul.f32 %v6411_v44, %v7589_v46 }
 0x99f   : > { %6414 = vrsqrt.f32 %v2309_v9 }
 0x9a0   : > { %v2326_v38 = vmul.f32 %v2324_v26, %v2317_v35 }
 0x9a2   : > { %v6413_v40 = vpop.eup %6412  ;;  %v2335_v23 = vadd.f32 %v2333_v33, %v2326_v38 }
 0x9a3   : > { %v2318_v32 = vmul.f32 %v6413_v40, %v7595_v11 }
 0x9a4   : > { %5473 = vmatmul.mubr.msk.f32.gmra.mrb[58].mxu1 %vm582_vm1, %v2335_v23 }
 0x9a5   : > { %5475 = vmatprep.mubr.msk.f32.mxu1 %vm6617_vm2, %v6618_v24  ;;  %v2327_v42 = vmul.f32 %v2324_v26, %v2318_v32 }
 0x9a7   : > { %v2336_v47 = vadd.f32 %v2333_v33, %v2327_v42 }
 0x9a9   : > { %v6415_v43 = vpop.eup %6414  ;;  %5476 = vmatmul.mubr.msk.f32.gmra.mrb[60].mxu1 %vm582_vm1, %v2336_v47 }
 0x9aa   : > { %5478 = vmatprep.mubr.msk.f32.mxu1 %vm6617_vm2, %v6618_v24  ;;  %v2319_v46 = vmul.f32 %v6415_v43, %v7601_v61  ;;  %v2483_v61 = vld [vmem:[%s8641_s8 + $0x30] sm:$0xff] }
 0x9ab   : > { %v5978_v56 = vpack.c.bf16 %v2484_v36, %v2483_v61 }
 0x9ac   : > { %v2328_v19 = vmul.f32 %v2324_v26, %v2319_v46 }
 0x9ad   : > { %5979 = vmatpush3.bf16.msra.mxu0 %v5978_v56 }
 0x9ae   : > { %v2337_v29 = vadd.f32 %v2333_v33, %v2328_v19  ;;  %5980 = vmatprep.subr.bf16.mxu0 %v6616_v3 }
 0x9b0   : > { %5479 = vmatmul.mubr.msk.f32.gmra.mrb[62].mxu1 %vm582_vm1, %v2337_v29 }
 0x9b1   : > { %5481 = vmatprep.mubr.msk.f32.mxu1 %vm6617_vm2, %v6618_v24 }
 0x9bb   : > { %v2300_v11 = vpop.xlane.xlu1 %2299 }
 0x9bc   : > { %v2305_v16 = vmul.f32 0.03125, %v2300_v11 }
 0x9be   : > { %v2310_v55 = vadd.f32 1e-05, %v2305_v16 }
 0x9c0   : > { %6416 = vrsqrt.f32 %v2310_v55 }
 0x9ca   : > { %v6417_v13 = vpop.eup %6416 }
 0x9cb   : > { %v2320_v18 = vmul.f32 %v6417_v13, %v7621_v15  ;;  %v2485_v15 = vld [vmem:[%s8641_s8 + $0x40] sm:$0xff] }
 0x9cc   : > { %v5981_v52 = vpack.c.bf16 %v2486_v25, %v2485_v15 }
 0x9cd   : > { %v2329_v30 = vmul.f32 %v2324_v26, %v2320_v18 }
 0x9ce   : > { %5982 = vmatpush3.bf16.msra.mxu0 %v5981_v52 }
 0x9cf   : > { %v2338_v6 = vadd.f32 %v2333_v33, %v2329_v30  ;;  %5983 = vmatprep.subr.bf16.mxu0 %v6616_v3 }
 0x9d1   : > { %5482 = vmatmul.mubr.msk.f32.gmra.mrb[64].mxu1 %vm582_vm1, %v2338_v6 }
 0x9d2   : > { %5539 = vmatprep.mubr.msk.f32.mxu1 %vm6617_vm2, %v6618_v24  ;;  %5985 = vmatpush3.bf16.msra.mxu0 %v5984_v34 }
 0x9d3   : > { %5986 = vmatprep.subr.bf16.mxu0 %v6616_v3 }
 0x9d6   : > { %5988 = vmatpush3.bf16.msra.mxu0 %v5987_v20 }
 0x9d7   : > { %5989 = vmatprep.subr.bf16.mxu0 %v6616_v3 }
 0x9da   : > { %5991 = vmatpush3.bf16.msra.mxu0 %v5990_v14 }
 0x9db   : > { %6006 = vmatprep.subr.bf16.mxu0 %v6616_v3 }
 0xa6f   : > { %v2428_v2 = vpop.f32.mrb[56].mxu1 }
 0xa70   : > { %v2429_v26 = vadd.f32 %v2428_v2, %v2346_v17  ;;  %v5471_v7 = vpop.f32.mrb[57].mxu1 }
 0xa72   : > { %v2457_v50 = vmul.f32 0.70710677, %v2429_v26  ;;  %v2452_v9 = vmul.f32 0.5, %v2429_v26 }
 0xa74   : > { %6418 = verf.f32 %v2457_v50 }
 0xa77   : > { %v2433_v60 = vpop.f32.mrb[58].mxu1 }
 0xa78   : > { %v2434_v22 = vadd.f32 %v2433_v60, %v2346_v17  ;;  %v5474_v33 = vpop.f32.mrb[59].mxu1 }
 0xa7a   : > { %v2458_v63 = vmul.f32 0.70710677, %v2434_v22  ;;  %v2453_v46 = vmul.f32 0.5, %v2434_v22 }
 0xa7c   : > { %6420 = verf.f32 %v2458_v63  ;;  %v2438_v57 = vpop.f32.mrb[60].mxu1 }
 0xa7d   : > { %v2439_v31 = vadd.f32 %v2438_v57, %v2346_v17  ;;  %v5477_v27 = vpop.f32.mrb[61].mxu1 }
 0xa7e   : > { %v6419_v44 = vpop.eup %6418 }
 0xa7f   : > { %v2467_v35 = vadd.f32 1.0, %v6419_v44  ;;  %v2459_v38 = vmul.f32 0.70710677, %v2439_v31  ;;  %v2454_v16 = vmul.f32 0.5, %v2439_v31 }
 0xa81   : > { %v2472_v40 = vmul.f32 %v2467_v35, %v2452_v9  ;;  %6422 = verf.f32 %v2459_v38 }
 0xa83   : > { %v2443_v23 = vpop.f32.mrb[62].mxu1  ;;  %5517 = vmatmul.mubr.f32.vlgmr.msra.gmra.mrb[52].mxu0 %v2472_v40 }
 0xa84   : > { %v2444_v32 = vadd.f32 %v2443_v23, %v2346_v17  ;;  %v5480_v42 = vpop.f32.mrb[63].mxu1  ;;  %5519 = vmatprep.mubr.msk.f32.mxu0 %vm6617_vm2, %v6618_v24 }
 0xa86   : > { %v6421_v47 = vpop.eup %6420  ;;  %v2460_v43 = vmul.f32 0.70710677, %v2444_v32  ;;  %v2455_v30 = vmul.f32 0.5, %v2444_v32 }
 0xa87   : > { %v2468_v19 = vadd.f32 1.0, %v6421_v47 }
 0xa88   : > { %6424 = verf.f32 %v2460_v43 }
 0xa89   : > { %v2473_v29 = vmul.f32 %v2468_v19, %v2453_v46 }
 0xa8b   : > { %v6423_v11 = vpop.eup %6422  ;;  %5520 = vmatmul.mubr.f32.gmra.mrb[54].mxu0 %v2473_v29 }
 0xa8c   : > { %v2469_v55 = vadd.f32 1.0, %v6423_v11  ;;  %5522 = vmatprep.mubr.msk.f32.mxu0 %vm6617_vm2, %v6618_v24 }
 0xa8e   : > { %v2474_v13 = vmul.f32 %v2469_v55, %v2454_v16 }
 0xa90   : > { %5523 = vmatmul.mubr.f32.gmra.mrb[56].mxu0 %v2474_v13 }
 0xa91   : > { %5525 = vmatprep.mubr.msk.f32.mxu0 %vm6617_vm2, %v6618_v24 }
 0xa92   : > { %v6425_v18 = vpop.eup %6424 }
 0xa93   : > { %v2470_v6 = vadd.f32 1.0, %v6425_v18 }
 0xa95   : > { %v2475_v61 = vmul.f32 %v2470_v6, %v2455_v30 }
 0xa97   : > { %5526 = vmatmul.mubr.f32.gmra.mrb[58].mxu0 %v2475_v61 }
 0xa98   : > { %5528 = vmatprep.mubr.msk.f32.mxu0 %vm6617_vm2, %v6618_v24 }
 0xaa4   : > { %v2448_v36 = vpop.f32.mrb[64].mxu1 }
 0xaa5   : > { %v2449_v56 = vadd.f32 %v2448_v36, %v2346_v17  ;;  %v5483_v15 = vpop.f32.mrb[65].mxu1 }
 0xaa6   : > { %v4842_v15 = vld [vmem:[%s8638_s5 + $0x20] sm:$0xff] }
 0xaa7   : > { %v2461_v25 = vmul.f32 0.70710677, %v2449_v56  ;;  %v2456_v58 = vmul.f32 0.5, %v2449_v56 }
 0xaa9   : > { %6426 = verf.f32 %v2461_v25  ;;  %v4843_v25 = vld [vmem:[%s8638_s5 + $0x28] sm:$0xff] }
 0xab3   : > { %v6427_v52 = vpop.eup %6426 }
 0xab4   : > { %v2471_v59 = vadd.f32 1.0, %v6427_v52  ;;  %v5993_v52 = vpack.c.bf16 %v4843_v25, %v4842_v15 }
 0xab6   : > { %v2476_v34 = vmul.f32 %v2471_v59, %v2456_v58  ;;  %5994 = vmatpush3.bf16.msra.mxu1 %v5993_v52  ;;  %v4844_v58 = vld [vmem:[%s8638_s5 + $0x30] sm:$0xff]  ;;  %v4845_v59 = vld [vmem:[%s8638_s5 + $0x38] sm:$0xff] }
 0xab7   : > { %5995 = vmatprep.subr.bf16.mxu1 %v6616_v3 }
 0xab8   : > { %5529 = vmatmul.mubr.f32.gmra.mrb[60].mxu0 %v2476_v34  ;;  %v5996_v34 = vpack.c.bf16 %v4845_v59, %v4844_v58 }
 0xab9   : > { %5589 = vmatprep.mubr.msk.f32.mxu0 %vm6617_vm2, %v6618_v24 }
 0xaba   : > { %5997 = vmatpush3.bf16.msra.mxu1 %v5996_v34 }
 0xabb   : > { %5998 = vmatprep.subr.bf16.mxu1 %v6616_v3 }
 0xb56   : > { %v2563_v20 = vpop.f32.mrb[52].mxu0 }
 0xb57   : > { %v2564_v8 = vadd.f32 %v2563_v20, %v2496_v37  ;;  %v5518_v5 = vpop.f32.mrb[53].mxu0 }
 0xb59   : > { %v7729_v14 = vadd.f32 %v2564_v8, %v7562_v41 }
 0xb5b   : > { %v2594_v17 = vsel %vm582_vm1, %v7729_v14, 0.0 }
 0xb5c   : > { %2595 = vadd.xlane.f32.xlu0 %v2594_v17 }
 0xb5e   : > { %v2568_v2 = vpop.f32.mrb[54].mxu0 }
 0xb5f   : > { %v2569_v26 = vadd.f32 %v2568_v2, %v2496_v37  ;;  %v5521_v7 = vpop.f32.mrb[55].mxu0 }
 0xb61   : > { %v7734_v50 = vadd.f32 %v2569_v26, %v7566_v21 }
 0xb63   : > { %v2573_v60 = vpop.f32.mrb[56].mxu0  ;;  %v2597_v54 = vsel %vm582_vm1, %v7734_v50, 0.0 }
 0xb64   : > { %v2574_v22 = vadd.f32 %v2573_v60, %v2496_v37  ;;  %2598 = vadd.xlane.f32.xlu1 %v2597_v54  ;;  %v5524_v33 = vpop.f32.mrb[57].mxu0 }
 0xb66   : > { %v7739_v41 = vadd.f32 %v2574_v22, %v7570_v10  ;;  %v4841_v22 = vld [vmem:[%s8642_s9 + $0x8] sm:$0xff] }
 0xb67   : > { %v2685_v52 = vrot.slane %v4841_v22, %v697_v28 }
 0xb68   : > { %v2600_v63 = vsel %vm582_vm1, %v7739_v41, 0.0 }
 0xb69   : > { %2601 = vadd.xlane.f32.xlu0 %v2600_v63 }
 0xb6a   : > { %v2578_v57 = vpop.f32.mrb[58].mxu0 }
 0xb6b   : > { %v2579_v31 = vadd.f32 %v2578_v57, %v2496_v37  ;;  %v5527_v27 = vpop.f32.mrb[59].mxu0  ;;  %v2662_v57 = vrot.slane %v4841_v22, %v675_v51 }
 0xb6d   : > { %v7744_v21 = vadd.f32 %v2579_v31, %v7574_v0 }
 0xb6f   : > { %v2603_v44 = vsel %vm582_vm1, %v7744_v21, 0.0 }
 0xb70   : > { %2604 = vadd.xlane.f32.xlu1 %v2603_v44  ;;  %v2671_v44 = vrot.slane %v4841_v22, %v684_v53 }
 0xb8b   : > { %v2583_v9 = vpop.f32.mrb[60].mxu0 }
 0xb8c   : > { %v2584_v35 = vadd.f32 %v2583_v9, %v2496_v37  ;;  %v5530_v38 = vpop.f32.mrb[61].mxu0 }
 0xb8e   : > { %v7749_v10 = vadd.f32 %v2584_v35, %v7578_v4 }
 0xb90   : > { %v2606_v40 = vsel %vm582_vm1, %v7749_v10, 0.0 }
 0xb91   : > { %2607 = vadd.xlane.f32.xlu0 %v2606_v40 }
 0xbe9   : > { %v2596_v23 = vpop.xlane.xlu0 %2595 }
 0xbea   : > { %v2609_v32 = vmul.f32 0.03125, %v2596_v23 }
 0xbec   : > { %v2614_v42 = vsub.f32 %v7729_v14, %v2609_v32 }
 0xbee   : > { %v2619_v0 = vmul.f32 %v2614_v42, %v2614_v42 }
 0xbf0   : > { %v2624_v47 = vsel %vm582_vm1, %v2619_v0, 0.0 }
 0xbf1   : > { %v2599_v43 = vpop.xlane.xlu1 %2598  ;;  %2625 = vadd.xlane.f32.xlu1 %v2624_v47 }
 0xbf2   : > { %v2610_v46 = vmul.f32 0.03125, %v2599_v43 }
 0xbf4   : > { %v2615_v19 = vsub.f32 %v7734_v50, %v2610_v46 }
 0xbf6   : > { %v2602_v29 = vpop.xlane.xlu0 %2601  ;;  %v2620_v11 = vmul.f32 %v2615_v19, %v2615_v19 }
 0xbf7   : > { %v2611_v4 = vmul.f32 0.03125, %v2602_v29 }
 0xbf8   : > { %v2627_v16 = vsel %vm582_vm1, %v2620_v11, 0.0 }
 0xbf9   : > { %v2616_v55 = vsub.f32 %v7739_v41, %v2611_v4  ;;  %2628 = vadd.xlane.f32.xlu0 %v2627_v16 }
 0xbfb   : > { %v2621_v13 = vmul.f32 %v2616_v55, %v2616_v55 }
 0xbfd   : > { %v2605_v18 = vpop.xlane.xlu1 %2604  ;;  %v2630_v30 = vsel %vm582_vm1, %v2621_v13, 0.0 }
 0xbfe   : > { %v2612_v6 = vmul.f32 0.03125, %v2605_v18  ;;  %2631 = vadd.xlane.f32.xlu1 %v2630_v30 }
 0xc00   : > { %v2617_v61 = vsub.f32 %v7744_v21, %v2612_v6 }
 0xc02   : > { %v2622_v36 = vmul.f32 %v2617_v61, %v2617_v61 }
 0xc04   : > { %v2633_v56 = vsel %vm582_vm1, %v2622_v36, 0.0 }
 0xc05   : > { %2634 = vadd.xlane.f32.xlu0 %v2633_v56 }
 0xc1e   : > { %v2608_v37 = vpop.xlane.xlu0 %2607 }
 0xc1f   : > { %v2613_v20 = vmul.f32 0.03125, %v2608_v37 }
 0xc21   : > { %v2618_v8 = vsub.f32 %v7749_v10, %v2613_v20 }
 0xc23   : > { %v2623_v5 = vmul.f32 %v2618_v8, %v2618_v8 }
 0xc25   : > { %v2636_v17 = vsel %vm582_vm1, %v2623_v5, 0.0 }
 0xc26   : > { %2637 = vadd.xlane.f32.xlu1 %v2636_v17 }
 0xc7e   : > { %v2626_v2 = vpop.xlane.xlu1 %2625 }
 0xc7f   : > { %v2639_v26 = vmul.f32 0.03125, %v2626_v2 }
 0xc81   : > { %v2644_v7 = vadd.f32 1e-05, %v2639_v26 }
 0xc83   : > { %6428 = vrsqrt.f32 %v2644_v7 }
 0xc86   : > { %v2629_v60 = vpop.xlane.xlu0 %2628 }
 0xc87   : > { %v2640_v54 = vmul.f32 0.03125, %v2629_v60 }
 0xc89   : > { %v2645_v33 = vadd.f32 1e-05, %v2640_v54 }
 0xc8b   : > { %6430 = vrsqrt.f32 %v2645_v33  ;;  %v2632_v63 = vpop.xlane.xlu1 %2631 }
 0xc8c   : > { %v2641_v31 = vmul.f32 0.03125, %v2632_v63 }
 0xc8d   : > { %v6429_v27 = vpop.eup %6428 }
 0xc8e   : > { %v2654_v9 = vmul.f32 %v6429_v27, %v2614_v42  ;;  %v2646_v35 = vadd.f32 1e-05, %v2641_v31 }
 0xc90   : > { %v2663_v38 = vmul.f32 %v2662_v57, %v2654_v9  ;;  %6432 = vrsqrt.f32 %v2646_v35 }
 0xc92   : > { %v2635_v40 = vpop.xlane.xlu0 %2634  ;;  %v2672_v23 = vadd.f32 %v2671_v44, %v2663_v38 }
 0xc93   : > { %v2642_v32 = vmul.f32 0.03125, %v2635_v40 }
 0xc94   : > { %5540 = vmatmul.mubr.msk.f32.vlgmr.msra.gmra.mrb[66].mxu1 %vm582_vm1, %v2672_v23 }
 0xc95   : > { %v6431_v0 = vpop.eup %6430  ;;  %v2647_v47 = vadd.f32 1e-05, %v2642_v32  ;;  %5542 = vmatprep.mubr.msk.f32.mxu1 %vm6617_vm2, %v6618_v24 }
 0xc96   : > { %v2655_v51 = vmul.f32 %v6431_v0, %v2615_v19 }
 0xc97   : > { %6434 = vrsqrt.f32 %v2647_v47 }
 0xc98   : > { %v2664_v43 = vmul.f32 %v2662_v57, %v2655_v51 }
 0xc9a   : > { %v6433_v46 = vpop.eup %6432  ;;  %v2673_v29 = vadd.f32 %v2671_v44, %v2664_v43 }
 0xc9b   : > { %v2656_v53 = vmul.f32 %v6433_v46, %v2616_v55 }
 0xc9c   : > { %5543 = vmatmul.mubr.msk.f32.gmra.mrb[68].mxu1 %vm582_vm1, %v2673_v29 }
 0xc9d   : > { %5545 = vmatprep.mubr.msk.f32.mxu1 %vm6617_vm2, %v6618_v24  ;;  %v2665_v42 = vmul.f32 %v2662_v57, %v2656_v53 }
 0xc9f   : > { %v2674_v11 = vadd.f32 %v2671_v44, %v2665_v42 }
 0xca1   : > { %v6435_v4 = vpop.eup %6434  ;;  %5546 = vmatmul.mubr.msk.f32.gmra.mrb[70].mxu1 %vm582_vm1, %v2674_v11 }
 0xca2   : > { %5548 = vmatprep.mubr.msk.f32.mxu1 %vm6617_vm2, %v6618_v24  ;;  %v2657_v16 = vmul.f32 %v6435_v4, %v2617_v61 }
 0xca4   : > { %v2666_v19 = vmul.f32 %v2662_v57, %v2657_v16 }
 0xca6   : > { %v2675_v13 = vadd.f32 %v2671_v44, %v2666_v19 }
 0xca8   : > { %5549 = vmatmul.mubr.msk.f32.gmra.mrb[72].mxu1 %vm582_vm1, %v2675_v13 }
 0xca9   : > { %5551 = vmatprep.mubr.msk.f32.mxu1 %vm6617_vm2, %v6618_v24 }
 0xcb3   : > { %v2638_v55 = vpop.xlane.xlu1 %2637 }
 0xcb4   : > { %v2643_v18 = vmul.f32 0.03125, %v2638_v55 }
 0xcb6   : > { %v2648_v30 = vadd.f32 1e-05, %v2643_v18 }
 0xcb8   : > { %6436 = vrsqrt.f32 %v2648_v30 }
 0xcc2   : > { %v6437_v6 = vpop.eup %6436 }
 0xcc3   : > { %v2658_v36 = vmul.f32 %v6437_v6, %v2618_v8 }
 0xcc5   : > { %v2667_v56 = vmul.f32 %v2662_v57, %v2658_v36 }
 0xcc7   : > { %v2676_v15 = vadd.f32 %v2671_v44, %v2667_v56 }
 0xcc9   : > { %5552 = vmatmul.mubr.msk.f32.gmra.mrb[74].mxu1 %vm582_vm1, %v2676_v15 }
 0xcca   : > { %5564 = vmatprep.mubr.msk.f32.mxu1 %vm6617_vm2, %v6618_v24 }
 0xd67   : > { %v2767_v61 = vpop.f32.mrb[66].mxu1 }
 0xd68   : > { %v5541_v25 = vpop.f32.mrb[67].mxu1  ;;  %v7801_v59 = vadd.f32 %v2767_v61, %v2685_v52 }
 0xd6f   : > { %v2772_v58 = vpop.f32.mrb[68].mxu1 }
 0xd70   : > { %v7803_v34 = vadd.f32 %v2772_v58, %v2685_v52  ;;  %v5544_v37 = vpop.f32.mrb[69].mxu1 }
 0xd72   : > { %v7807_v20 = vpack.i.bf16 %v7803_v34, %v7801_v59 }
 0xd74   : > { %6239 = vrot.lane.b32.xlu0 %v7807_v20, %s6619_s27  ;;  %v2777_v8 = vpop.f32.mrb[70].mxu1 }
 0xd75   : > { %v5547_v5 = vpop.f32.mrb[71].mxu1  ;;  %v7811_v2 = vadd.f32 %v2777_v8, %v2685_v52 }
 0xd7b   : > { %v2782_v17 = vpop.f32.mrb[72].mxu1 }
 0xd7c   : > { %v7813_v26 = vadd.f32 %v2782_v17, %v2685_v52  ;;  %v5550_v28 = vpop.f32.mrb[73].mxu1 }
 0xd7e   : > { %v7817_v7 = vpack.i.bf16 %v7813_v26, %v7811_v2 }
 0xd80   : > { %6254 = vrot.lane.b32.xlu0 %v7817_v7, %s6620_s14  ;;  %6244 = vrot.lane.b32.xlu1 %v7817_v7, %s6619_s27 }
 0xd84   : > { %6259 = vrot.lane.b32.xlu0 %v7807_v20, %s8681_s15 }
 0xd88   : > { %3103 = vrot.lane.b32.xlu0 %v7803_v34, %s8682_s24 }
 0xd8c   : > { %3105 = vrot.lane.b32.xlu0 %v7811_v2, %s8682_s24 }
 0xd9c   : > { %v2787_v60 = vpop.f32.mrb[74].mxu1 }
 0xd9d   : > { %v7829_v54 = vadd.f32 %v2787_v60, %v2685_v52  ;;  %v5553_v22 = vpop.f32.mrb[75].mxu1 }
 0xd9f   : > { %3109 = vrot.lane.b32.xlu0 %v7829_v54, %s8682_s24  ;;  %2804 = vrot.lane.b32.xlu1 %v7829_v54, %s6619_s27  ;;  %s8685_s27 = smov 104  }
 0xda3   : > { %6269 = vrot.lane.b32.xlu0 %v7807_v20, %s8683_s17  ;;  %6249 = vrot.lane.b32.xlu1 %v7807_v20, %s6620_s14 }
 0xda7   : > { %3418 = vrot.lane.b32.xlu0 %v7803_v34, %s8684_s20  ;;  %3119 = vrot.lane.b32.xlu1 %v7829_v54, %s6620_s14  ;;  %s8687_s14 = smov 56  }
 0xdab   : > { %3420 = vrot.lane.b32.xlu0 %v7811_v2, %s8684_s20  ;;  %3101 = vrot.lane.b32.xlu1 %v7801_v59, %s8682_s24 }
 0xdaf   : > { %3424 = vrot.lane.b32.xlu0 %v7829_v54, %s8684_s20  ;;  %6264 = vrot.lane.b32.xlu1 %v7817_v7, %s8681_s15 }
 0xdb3   : > { %3731 = vrot.lane.b32.xlu0 %v7801_v59, %s8685_s27  ;;  %3107 = vrot.lane.b32.xlu1 %v7813_v26, %s8682_s24  ;;  %s4950_s24 = sshll.u32 %s6725_s29, 7  ;;  %s6633_s29 = smov [#allocation3]  }
 0xdb4   : > { %s8591_s22 = scalar_lea.hbm %s8646_s13, %s4950_s24 }
 0xdb7   : > { %6279 = vrot.lane.b32.xlu0 %v7807_v20, %s8686_s21  ;;  %3434 = vrot.lane.b32.xlu1 %v7829_v54, %s8681_s15 }
 0xdbb   : > { %6294 = vrot.lane.b32.xlu0 %v7817_v7, %s8687_s14  ;;  %3416 = vrot.lane.b32.xlu1 %v7801_v59, %s8684_s20 }
 0xdbf   : > { %2989 = vrot.lane.b32.xlu0 %v7829_v54, %s8686_s21  ;;  %6274 = vrot.lane.b32.xlu1 %v7817_v7, %s8683_s17 }
 0xdc3   : > { %3422 = vrot.lane.b32.xlu1 %v7813_v26, %s8684_s20 }
 0xdc7   : > { %3749 = vrot.lane.b32.xlu1 %v7829_v54, %s8683_s17 }
 0xdcb   : > { %6284 = vrot.lane.b32.xlu1 %v7817_v7, %s8686_s21 }
 0xdcf   : > { %6289 = vrot.lane.b32.xlu1 %v7807_v20, %s8687_s14 }
 0xde6   : > { %v6240_v33 = vpop.permute.xlu0 %6239 }
 0xde7   : > { %v6242_v63 = vunpack.i.h.bf16 %v6240_v33  ;;  %v6241_v57 = vunpack.i.l.bf16 %v6240_v33 }
 0xde9   : > { %v5999_v31 = vpack.c.bf16 %v6242_v63, %v6241_v57 }
 0xdeb   : > { %6001 = vmatpush3.bf16.xpose.msk.msra.mxu1 %vm7031_vm4, %v5999_v31 }
 0xdec   : > { %6002 = vmatprep.subr.bf16.mxu1 %v6616_v3 }
 0xdf2   : > { %v6245_v27 = vpop.permute.xlu1 %6244  ;;  %v6255_v38 = vpop.permute.xlu0 %6254 }
 0xdf3   : > { %v6247_v44 = vunpack.i.h.bf16 %v6245_v27  ;;  %v6246_v9 = vunpack.i.l.bf16 %v6245_v27  ;;  %v6257_v4 = vunpack.i.h.bf16 %v6255_v38  ;;  %v6256_v16 = vunpack.i.l.bf16 %v6255_v38 }
 0xdf5   : > { %v6003_v35 = vpack.c.bf16 %v6247_v44, %v6246_v9  ;;  %v6017_v55 = vpack.c.bf16 %v6257_v4, %v6256_v16  ;;  %v7997_v4 = vld [vmem:[%s8637_s4 + $0x8] sm:$0xff] }
 0xdf6   : > { %v6260_v40 = vpop.permute.xlu0 %6259 }
 0xdf7   : > { %6005 = vmatpush3.bf16.xpose.msk.msra.mxu1 %vm7031_vm4, %v6003_v35  ;;  %v6262_v56 = vunpack.i.h.bf16 %v6260_v40  ;;  %v6261_v15 = vunpack.i.l.bf16 %v6260_v40 }
 0xdf8   : > { %5562 = vmatprep.subr.mxu1 %v6618_v24 }
 0xdfa   : > { %v3104_v23 = vpop.permute.xlu0 %3103 }
 0xdfe   : > { %v3106_v32 = vpop.permute.xlu0 %3105 }
 0xe11   : > { %v7881_v0 = vpop.permute.xlu0 %3109  ;;  %v2805_v47 = vpop.permute.xlu1 %2804 }
 0xe12   : > { %5563 = vmatpush3.xpose.msk.msra.mxu1 %vm819_vm3, %v2805_v47 }
 0xe13   : > { %6012 = vmatprep.subr.bf16.mxu1 %v6616_v3 }
 0xe15   : > { %v7885_v51 = vpop.permute.xlu0 %6269  ;;  %5565 = vmatmul.mubr.msk.f32.vlgmr.msra.gmra.mrb[76].mxu1 %vm819_vm3, %v7801_v59  ;;  %v6250_v43 = vpop.permute.xlu1 %6249  ;;  %v6027_v59 = vpack.c.bf16 %v6262_v56, %v6261_v15 }
 0xe16   : > { %v6252_v46 = vunpack.i.h.bf16 %v6250_v43  ;;  %v6251_v29 = vunpack.i.l.bf16 %v6250_v43  ;;  %5567 = vmatprep.mubr.msk.f32.mxu1 %vm6617_vm2, %v6618_v24  ;;  %v6272_v63 = vunpack.i.h.bf16 %v7885_v51  ;;  %v6271_v57 = vunpack.i.l.bf16 %v7885_v51  ;;  %v7987_v43 = vld [vmem:[%s8637_s4] sm:$0xff] }
 0xe18   : > { %v6013_v53 = vpack.c.bf16 %v6252_v46, %v6251_v29  ;;  %v6041_v35 = vpack.c.bf16 %v6272_v63, %v6271_v57 }
 0xe19   : > { %v7891_v42 = vpop.permute.xlu0 %3418  ;;  %5568 = vmatmul.mubr.msk.f32.gmra.mrb[78].mxu1 %vm819_vm3, %v7803_v34  ;;  %v3120_v11 = vpop.permute.xlu1 %3119 }
 0xe1a   : > { %6015 = vmatpush3.bf16.xpose.msk.msra.mxu1 %vm7031_vm4, %v6013_v53  ;;  %5570 = vmatprep.mubr.msk.f32.mxu1 %vm6617_vm2, %v6618_v24 }
 0xe1b   : > { %6016 = vmatprep.subr.bf16.mxu1 %v6616_v3 }
 0xe1d   : > { %v7900_v19 = vpop.permute.xlu0 %3420  ;;  %5571 = vmatmul.mubr.msk.f32.gmra.mrb[80].mxu1 %vm819_vm3, %v7811_v2  ;;  %v3102_v13 = vpop.permute.xlu1 %3101 }
 0xe1e   : > { %5573 = vmatprep.mubr.msk.f32.mxu1 %vm6617_vm2, %v6618_v24 }
 0xe21   : > { %v7906_v18 = vpop.permute.xlu0 %3424  ;;  %5574 = vmatmul.mubr.msk.f32.gmra.mrb[82].mxu1 %vm819_vm3, %v7813_v26  ;;  %v6265_v30 = vpop.permute.xlu1 %6264 }
 0xe22   : > { %6019 = vmatpush3.bf16.xpose.msk.msra.mxu1 %vm7031_vm4, %v6017_v55  ;;  %5576 = vmatprep.mubr.msk.f32.mxu1 %vm6617_vm2, %v6618_v24  ;;  %v6267_v5 = vunpack.i.h.bf16 %v6265_v30  ;;  %v6266_v17 = vunpack.i.l.bf16 %v6265_v30  ;;  %v8007_v30 = vld [vmem:[%s8637_s4 + $0x10] sm:$0xff] }
 0xe23   : > { %5612 = vmatprep.subr.mxu1 %v6618_v24 }
 0xe24   : > { %v6031_v60 = vpack.c.bf16 %v6267_v5, %v6266_v17  ;;  %v8027_v5 = vld [vmem:[%s8637_s4 + $0x20] sm:$0xff] }
 0xe25   : > { %v7915_v6 = vpop.permute.xlu0 %3731  ;;  %5577 = vmatmul.mubr.msk.f32.gmra.mrb[84].mxu1 %vm819_vm3, %v7829_v54  ;;  %v3108_v36 = vpop.permute.xlu1 %3107 }
 0xe26   : > { %5614 = vmatprep.mubr.msk.f32.mxu1 %vm6617_vm2, %v6618_v24 }
 0xe29   : > { %v6280_v61 = vpop.permute.xlu0 %6279  ;;  %v3435_v25 = vpop.permute.xlu1 %3434 }
 0xe2a   : > { %v6282_v52 = vunpack.i.h.bf16 %v6280_v61  ;;  %v6281_v58 = vunpack.i.l.bf16 %v6280_v61  ;;  %5613 = vmatpush3.xpose.msk.msra.mxu1 %vm819_vm3, %v3120_v11 }
 0xe2b   : > { %6026 = vmatprep.subr.bf16.mxu1 %v6616_v3 }
 0xe2c   : > { %v6007_v37 = vpack.c.bf16 %v6282_v52, %v6281_v58 }
 0xe2d   : > { %v3417_v8 = vpop.permute.xlu1 %3416  ;;  %5615 = vmatmul.mubr.msk.f32.vlgmr.msra.gmra.mrb[86].mxu1 %vm819_vm3, %v3102_v13  ;;  %v7949_v9 = vpop.permute.xlu0 %6294 }
 0xe2e   : > { %6008 = vmatpush3.bf16.msra.mxu0 %v6007_v37  ;;  %6029 = vmatpush3.bf16.xpose.msk.msra.mxu1 %vm7031_vm4, %v6027_v59 }
 0xe2f   : > { %5617 = vmatprep.mubr.msk.f32.mxu1 %vm6617_vm2, %v6618_v24  ;;  %6030 = vmatprep.subr.bf16.mxu1 %v6616_v3 }
 0xe30   : > { %6009 = vmatprep.subr.bf16.mxu0 %v6616_v3 }
 0xe31   : > { %v6275_v28 = vpop.permute.xlu1 %6274  ;;  %5618 = vmatmul.mubr.msk.f32.gmra.mrb[88].mxu1 %vm819_vm3, %v3104_v23 }
 0xe32   : > { %5620 = vmatprep.mubr.msk.f32.mxu1 %vm6617_vm2, %v6618_v24  ;;  %v6277_v40 = vunpack.i.h.bf16 %v6275_v28  ;;  %v6276_v23 = vunpack.i.l.bf16 %v6275_v28 }
 0xe35   : > { %v3423_v22 = vpop.permute.xlu1 %3422  ;;  %5621 = vmatmul.mubr.msk.f32.gmra.mrb[90].mxu1 %vm819_vm3, %v3106_v32  ;;  %v2990_v32 = vpop.permute.xlu0 %2989 }
 0xe36   : > { %6033 = vmatpush3.bf16.xpose.msk.msra.mxu1 %vm7031_vm4, %v6031_v60  ;;  %5623 = vmatprep.mubr.msk.f32.mxu1 %vm6617_vm2, %v6618_v24 }
 0xe37   : > { %5662 = vmatprep.subr.mxu1 %v6618_v24 }
 0xe39   : > { %v3750_v33 = vpop.permute.xlu1 %3749  ;;  %5624 = vmatmul.mubr.msk.f32.gmra.mrb[92].mxu1 %vm819_vm3, %v3108_v36 }
 0xe3a   : > { %5626 = vmatprep.mubr.msk.f32.mxu1 %vm6617_vm2, %v6618_v24 }
 0xe3d   : > { %v6285_v31 = vpop.permute.xlu1 %6284  ;;  %5627 = vmatmul.mubr.msk.f32.gmra.mrb[94].mxu1 %vm819_vm3, %v7881_v0  ;;  %v6045_v0 = vpack.c.bf16 %v6277_v40, %v6276_v23 }
 0xe3e   : > { %v6287_v27 = vunpack.i.h.bf16 %v6285_v31  ;;  %v6286_v44 = vunpack.i.l.bf16 %v6285_v31  ;;  %5663 = vmatpush3.xpose.msk.msra.mxu1 %vm819_vm3, %v3435_v25  ;;  %5664 = vmatprep.mubr.msk.f32.mxu1 %vm6617_vm2, %v6618_v24  ;;  %v8017_v25 = vld [vmem:[%s8637_s4 + $0x18] sm:$0xff] }
 0xe3f   : > { %6040 = vmatprep.subr.bf16.mxu1 %v6616_v3 }
 0xe40   : > { %v6010_v38 = vpack.c.bf16 %v6287_v27, %v6286_v44 }
 0xe41   : > { %5665 = vmatmul.mubr.msk.f32.vlgmr.msra.gmra.mrb[96].mxu1 %vm819_vm3, %v3417_v8 }
 0xe42   : > { %6011 = vmatpush3.bf16.msra.mxu0 %v6010_v38  ;;  %6043 = vmatpush3.bf16.xpose.msk.msra.mxu1 %vm7031_vm4, %v6041_v35 }
 0xe43   : > { %5667 = vmatprep.mubr.msk.f32.mxu1 %vm6617_vm2, %v6618_v24  ;;  %5587 = vmatprep.subr.mxu0 %v6618_v24 }
 0xe44   : > { %6044 = vmatprep.subr.bf16.mxu1 %v6616_v3 }
 0xe45   : > { %5668 = vmatmul.mubr.msk.f32.gmra.mrb[98].mxu1 %vm819_vm3, %v7891_v42 }
 0xe46   : > { %5588 = vmatpush3.msra.mxu0 %v2990_v32  ;;  %5670 = vmatprep.mubr.msk.f32.mxu1 %vm6617_vm2, %v6618_v24 }
 0xe47   : > { %6020 = vmatprep.subr.bf16.mxu0 %v6616_v3 }
 0xe49   : > { %5671 = vmatmul.mubr.msk.f32.gmra.mrb[100].mxu1 %vm819_vm3, %v7900_v19 }
 0xe4a   : > { %6047 = vmatpush3.bf16.xpose.msk.msra.mxu1 %vm7031_vm4, %v6045_v0  ;;  %5673 = vmatprep.mubr.msk.f32.mxu1 %vm6617_vm2, %v6618_v24 }
 0xe4b   : > { %5712 = vmatprep.subr.mxu1 %v6618_v24 }
 0xe4d   : > { %5674 = vmatmul.mubr.msk.f32.gmra.mrb[102].mxu1 %vm819_vm3, %v3423_v22 }
 0xe4e   : > { %5676 = vmatprep.mubr.msk.f32.mxu1 %vm6617_vm2, %v6618_v24 }
 0xe51   : > { %5677 = vmatmul.mubr.msk.f32.gmra.mrb[104].mxu1 %vm819_vm3, %v7906_v18 }
 0xe52   : > { %5713 = vmatpush3.xpose.msk.msra.mxu1 %vm819_vm3, %v3750_v33  ;;  %5714 = vmatprep.mubr.msk.f32.mxu1 %vm6617_vm2, %v6618_v24 }
 0xe53   : > { %6054 = vmatprep.subr.bf16.mxu1 %v6616_v3 }
 0xe55   : > { %5715 = vmatmul.mubr.msk.f32.vlgmr.msra.gmra.mrb[106].mxu1 %vm819_vm3, %v7915_v6 }
 0xe56   : > { %5717 = vmatprep.mubr.msk.f32.mxu1 %vm6617_vm2, %v6618_v24 }
 0xee8   : > { %v2892_v48 = vpop.f32.mrb[76].mxu1 }
 0xee9   : > { %v2916_v47 = vmul.f32 0.35355338, %v2892_v48  ;;  %v5566_v51 = vpop.f32.mrb[77].mxu1 }
 0xeeb   : > { %v7990_v46 = vadd.f32 %v7987_v43, %v2916_v47 }
 0xeec   : > { %v2897_v29 = vpop.f32.mrb[78].mxu1 }
 0xeed   : > { %v2917_v53 = vmul.f32 0.35355338, %v2897_v29  ;;  %v5569_v42 = vpop.f32.mrb[79].mxu1  ;;  %v2926_v11 = vsel %vm940_vm5, %v7990_v46, -inf }
 0xeee   : > { %2927 = vmax.xlane.f32.xlu1 %v2926_v11 }
 0xeef   : > { %v8000_v16 = vadd.f32 %v7997_v4, %v2917_v53 }
 0xef0   : > { %v2902_v19 = vpop.f32.mrb[80].mxu1 }
 0xef1   : > { %v2918_v13 = vmul.f32 0.35355338, %v2902_v19  ;;  %v5572_v55 = vpop.f32.mrb[81].mxu1  ;;  %v2929_v18 = vsel %vm940_vm5, %v8000_v16, -inf }
 0xef2   : > { %2930 = vmax.xlane.f32.xlu0 %v2929_v18 }
 0xef3   : > { %v8010_v6 = vadd.f32 %v8007_v30, %v2918_v13 }
 0xef4   : > { %v2907_v36 = vpop.f32.mrb[82].mxu1 }
 0xef5   : > { %v2919_v56 = vmul.f32 0.35355338, %v2907_v36  ;;  %v5575_v15 = vpop.f32.mrb[83].mxu1  ;;  %v2932_v61 = vsel %vm940_vm5, %v8010_v6, -inf }
 0xef6   : > { %2933 = vmax.xlane.f32.xlu0 %v2932_v61 }
 0xef7   : > { %v8020_v52 = vadd.f32 %v8017_v25, %v2919_v56 }
 0xef8   : > { %v2912_v58 = vpop.f32.mrb[84].mxu1 }
 0xef9   : > { %v2920_v59 = vmul.f32 0.35355338, %v2912_v58  ;;  %v5578_v37 = vpop.f32.mrb[85].mxu1  ;;  %v2935_v8 = vsel %vm940_vm5, %v8020_v52, -inf }
 0xefa   : > { %2936 = vmax.xlane.f32.xlu0 %v2935_v8 }
 0xefb   : > { %v8030_v17 = vadd.f32 %v8027_v5, %v2920_v59 }
 0xefd   : > { %v2938_v28 = vsel %vm940_vm5, %v8030_v17, -inf }
 0xefe   : > { %2939 = vmax.xlane.f32.xlu1 %v2938_v28 }
 0xf00   : > { %v3207_v60 = vpop.f32.mrb[86].mxu1 }
 0xf01   : > { %v3231_v22 = vmul.f32 0.35355338, %v3207_v60  ;;  %v5616_v33 = vpop.f32.mrb[87].mxu1 }
 0xf03   : > { %v8035_v63 = vadd.f32 %v7987_v43, %v3231_v22 }
 0xf04   : > { %v3212_v57 = vpop.f32.mrb[88].mxu1 }
 0xf05   : > { %v3232_v31 = vmul.f32 0.35355338, %v3212_v57  ;;  %v5619_v27 = vpop.f32.mrb[89].mxu1  ;;  %v3241_v44 = vsel %vm940_vm5, %v8035_v63, -inf }
 0xf06   : > { %3242 = vmax.xlane.f32.xlu0 %v3241_v44 }
 0xf07   : > { %v8040_v35 = vadd.f32 %v7997_v4, %v3232_v31 }
 0xf08   : > { %v3217_v38 = vpop.f32.mrb[90].mxu1 }
 0xf09   : > { %v3233_v40 = vmul.f32 0.35355338, %v3217_v38  ;;  %v5622_v23 = vpop.f32.mrb[91].mxu1  ;;  %v3244_v32 = vsel %vm940_vm5, %v8040_v35, -inf }
 0xf0a   : > { %3245 = vmax.xlane.f32.xlu1 %v3244_v32 }
 0xf0b   : > { %v8045_v0 = vadd.f32 %v8007_v30, %v3233_v40 }
 0xf0c   : > { %v3222_v48 = vpop.f32.mrb[92].mxu1 }
 0xf0d   : > { %v3234_v47 = vmul.f32 0.35355338, %v3222_v48  ;;  %v5625_v51 = vpop.f32.mrb[93].mxu1  ;;  %v3247_v29 = vsel %vm940_vm5, %v8045_v0, -inf }
 0xf0e   : > { %3248 = vmax.xlane.f32.xlu0 %v3247_v29 }
 0xf0f   : > { %v8050_v53 = vadd.f32 %v8017_v25, %v3234_v47 }
 0xf10   : > { %v3227_v42 = vpop.f32.mrb[94].mxu1 }
 0xf11   : > { %v3235_v11 = vmul.f32 0.35355338, %v3227_v42  ;;  %v5628_v19 = vpop.f32.mrb[95].mxu1  ;;  %v3250_v13 = vsel %vm940_vm5, %v8050_v53, -inf }
 0xf12   : > { %3251 = vmax.xlane.f32.xlu1 %v3250_v13 }
 0xf13   : > { %v8055_v55 = vadd.f32 %v8027_v5, %v3235_v11 }
 0xf14   : > { %v3522_v18 = vpop.f32.mrb[96].mxu1 }
 0xf15   : > { %v3546_v36 = vmul.f32 0.35355338, %v3522_v18  ;;  %v5666_v56 = vpop.f32.mrb[97].mxu1  ;;  %v3253_v15 = vsel %vm940_vm5, %v8055_v55, -inf }
 0xf16   : > { %3254 = vmax.xlane.f32.xlu0 %v3253_v15  ;;  %v8093_v56 = vpop.permute.xlu1 %6289 }
 0xf17   : > { %v8060_v61 = vadd.f32 %v7987_v43, %v3546_v36 }
 0xf18   : > { %v3527_v58 = vpop.f32.mrb[98].mxu1 }
 0xf19   : > { %v3547_v59 = vmul.f32 0.35355338, %v3527_v58  ;;  %v5669_v37 = vpop.f32.mrb[99].mxu1  ;;  %v3556_v8 = vsel %vm940_vm5, %v8060_v61, -inf }
 0xf1a   : > { %3557 = vmax.xlane.f32.xlu1 %v3556_v8 }
 0xf1b   : > { %v8065_v28 = vadd.f32 %v7997_v4, %v3547_v59 }
 0xf1c   : > { %v3532_v60 = vpop.f32.mrb[100].mxu1 }
 0xf1d   : > { %v3548_v22 = vmul.f32 0.35355338, %v3532_v60  ;;  %v5672_v33 = vpop.f32.mrb[101].mxu1  ;;  %v3559_v57 = vsel %vm940_vm5, %v8065_v28, -inf }
 0xf1e   : > { %3560 = vmax.xlane.f32.xlu0 %v3559_v57 }
 0xf1f   : > { %v8070_v31 = vadd.f32 %v8007_v30, %v3548_v22 }
 0xf20   : > { %v3537_v27 = vpop.f32.mrb[102].mxu1 }
 0xf21   : > { %v3549_v44 = vmul.f32 0.35355338, %v3537_v27  ;;  %v5675_v38 = vpop.f32.mrb[103].mxu1  ;;  %v3562_v40 = vsel %vm940_vm5, %v8070_v31, -inf }
 0xf22   : > { %3563 = vmax.xlane.f32.xlu1 %v3562_v40 }
 0xf23   : > { %v8075_v23 = vadd.f32 %v8017_v25, %v3549_v44 }
 0xf24   : > { %v3542_v32 = vpop.f32.mrb[104].mxu1 }
 0xf25   : > { %v3550_v48 = vmul.f32 0.35355338, %v3542_v32  ;;  %v5678_v47 = vpop.f32.mrb[105].mxu1  ;;  %v3565_v51 = vsel %vm940_vm5, %v8075_v23, -inf }
 0xf26   : > { %3566 = vmax.xlane.f32.xlu0 %v3565_v51 }
 0xf27   : > { %v8080_v29 = vadd.f32 %v8027_v5, %v3550_v48 }
 0xf28   : > { %v3837_v42 = vpop.f32.mrb[106].mxu1 }
 0xf29   : > { %v3861_v11 = vmul.f32 0.35355338, %v3837_v42  ;;  %v5716_v19 = vpop.f32.mrb[107].mxu1  ;;  %v3568_v13 = vsel %vm940_vm5, %v8080_v29, -inf }
 0xf2a   : > { %3569 = vmax.xlane.f32.xlu1 %v3568_v13 }
 0xf2b   : > { %v8085_v18 = vadd.f32 %v7987_v43, %v3861_v11 }
 0xf2d   : > { %v3871_v36 = vsel %vm940_vm5, %v8085_v18, -inf }
 0xf2e   : > { %3872 = vmax.xlane.f32.xlu0 %v3871_v36 }
 0xf3b   : > { %6299 = vrot.lane.b32.xlu1 %v7807_v20, %s8688_s30 }
 0xf44   : > { %3304 = vrot.lane.b32.xlu0 %v7829_v54, %s8687_s14  ;;  %s8689_s14 = smov 40  }
 0xf7b   : > { %v2928_v15 = vpop.xlane.xlu1 %2927 }
 0xf7c   : > { %v2941_v58 = vsub.f32 %v7990_v46, %v2928_v15 }
 0xf7e   : > { %v2946_v59 = vmul.f32 1.442695, %v2941_v58 }
 0xf7f   : > { %v2931_v37 = vpop.xlane.xlu0 %2930 }
 0xf80   : > { %6438 = vpow2.f32 %v2946_v59  ;;  %v2942_v43 = vsub.f32 %v8000_v16, %v2931_v37 }
 0xf82   : > { %v2948_v8 = vmul.f32 1.442695, %v2942_v43 }
 0xf83   : > { %v2934_v60 = vpop.xlane.xlu0 %2933 }
 0xf84   : > { %6440 = vpow2.f32 %v2948_v8  ;;  %v2943_v22 = vsub.f32 %v8010_v6, %v2934_v60 }
 0xf86   : > { %v2950_v33 = vmul.f32 1.442695, %v2943_v22 }
 0xf87   : > { %v2937_v57 = vpop.xlane.xlu0 %2936 }
 0xf88   : > { %6442 = vpow2.f32 %v2950_v33  ;;  %v2944_v27 = vsub.f32 %v8020_v52, %v2937_v57 }
 0xf8a   : > { %v8099_v44 = vpop.eup %6438  ;;  %v2952_v38 = vmul.f32 1.442695, %v2944_v27 }
 0xf8b   : > { %v2940_v40 = vpop.xlane.xlu1 %2939  ;;  %v2956_v46 = vsel %vm940_vm5, %v8099_v44, 0.0 }
 0xf8c   : > { %6444 = vpow2.f32 %v2952_v38  ;;  %v2945_v16 = vsub.f32 %v8030_v17, %v2940_v40  ;;  %2957 = vadd.xlane.f32.xlu1 %v2956_v46 }
 0xf8e   : > { %v8104_v32 = vpop.eup %6440  ;;  %v2954_v48 = vmul.f32 1.442695, %v2945_v16 }
 0xf8f   : > { %v2959_v6 = vsel %vm940_vm5, %v8104_v32, 0.0 }
 0xf90   : > { %6446 = vpow2.f32 %v2954_v48  ;;  %2960 = vadd.xlane.f32.xlu0 %v2959_v6 }
 0xf92   : > { %v8108_v52 = vpop.eup %6442 }
 0xf93   : > { %v3243_v47 = vpop.xlane.xlu0 %3242  ;;  %v2962_v51 = vsel %vm940_vm5, %v8108_v52, 0.0 }
 0xf94   : > { %v3256_v42 = vsub.f32 %v8035_v63, %v3243_v47  ;;  %2963 = vadd.xlane.f32.xlu1 %v2962_v51 }
 0xf96   : > { %v8113_v11 = vpop.eup %6444  ;;  %v3261_v17 = vmul.f32 1.442695, %v3256_v42 }
 0xf97   : > { %v3246_v19 = vpop.xlane.xlu1 %3245  ;;  %v2965_v13 = vsel %vm940_vm5, %v8113_v11, 0.0 }
 0xf98   : > { %6448 = vpow2.f32 %v3261_v17  ;;  %v3257_v36 = vsub.f32 %v8040_v35, %v3246_v19  ;;  %2966 = vadd.xlane.f32.xlu0 %v2965_v13 }
 0xf9a   : > { %v8118_v15 = vpop.eup %6446  ;;  %v3263_v58 = vmul.f32 1.442695, %v3257_v36 }
 0xf9b   : > { %v3249_v59 = vpop.xlane.xlu0 %3248  ;;  %v2968_v37 = vsel %vm940_vm5, %v8118_v15, 0.0 }
 0xf9c   : > { %6450 = vpow2.f32 %v3263_v58  ;;  %v3258_v63 = vsub.f32 %v8045_v0, %v3249_v59  ;;  %2969 = vadd.xlane.f32.xlu1 %v2968_v37 }
 0xf9e   : > { %v3265_v43 = vmul.f32 1.442695, %v3258_v63 }
 0xf9f   : > { %v3252_v8 = vpop.xlane.xlu1 %3251 }
 0xfa0   : > { %6452 = vpow2.f32 %v3265_v43  ;;  %v3259_v60 = vsub.f32 %v8050_v53, %v3252_v8 }
 0xfa2   : > { %v8124_v22 = vpop.eup %6448  ;;  %v3267_v35 = vmul.f32 1.442695, %v3259_v60 }
 0xfa3   : > { %v3255_v33 = vpop.xlane.xlu0 %3254  ;;  %v3271_v57 = vsel %vm940_vm5, %v8124_v22, 0.0 }
 0xfa4   : > { %6454 = vpow2.f32 %v3267_v35  ;;  %v3260_v27 = vsub.f32 %v8055_v55, %v3255_v33  ;;  %3272 = vadd.xlane.f32.xlu1 %v3271_v57 }
 0xfa6   : > { %v8129_v38 = vpop.eup %6450  ;;  %v3269_v0 = vmul.f32 1.442695, %v3260_v27 }
 0xfa7   : > { %v3558_v40 = vpop.xlane.xlu1 %3557  ;;  %v3274_v46 = vsel %vm940_vm5, %v8129_v38, 0.0 }
 0xfa8   : > { %6456 = vpow2.f32 %v3269_v0  ;;  %v3571_v53 = vsub.f32 %v8060_v61, %v3558_v40  ;;  %3275 = vadd.xlane.f32.xlu0 %v3274_v46 }
 0xfaa   : > { %v8134_v16 = vpop.eup %6452  ;;  %v3576_v48 = vmul.f32 1.442695, %v3571_v53 }
 0xfab   : > { %v3277_v6 = vsel %vm940_vm5, %v8134_v16, 0.0  ;;  %v3561_v19 = vpop.xlane.xlu0 %3560 }
 0xfac   : > { %6458 = vpow2.f32 %v3576_v48  ;;  %3278 = vadd.xlane.f32.xlu1 %v3277_v6 }
 0xfae   : > { %v8138_v55 = vpop.eup %6454 }
 0xfaf   : > { %v3280_v47 = vsel %vm940_vm5, %v8138_v55, 0.0  ;;  %v3564_v37 = vpop.xlane.xlu1 %3563 }
 0xfb0   : > { %3281 = vadd.xlane.f32.xlu1 %v3280_v47 }
 0xfb2   : > { %v8142_v51 = vpop.eup %6456 }
 0xfb3   : > { %v3283_v61 = vsel %vm940_vm5, %v8142_v51, 0.0  ;;  %v3567_v13 = vpop.xlane.xlu0 %3566 }
 0xfb4   : > { %3284 = vadd.xlane.f32.xlu1 %v3283_v61  ;;  %v6292_v61 = vunpack.i.h.bf16 %v8093_v56 }
 0xfb6   : > { %v8146_v42 = vpop.eup %6458 }
 0xfb7   : > { %v3586_v17 = vsel %vm940_vm5, %v8146_v42, 0.0  ;;  %v3570_v60 = vpop.xlane.xlu1 %3569 }
 0xfb8   : > { %3587 = vadd.xlane.f32.xlu0 %v3586_v17  ;;  %v3575_v35 = vsub.f32 %v8080_v29, %v3570_v60 }
 0xfbb   : > { %v3873_v36 = vpop.xlane.xlu0 %3872  ;;  %v6300_v46 = vpop.permute.xlu1 %6299 }
 0xfbc   : > { %v3886_v58 = vsub.f32 %v8085_v18, %v3873_v36  ;;  %v6297_v36 = vunpack.i.h.bf16 %v7949_v9 }
 0xfbe   : > { %v3891_v59 = vmul.f32 1.442695, %v3886_v58  ;;  %v6296_v58 = vunpack.i.l.bf16 %v7949_v9 }
 0xfbf   : > { %v3305_v53 = vpop.permute.xlu0 %3304 }
 0xfc0   : > { %6460 = vpow2.f32 %v3891_v59 }
 0xfc5   : > { %3619 = vrot.lane.b32.xlu1 %v7829_v54, %s8688_s30 }
 0xfc9   : > { %6309 = vrot.lane.b32.xlu1 %v7807_v20, %s8689_s14  ;;  %v3572_v20 = vsub.f32 %v8065_v28, %v3561_v19  ;;  %v3584_v28 = vmul.f32 1.442695, %v3575_v35 }
 0xfca   : > { %v8165_v43 = vpop.eup %6460 }
 0xfcb   : > { %v3578_v63 = vmul.f32 1.442695, %v3572_v20 }
 0xfcd   : > { %3733 = vrot.lane.b32.xlu1 %v7803_v34, %s8685_s27  ;;  %v3573_v34 = vsub.f32 %v8070_v31, %v3564_v37  ;;  %6462 = vpow2.f32 %v3578_v63 }
 0xfce   : > { %6304 = vrot.lane.b32.xlu0 %v7817_v7, %s8688_s30 }
 0xfcf   : > { %v3580_v8 = vmul.f32 1.442695, %v3573_v34 }
 0xfd1   : > { %6314 = vrot.lane.b32.xlu1 %v7817_v7, %s8689_s14  ;;  %v3574_v7 = vsub.f32 %v8075_v23, %v3567_v13  ;;  %6464 = vpow2.f32 %v3580_v8 }
 0xfd3   : > { %v3582_v18 = vmul.f32 1.442695, %v3574_v7 }
 0xfd5   : > { %3735 = vrot.lane.b32.xlu1 %v7811_v2, %s8685_s27  ;;  %v3901_v2 = vsel %vm940_vm5, %v8165_v43, 0.0  ;;  %6466 = vpow2.f32 %v3582_v18 }
 0xfd6   : > { %6468 = vpow2.f32 %v3584_v28 }
 0xfd7   : > { %v8171_v33 = vpop.eup %6462 }
 0xfd8   : > { %v3589_v31 = vsel %vm940_vm5, %v8171_v33, 0.0 }
 0xfdb   : > { %v8175_v57 = vpop.eup %6464 }
 0xfdc   : > { %v3592_v23 = vsel %vm940_vm5, %v8175_v57, 0.0 }
 0xfdf   : > { %v8179_v27 = vpop.eup %6466 }
 0xfe0   : > { %v3595_v29 = vsel %vm940_vm5, %v8179_v27, 0.0  ;;  %v8183_v0 = vpop.eup %6468 }
 0xfe1   : > { %v3598_v40 = vsel %vm940_vm5, %v8183_v0, 0.0 }
 0xfed   : > { %3902 = vadd.xlane.f32.xlu0 %v3901_v2  ;;  %v6301_v2 = vunpack.i.l.bf16 %v6300_v46 }
 0xff9   : > { %3590 = vadd.xlane.f32.xlu1 %v3589_v31 }
 0xffd   : > { %3593 = vadd.xlane.f32.xlu1 %v3592_v23 }
0x1001   : > { %3596 = vadd.xlane.f32.xlu1 %v3595_v29 }
0x1003   : > { %3737 = vrot.lane.b32.xlu0 %v7813_v26, %s8685_s27  ;;  %v6291_v26 = vunpack.i.l.bf16 %v8093_v56 }
0x1005   : > { %3599 = vadd.xlane.f32.xlu1 %v3598_v40  ;;  %v6021_v59 = vpack.c.bf16 %v6292_v61, %v6291_v26 }
0x1016   : > { %3934 = vrot.lane.b32.xlu1 %v7829_v54, %s8689_s14  ;;  %s8692_s14 = smov 24  }
0x1019   : > { %v2958_v48 = vpop.xlane.xlu1 %2957 }
0x101a   : > { %6470 = vrcp.f32 %v2958_v48  ;;  %3739 = vrot.lane.b32.xlu1 %v7829_v54, %s8685_s27  ;;  %s8690_s27 = smov 16  }
0x101d   : > { %v2961_v6 = vpop.xlane.xlu0 %2960 }
0x101e   : > { %6472 = vrcp.f32 %v2961_v6 }
0x1021   : > { %v2964_v47 = vpop.xlane.xlu1 %2963 }
0x1022   : > { %6474 = vrcp.f32 %v2964_v47 }
0x1024   : > { %v6471_v17 = vpop.eup %6470 }
0x1025   : > { %v2976_v19 = vmul.f32 %v6471_v17, %v8099_v44  ;;  %v2967_v13 = vpop.xlane.xlu0 %2966  ;;  %v6024_v44 = vpack.c.bf16 %v6297_v36, %v6296_v58 }
0x1026   : > { %6476 = vrcp.f32 %v2967_v13 }
0x1027   : > { %5590 = vmatmul.mubr.msk.f32.vlgmr.msra.gmra.mrb[62].mxu0 %vm940_vm5, %v2976_v19 }
0x1028   : > { %v6473_v54 = vpop.eup %6472  ;;  %6022 = vmatpush3.bf16.msra.mxu0 %v6021_v59  ;;  %5592 = vmatprep.mubr.msk.f32.mxu0 %vm6617_vm2, %v6618_v24 }
0x1029   : > { %v2970_v20 = vpop.xlane.xlu1 %2969  ;;  %6023 = vmatprep.subr.bf16.mxu0 %v6616_v3  ;;  %v2977_v56 = vmul.f32 %v6473_v54, %v8104_v32 }
0x102a   : > { %6478 = vrcp.f32 %v2970_v20 }
0x102b   : > { %5593 = vmatmul.mubr.msk.f32.gmra.mrb[64].mxu0 %vm940_vm5, %v2977_v56 }
0x102c   : > { %v6475_v37 = vpop.eup %6474  ;;  %6025 = vmatpush3.bf16.msra.mxu0 %v6024_v44  ;;  %5595 = vmatprep.mubr.msk.f32.mxu0 %vm6617_vm2, %v6618_v24 }
0x102d   : > { %5637 = vmatprep.subr.mxu0 %v6618_v24  ;;  %v2978_v9 = vmul.f32 %v6475_v37, %v8108_v52 }
0x102f   : > { %5596 = vmatmul.mubr.msk.f32.gmra.mrb[66].mxu0 %vm940_vm5, %v2978_v9 }
0x1030   : > { %v6477_v63 = vpop.eup %6476  ;;  %5638 = vmatpush3.msra.mxu0 %v3305_v53  ;;  %5598 = vmatprep.mubr.msk.f32.mxu0 %vm6617_vm2, %v6618_v24 }
0x1031   : > { %v3273_v32 = vpop.xlane.xlu1 %3272  ;;  %v2979_v34 = vmul.f32 %v6477_v63, %v8113_v11  ;;  %6034 = vmatprep.subr.bf16.mxu0 %v6616_v3  ;;  %v6302_v11 = vunpack.i.h.bf16 %v6300_v46 }
0x1032   : > { %6480 = vrcp.f32 %v3273_v32 }
0x1033   : > { %5599 = vmatmul.mubr.msk.f32.gmra.mrb[68].mxu0 %vm940_vm5, %v2979_v34  ;;  %v6035_v31 = vpack.c.bf16 %v6302_v11, %v6301_v2 }
0x1034   : > { %v6479_v8 = vpop.eup %6478  ;;  %5601 = vmatprep.mubr.msk.f32.mxu0 %vm6617_vm2, %v6618_v24 }
0x1035   : > { %v3276_v52 = vpop.xlane.xlu0 %3275  ;;  %v2980_v7 = vmul.f32 %v6479_v8, %v8118_v15 }
0x1036   : > { %6482 = vrcp.f32 %v3276_v52 }
0x1037   : > { %5602 = vmatmul.mubr.msk.f32.gmra.mrb[70].mxu0 %vm940_vm5, %v2980_v7 }
0x1038   : > { %5639 = vmatprep.mubr.msk.f32.mxu0 %vm6617_vm2, %v6618_v24 }
0x1039   : > { %v3279_v60 = vpop.xlane.xlu1 %3278 }
0x103a   : > { %6484 = vrcp.f32 %v3279_v60 }
0x103c   : > { %v6481_v18 = vpop.eup %6480 }
0x103d   : > { %v3291_v35 = vmul.f32 %v6481_v18, %v8124_v22  ;;  %v3282_v28 = vpop.xlane.xlu1 %3281 }
0x103e   : > { %6486 = vrcp.f32 %v3282_v28 }
0x103f   : > { %5640 = vmatmul.mubr.msk.f32.vlgmr.msra.gmra.mrb[72].mxu0 %vm940_vm5, %v3291_v35 }
0x1040   : > { %v6483_v23 = vpop.eup %6482  ;;  %6036 = vmatpush3.bf16.msra.mxu0 %v6035_v31  ;;  %5642 = vmatprep.mubr.msk.f32.mxu0 %vm6617_vm2, %v6618_v24 }
0x1041   : > { %v3285_v15 = vpop.xlane.xlu1 %3284  ;;  %v3292_v29 = vmul.f32 %v6483_v23, %v8129_v38  ;;  %6037 = vmatprep.subr.bf16.mxu0 %v6616_v3 }
0x1042   : > { %6488 = vrcp.f32 %v3285_v15 }
0x1043   : > { %5643 = vmatmul.mubr.msk.f32.gmra.mrb[74].mxu0 %vm940_vm5, %v3292_v29 }
0x1044   : > { %v6485_v40 = vpop.eup %6484  ;;  %5645 = vmatprep.mubr.msk.f32.mxu0 %vm6617_vm2, %v6618_v24 }
0x1045   : > { %v3620_v22 = vpop.permute.xlu1 %3619  ;;  %v3588_v46 = vpop.xlane.xlu0 %3587  ;;  %v3293_v53 = vmul.f32 %v6485_v40, %v8134_v16 }
0x1046   : > { %6490 = vrcp.f32 %v3588_v46 }
0x1047   : > { %5646 = vmatmul.mubr.msk.f32.gmra.mrb[76].mxu0 %vm940_vm5, %v3293_v53 }
0x1048   : > { %v6487_v48 = vpop.eup %6486  ;;  %5648 = vmatprep.mubr.msk.f32.mxu0 %vm6617_vm2, %v6618_v24 }
0x1049   : > { %v6310_v38 = vpop.permute.xlu1 %6309  ;;  %v6305_v6 = vpop.permute.xlu0 %6304  ;;  %v3294_v47 = vmul.f32 %v6487_v48, %v8138_v55 }
0x104a   : > { %v6307_v61 = vunpack.i.h.bf16 %v6305_v6  ;;  %v6306_v26 = vunpack.i.l.bf16 %v6305_v6  ;;  %v6312_v36 = vunpack.i.h.bf16 %v6310_v38  ;;  %v6311_v58 = vunpack.i.l.bf16 %v6310_v38 }
0x104b   : > { %5649 = vmatmul.mubr.msk.f32.gmra.mrb[78].mxu0 %vm940_vm5, %v3294_v47 }
0x104c   : > { %v6489_v17 = vpop.eup %6488  ;;  %v6038_v19 = vpack.c.bf16 %v6307_v61, %v6306_v26  ;;  %5651 = vmatprep.mubr.msk.f32.mxu0 %vm6617_vm2, %v6618_v24 }
0x104d   : > { %v3734_v16 = vpop.permute.xlu1 %3733  ;;  %v3295_v13 = vmul.f32 %v6489_v17, %v8142_v51  ;;  %v6049_v51 = vpack.c.bf16 %v6312_v36, %v6311_v58 }
0x104e   : > { %6039 = vmatpush3.bf16.msra.mxu0 %v6038_v19  ;;  %5718 = vmatmul.mubr.msk.f32.gmra.mrb[108].mxu1 %vm819_vm3, %v3734_v16 }
0x104f   : > { %5652 = vmatmul.mubr.msk.f32.gmra.mrb[80].mxu0 %vm940_vm5, %v3295_v13  ;;  %5687 = vmatprep.subr.mxu0 %v6618_v24 }
0x1050   : > { %v6491_v55 = vpop.eup %6490  ;;  %5689 = vmatprep.mubr.msk.f32.mxu0 %vm6617_vm2, %v6618_v24  ;;  %5720 = vmatprep.mubr.msk.f32.mxu1 %vm6617_vm2, %v6618_v24 }
0x1051   : > { %v3606_v59 = vmul.f32 %v6491_v55, %v8146_v42  ;;  %v6315_v54 = vpop.permute.xlu1 %6314 }
0x1052   : > { %v6317_v20 = vunpack.i.h.bf16 %v6315_v54  ;;  %v6316_v56 = vunpack.i.l.bf16 %v6315_v54  ;;  %5688 = vmatpush3.msra.mxu0 %v3620_v22 }
0x1053   : > { %5690 = vmatmul.mubr.msk.f32.vlgmr.msra.gmra.mrb[82].mxu0 %vm940_vm5, %v3606_v59  ;;  %6048 = vmatprep.subr.bf16.mxu0 %v6616_v3 }
0x1054   : > { %6050 = vmatpush3.bf16.msra.mxu0 %v6049_v51  ;;  %5692 = vmatprep.mubr.msk.f32.mxu0 %vm6617_vm2, %v6618_v24  ;;  %v6052_v37 = vpack.c.bf16 %v6317_v20, %v6316_v56 }
0x1055   : > { %v3736_v44 = vpop.permute.xlu1 %3735  ;;  %6051 = vmatprep.subr.bf16.mxu0 %v6616_v3 }
0x1056   : > { %5721 = vmatmul.mubr.msk.f32.gmra.mrb[110].mxu1 %vm819_vm3, %v3736_v44 }
0x1057   : > { %5723 = vmatprep.mubr.msk.f32.mxu1 %vm6617_vm2, %v6618_v24 }
0x1058   : > { %6053 = vmatpush3.bf16.msra.mxu0 %v6052_v37 }
0x1059   : > { %5737 = vmatprep.subr.mxu0 %v6618_v24 }
0x107a   : > { %v3903_v42 = vpop.xlane.xlu0 %3902 }
0x107e   : > { %v3738_v9 = vpop.permute.xlu0 %3737 }
0x107f   : > { %5724 = vmatmul.mubr.msk.f32.gmra.mrb[112].mxu1 %vm819_vm3, %v3738_v9 }
0x1080   : > { %5726 = vmatprep.mubr.msk.f32.mxu1 %vm6617_vm2, %v6618_v24 }
0x1086   : > { %v3591_v63 = vpop.xlane.xlu1 %3590 }
0x1087   : > { %6492 = vrcp.f32 %v3591_v63 }
0x108a   : > { %v3594_v32 = vpop.xlane.xlu1 %3593 }
0x108b   : > { %6494 = vrcp.f32 %v3594_v32  ;;  %v4912_v32 = vld [vmem:[%s8639_s6 + $0x28] sm:$0xff] }
0x108e   : > { %v3597_v34 = vpop.xlane.xlu1 %3596 }
0x108f   : > { %6496 = vrcp.f32 %v3597_v34  ;;  %v4913_v34 = vld [vmem:[%s8639_s6 + $0x30] sm:$0xff] }
0x1091   : > { %v6493_v8 = vpop.eup %6492 }
0x1092   : > { %v3600_v52 = vpop.xlane.xlu1 %3599  ;;  %v3607_v7 = vmul.f32 %v6493_v8, %v8171_v33  ;;  %v4914_v8 = vld [vmem:[%s8639_s6 + $0x38] sm:$0xff] }
0x1093   : > { %6498 = vrcp.f32 %v3600_v52  ;;  %v6058_v52 = vpack.c.bf16 %v4914_v8, %v4913_v34 }
0x1094   : > { %5693 = vmatmul.mubr.msk.f32.gmra.mrb[84].mxu0 %vm940_vm5, %v3607_v7  ;;  %6500 = vrcp.f32 %v3903_v42 }
0x1095   : > { %v6495_v60 = vpop.eup %6494  ;;  %5695 = vmatprep.mubr.msk.f32.mxu0 %vm6617_vm2, %v6618_v24 }
0x1096   : > { %v3935_v11 = vpop.permute.xlu1 %3934  ;;  %v3608_v2 = vmul.f32 %v6495_v60, %v8175_v57 }
0x1097   : > { %5738 = vmatpush3.msra.mxu0 %v3935_v11 }
0x1098   : > { %5696 = vmatmul.mubr.msk.f32.gmra.mrb[86].mxu0 %vm940_vm5, %v3608_v2  ;;  %6060 = vmatprep.subr.bf16.mxu0 %v6616_v3 }
0x1099   : > { %v6497_v18 = vpop.eup %6496  ;;  %5698 = vmatprep.mubr.msk.f32.mxu0 %vm6617_vm2, %v6618_v24 }
0x109a   : > { %v3740_v33 = vpop.permute.xlu1 %3739  ;;  %v3609_v35 = vmul.f32 %v6497_v18, %v8179_v27 }
0x109b   : > { %5727 = vmatmul.mubr.msk.f32.gmra.mrb[114].mxu1 %vm819_vm3, %v3740_v33 }
0x109c   : > { %5699 = vmatmul.mubr.msk.f32.gmra.mrb[88].mxu0 %vm940_vm5, %v3609_v35  ;;  %5762 = vmatprep.mubr.msk.f32.mxu1 %vm6617_vm2, %v6618_v24 }
0x109d   : > { %v6499_v57 = vpop.eup %6498  ;;  %5701 = vmatprep.mubr.msk.f32.mxu0 %vm6617_vm2, %v6618_v24 }
0x109e   : > { %v3610_v28 = vmul.f32 %v6499_v57, %v8183_v0  ;;  %v6501_v31 = vpop.eup %6500 }
0x109f   : > { %v3921_v27 = vmul.f32 %v6501_v31, %v8165_v43 }
0x10a0   : > { %5702 = vmatmul.mubr.msk.f32.gmra.mrb[90].mxu0 %vm940_vm5, %v3610_v28 }
0x10a1   : > { %5739 = vmatprep.mubr.msk.f32.mxu0 %vm6617_vm2, %v6618_v24 }
0x10a4   : > { %5740 = vmatmul.mubr.msk.f32.vlgmr.msra.gmra.mrb[92].mxu0 %vm940_vm5, %v3921_v27 }
0x10a5   : > { %5742 = vmatprep.mubr.msk.f32.mxu0 %vm6617_vm2, %v6618_v24 }
0x10fa   : > { %v8282_v23 = vpop.f32.mrb[62].mxu0 }
0x10fb   : > { %v5591_v15 = vpop.f32.mrb[63].mxu0 }
0x10fe   : > { %v8284_v29 = vpop.f32.mrb[64].mxu0 }
0x10ff   : > { %v5594_v40 = vpop.f32.mrb[65].mxu0 }
0x1102   : > { %v8286_v0 = vpop.f32.mrb[66].mxu0 }
0x1103   : > { %v5597_v22 = vpop.f32.mrb[67].mxu0 }
0x1106   : > { %v8288_v46 = vpop.f32.mrb[68].mxu0 }
0x1107   : > { %v5600_v53 = vpop.f32.mrb[69].mxu0 }
0x110a   : > { %v8290_v48 = vpop.f32.mrb[70].mxu0 }
0x110b   : > { %v5603_v43 = vpop.f32.mrb[71].mxu0 }
0x1112   : > { %v3392_v38 = vpop.f32.mrb[72].mxu0 }
0x1113   : > { %v5641_v6 = vpop.f32.mrb[73].mxu0 }
0x1116   : > { %v8292_v47 = vpop.f32.mrb[74].mxu0 }
0x1117   : > { %v5644_v61 = vpop.f32.mrb[75].mxu0 }
0x111a   : > { %v8294_v26 = vpop.f32.mrb[76].mxu0 }
0x111b   : > { %v5647_v17 = vpop.f32.mrb[77].mxu0 }
0x111e   : > { %v8296_v19 = vpop.f32.mrb[78].mxu0 }
0x111f   : > { %v5650_v16 = vpop.f32.mrb[79].mxu0 }
0x1121   : > { %v3842_v13 = vpop.f32.mrb[108].mxu1 }
0x1122   : > { %v3862_v36 = vmul.f32 0.35355338, %v3842_v13  ;;  %v8298_v58 = vpop.f32.mrb[80].mxu0  ;;  %v5719_v55 = vpop.f32.mrb[109].mxu1 }
0x1123   : > { %v5653_v59 = vpop.f32.mrb[81].mxu0 }
0x1124   : > { %v3867_v54 = vadd.f32 %v7997_v4, %v3862_v36  ;;  %v4911_v4 = vld [vmem:[%s8639_s6 + $0x20] sm:$0xff] }
0x1126   : > { %v3707_v51 = vpop.f32.mrb[82].mxu0  ;;  %v3874_v20 = vsel %vm940_vm5, %v3867_v54, -inf }
0x1127   : > { %v5691_v56 = vpop.f32.mrb[83].mxu0  ;;  %3875 = vmax.xlane.f32.xlu1 %v3874_v20 }
0x1129   : > { %v3847_v44 = vpop.f32.mrb[110].mxu1 }
0x112a   : > { %v3863_v37 = vmul.f32 0.35355338, %v3847_v44  ;;  %v5722_v42 = vpop.f32.mrb[111].mxu1 }
0x112c   : > { %v3868_v9 = vadd.f32 %v8007_v30, %v3863_v37  ;;  %v6055_v30 = vpack.c.bf16 %v4912_v32, %v4911_v4 }
0x112e   : > { %v3877_v63 = vsel %vm940_vm5, %v3868_v9, -inf  ;;  %6056 = vmatpush3.bf16.msra.mxu1 %v6055_v30 }
0x112f   : > { %3878 = vmax.xlane.f32.xlu0 %v3877_v63  ;;  %6057 = vmatprep.subr.bf16.mxu1 %v6616_v3 }
0x1132   : > { %6059 = vmatpush3.bf16.msra.mxu1 %v6058_v52 }
0x1133   : > { %6066 = vmatprep.subr.bf16.mxu1 %v6616_v3 }
0x1138   : > { %4071 = vrot.lane.b32.xlu1 %v3707_v51, %s8690_s27 }
0x1145   : > { %4051 = vrot.lane.b32.xlu0 %v3392_v38, %s8691_s23 }
0x1152   : > { %v3852_v7 = vpop.f32.mrb[112].mxu1 }
0x1153   : > { %v3864_v60 = vmul.f32 0.35355338, %v3852_v7  ;;  %v5725_v11 = vpop.f32.mrb[113].mxu1 }
0x1155   : > { %v3869_v2 = vadd.f32 %v8017_v25, %v3864_v60 }
0x1157   : > { %v3880_v18 = vsel %vm940_vm5, %v3869_v2, -inf }
0x115c   : > { %3881 = vmax.xlane.f32.xlu1 %v3880_v18 }
0x1167   : > { %v3712_v33 = vpop.f32.mrb[84].mxu0 }
0x1168   : > { %v5694_v35 = vpop.f32.mrb[85].mxu0 }
0x116b   : > { %v8322_v57 = vpop.f32.mrb[86].mxu0 }
0x116c   : > { %v5697_v28 = vpop.f32.mrb[87].mxu0 }
0x116e   : > { %v3857_v31 = vpop.f32.mrb[114].mxu1 }
0x116f   : > { %v8324_v27 = vpop.f32.mrb[88].mxu0  ;;  %v5728_v15 = vpop.f32.mrb[115].mxu1  ;;  %v3865_v25 = vmul.f32 0.35355338, %v3857_v31 }
0x1170   : > { %v5700_v40 = vpop.f32.mrb[89].mxu0 }
0x1171   : > { %v3870_v6 = vadd.f32 %v8027_v5, %v3865_v25 }
0x1173   : > { %v8326_v22 = vpop.f32.mrb[90].mxu0  ;;  %v3883_v61 = vsel %vm940_vm5, %v3870_v6, -inf }
0x1174   : > { %v5703_v53 = vpop.f32.mrb[91].mxu0 }
0x1177   : > { %v4022_v43 = vpop.f32.mrb[92].mxu0 }
0x1178   : > { %v5741_v38 = vpop.f32.mrb[93].mxu0  ;;  %4091 = vrot.lane.b32.xlu0 %v4022_v43, %s8692_s14  ;;  %v8355_v43 = vld [vmem:[%s8642_s9 + $0x8] sm:$0xff] }
0x1179   : > { %v8360_v38 = vrot.slane %v8355_v43, %v2144_v45 }
0x1197   : > { %3884 = vmax.xlane.f32.xlu0 %v3883_v61 }
0x11b4   : > { %v3876_v17 = vpop.xlane.xlu1 %3875 }
0x11b5   : > { %v3887_v16 = vsub.f32 %v3867_v54, %v3876_v17 }
0x11b7   : > { %v3893_v13 = vmul.f32 1.442695, %v3887_v16 }
0x11b8   : > { %v4072_v37 = vpop.permute.xlu1 %4071 }
0x11b9   : > { %6502 = vpow2.f32 %v3893_v13 }
0x11bc   : > { %v3879_v36 = vpop.xlane.xlu0 %3878 }
0x11bd   : > { %v3888_v55 = vsub.f32 %v3868_v9, %v3879_v36 }
0x11bf   : > { %v3895_v59 = vmul.f32 1.442695, %v3888_v55 }
0x11c0   : > { %v4052_v5 = vpop.permute.xlu0 %4051 }
0x11c1   : > { %6504 = vpow2.f32 %v3895_v59  ;;  %v4106_v42 = vsel %vm819_vm3, %v8282_v23, %v4052_v5 }
0x11c2   : > { %v4111_v4 = vsel %vm2126_vm6, %v4106_v42, %v4072_v37 }
0x11c3   : > { %v6503_v51 = vpop.eup %6502 }
0x11c4   : > { %v3904_v20 = vsel %vm940_vm5, %v6503_v51, 0.0 }
0x11c5   : > { %3905 = vadd.xlane.f32.xlu1 %v3904_v20 }
0x11cb   : > { %v6505_v56 = vpop.eup %6504 }
0x11cc   : > { %v3907_v44 = vsel %vm940_vm5, %v6505_v56, 0.0 }
0x11cd   : > { %3908 = vadd.xlane.f32.xlu1 %v3907_v44 }
0x11e9   : > { %v3882_v54 = vpop.xlane.xlu1 %3881 }
0x11ea   : > { %v3889_v63 = vsub.f32 %v3869_v2, %v3882_v54  ;;  %v4092_v9 = vpop.permute.xlu0 %4091 }
0x11eb   : > { %v4116_v32 = vsel %vm2132_vm7, %v4111_v4, %v4092_v9  ;;  %v4921_v9 = vld [vmem:[%s8640_s7 + $0x28] sm:$0xff] }
0x11ec   : > { %v3897_v34 = vmul.f32 1.442695, %v3889_v63  ;;  %5763 = vmatmul.mubr.msk.f32.vlgmr.msra.gmra.mrb[116].mxu1 %vm582_vm1, %v4116_v32 }
0x11ed   : > { %5765 = vmatprep.mubr.msk.f32.mxu1 %vm6617_vm2, %v6618_v24 }
0x11ee   : > { %6506 = vpow2.f32 %v3897_v34 }
0x11f8   : > { %v6507_v30 = vpop.eup %6506 }
0x11f9   : > { %v3910_v8 = vsel %vm940_vm5, %v6507_v30, 0.0 }
0x11fa   : > { %3911 = vadd.xlane.f32.xlu1 %v3910_v8  ;;  %v4923_v8 = vld [vmem:[%s8640_s7 + $0x38] sm:$0xff] }
0x1224   : > { %v3885_v52 = vpop.xlane.xlu0 %3884 }
0x1225   : > { %v3890_v23 = vsub.f32 %v3870_v6, %v3885_v52 }
0x1227   : > { %v3899_v7 = vmul.f32 1.442695, %v3890_v23 }
0x1229   : > { %6508 = vpow2.f32 %v3899_v7 }
0x1233   : > { %v6509_v60 = vpop.eup %6508 }
0x1234   : > { %v3913_v11 = vsel %vm940_vm5, %v6509_v60, 0.0 }
0x1235   : > { %3914 = vadd.xlane.f32.xlu1 %v3913_v11 }
0x1246   : > { %4073 = vrot.lane.b32.xlu1 %v3712_v33, %s8690_s27 }
0x1252   : > { %v3906_v2 = vpop.xlane.xlu1 %3905 }
0x1253   : > { %6510 = vrcp.f32 %v3906_v2 }
0x125a   : > { %v3909_v18 = vpop.xlane.xlu1 %3908 }
0x125b   : > { %6512 = vrcp.f32 %v3909_v18 }
0x125d   : > { %v6511_v35 = vpop.eup %6510 }
0x125e   : > { %v3922_v28 = vmul.f32 %v6511_v35, %v6503_v51 }
0x1260   : > { %5743 = vmatmul.mubr.msk.f32.gmra.mrb[94].mxu0 %vm940_vm5, %v3922_v28 }
0x1261   : > { %5745 = vmatprep.mubr.msk.f32.mxu0 %vm6617_vm2, %v6618_v24 }
0x1265   : > { %v6513_v31 = vpop.eup %6512 }
0x1266   : > { %v3923_v15 = vmul.f32 %v6513_v31, %v6505_v56 }
0x1268   : > { %5746 = vmatmul.mubr.msk.f32.gmra.mrb[96].mxu0 %vm940_vm5, %v3923_v15 }
0x1269   : > { %5748 = vmatprep.mubr.msk.f32.mxu0 %vm6617_vm2, %v6618_v24 }
0x1287   : > { %v3912_v40 = vpop.xlane.xlu1 %3911 }
0x1288   : > { %6514 = vrcp.f32 %v3912_v40 }
0x1292   : > { %v6515_v33 = vpop.eup %6514 }
0x1293   : > { %v3924_v53 = vmul.f32 %v6515_v33, %v6507_v30  ;;  %v4922_v30 = vld [vmem:[%s8640_s7 + $0x30] sm:$0xff] }
0x1294   : > { %v6064_v23 = vpack.c.bf16 %v4923_v8, %v4922_v30  ;;  %v4940_v30 = vld [vmem:[%s8641_s8 + $0xd8] sm:$0xff] }
0x1295   : > { %5749 = vmatmul.mubr.msk.f32.gmra.mrb[98].mxu0 %vm940_vm5, %v3924_v53 }
0x1296   : > { %5751 = vmatprep.mubr.msk.f32.mxu0 %vm6617_vm2, %v6618_v24 }
0x12bf   : > { %v4211_v25 = vpop.f32.mrb[116].mxu1 }
0x12c0   : > { %v4212_v6 = vadd.f32 %v4211_v25, %v8360_v38  ;;  %v5764_v61 = vpop.f32.mrb[117].mxu1 }
0x12c2   : > { %v8364_v17 = vadd.f32 %v4212_v6, %v7729_v14  ;;  %v3915_v16 = vpop.xlane.xlu1 %3914 }
0x12c3   : > { %6516 = vrcp.f32 %v3915_v16 }
0x12c4   : > { %v4240_v13 = vsel %vm582_vm1, %v8364_v17, 0.0 }
0x12c5   : > { %4241 = vadd.xlane.f32.xlu0 %v4240_v13  ;;  %v8436_v13 = vrot.slane %v8355_v43, %v2323_v62  ;;  %v4929_v62 = vld [vmem:[%s8641_s8 + $0x80] sm:$0xff] }
0x12cd   : > { %v6517_v36 = vpop.eup %6516 }
0x12ce   : > { %v3925_v55 = vmul.f32 %v6517_v36, %v6509_v60 }
0x12d0   : > { %5752 = vmatmul.mubr.msk.f32.gmra.mrb[100].mxu0 %vm940_vm5, %v3925_v55 }
0x12d1   : > { %5785 = vmatprep.mubr.msk.f32.mxu0 %vm6617_vm2, %v6618_v24 }
0x12db   : > { %4053 = vrot.lane.b32.xlu0 %v8292_v47, %s8691_s23 }
0x12df   : > { %4055 = vrot.lane.b32.xlu0 %v8294_v26, %s8691_s23 }
0x1333   : > { %v4027_v45 = vpop.f32.mrb[94].mxu0 }
0x1334   : > { %v5744_v14 = vpop.f32.mrb[95].mxu0  ;;  %4093 = vrot.lane.b32.xlu1 %v4027_v45, %s8692_s14 }
0x1338   : > { %4075 = vrot.lane.b32.xlu1 %v8322_v57, %s8690_s27 }
0x133b   : > { %v4032_v59 = vpop.f32.mrb[96].mxu0 }
0x133c   : > { %v5747_v51 = vpop.f32.mrb[97].mxu0  ;;  %4057 = vrot.lane.b32.xlu1 %v8296_v19, %s8691_s23  ;;  %4095 = vrot.lane.b32.xlu0 %v4032_v59, %s8692_s14  ;;  %v4930_v59 = vld [vmem:[%s8641_s8 + $0x88] sm:$0xff] }
0x133d   : > { %v4931_v51 = vld [vmem:[%s8641_s8 + $0x90] sm:$0xff] }
0x1340   : > { %4077 = vrot.lane.b32.xlu0 %v8324_v27, %s8690_s27  ;;  %v4074_v27 = vpop.permute.xlu1 %4073 }
0x1344   : > { %4059 = vrot.lane.b32.xlu0 %v8298_v58, %s8691_s23 }
0x1352   : > { %v4242_v20 = vpop.xlane.xlu0 %4241 }
0x1353   : > { %v4255_v56 = vmul.f32 0.03125, %v4242_v20 }
0x1355   : > { %v4260_v57 = vsub.f32 %v8364_v17, %v4255_v56  ;;  %v4933_v56 = vld [vmem:[%s8641_s8 + $0xa0] sm:$0xff] }
0x1356   : > { %v4054_v19 = vpop.permute.xlu0 %4053 }
0x1357   : > { %v4265_v44 = vmul.f32 %v4260_v57, %v4260_v57  ;;  %v4107_v58 = vsel %vm819_vm3, %v8284_v29, %v4054_v19 }
0x1358   : > { %v4112_v63 = vsel %vm2126_vm6, %v4107_v58, %v4074_v27 }
0x1359   : > { %v4270_v5 = vsel %vm582_vm1, %v4265_v44, 0.0 }
0x135a   : > { %v4056_v32 = vpop.permute.xlu0 %4055 }
0x135b   : > { %v4108_v52 = vsel %vm819_vm3, %v8286_v0, %v4056_v32 }
0x1368   : > { %v4037_v47 = vpop.f32.mrb[98].mxu0 }
0x1369   : > { %v5750_v26 = vpop.f32.mrb[99].mxu0  ;;  %4097 = vrot.lane.b32.xlu1 %v4037_v47, %s8692_s14  ;;  %v4932_v47 = vld [vmem:[%s8641_s8 + $0x98] sm:$0xff] }
0x136a   : > { %v6070_v20 = vpack.c.bf16 %v4932_v47, %v4931_v51 }
0x138d   : > { %4271 = vadd.xlane.f32.xlu1 %v4270_v5 }
0x139e   : > { %4079 = vrot.lane.b32.xlu1 %v8326_v22, %s8690_s27  ;;  %v4920_v22 = vld [vmem:[%s8640_s7 + $0x20] sm:$0xff] }
0x139f   : > { %v6061_v29 = vpack.c.bf16 %v4921_v9, %v4920_v22  ;;  %v4937_v9 = vld [vmem:[%s8641_s8 + $0xc0] sm:$0xff] }
0x13a1   : > { %6062 = vmatpush3.bf16.msra.mxu0 %v6061_v29  ;;  %v4938_v29 = vld [vmem:[%s8641_s8 + $0xc8] sm:$0xff] }
0x13a2   : > { %6063 = vmatprep.subr.bf16.mxu0 %v6616_v3 }
0x13a3   : > { %v4042_v37 = vpop.f32.mrb[100].mxu0 }
0x13a4   : > { %v5753_v42 = vpop.f32.mrb[101].mxu0  ;;  %4099 = vrot.lane.b32.xlu0 %v4042_v37, %s8692_s14  ;;  %s434_s14 = sand.u32 1, %s6606_s26  }
0x13a5   : > { %6065 = vmatpush3.bf16.msra.mxu0 %v6064_v23  ;;  %v4935_v42 = vld [vmem:[%s8641_s8 + $0xb0] sm:$0xff]  ;;  %v4942_v23 = vld [vmem:[%s8641_s8 + $0xe8] sm:$0xff]  ;;  %s4757_s16 = sshll.u32 %s434_s14, 3  ;;  %s4681_s30 = scalar_lea.sflag [#allocation4], %s434_s14 }
0x13a6   : > { %v4094_v54 = vpop.permute.xlu1 %4093  ;;  %6090 = vmatprep.subr.bf16.mxu0 %v6616_v3  ;;  %s436_s27 = scalar_lea.vmem [#allocation3], %s4757_s16  ;;  %s6556_s16 = sshll.u32 %s6633_s29, 4  ;;  %s6557_s16 = int_to_ptr.vmem [resolvable:$false] %s6556_s16 }
0x13a7   : > { %v4117_v4 = vsel %vm2132_vm7, %v4112_v63, %v4094_v54  ;;  %v4936_v54 = vld [vmem:[%s8641_s8 + $0xb8] sm:$0xff]  ;;  %s4694_s17 = sshll.u32 %s436_s27, 4  ;;  %s6558_s23 = scalar_lea.vmem %s6557_s16, 256  ;;  %s8593_s17 = int_to_ptr.vmem [resolvable:$true] %s4694_s17 }
0x13a8   : > { %5766 = vmatmul.mubr.msk.f32.gmra.mrb[118].mxu1 %vm582_vm1, %v4117_v4  ;;  %v6076_v4 = vpack.c.bf16 %v4936_v54, %v4935_v42  ;;  %s6552_s15 = scalar_lea.vmem %s8593_s17, 128  ;;  %p6559_p0 = scmp.lt.s32.totalorder %s8593_s17, %s6557_s16 }
0x13a9   : > { %5768 = vmatprep.mubr.msk.f32.mxu1 %vm6617_vm2, %v6618_v24  ;;  %p6553_p11 = scmp.ne.s32.totalorder %s8593_s17, %s6552_s15  ;;  %p6560_p1 = scmp.lt.s32.totalorder %s6558_s23, %s6552_s15 }
0x13aa   : > { %v4076_v34 = vpop.permute.xlu1 %4075 }
0x13ab   : > { %v4113_v7 = vsel %vm2126_vm6, %v4108_v52, %v4076_v34  ;;  %v6079_v34 = vpack.c.bf16 %v4938_v29, %v4937_v9  ;;  %v4941_v52 = vld [vmem:[%s8641_s8 + $0xe0] sm:$0xff]  ;;  %p6554_p12 = pnand %p6553_p11, %p6742_p5  ;;  %p6561_p2 = por %p6560_p1, %p6559_p0 }
0x13ad   : > { %p6555_p13 = pneg %p6554_p12 }
0x13ae   : > { %v4096_v60 = vpop.permute.xlu0 %4095  ;;  %v4058_v2 = vpop.permute.xlu1 %4057 }
0x13af   : > { %v4118_v11 = vsel %vm2132_vm7, %v4113_v7, %v4096_v60  ;;  %v4109_v35 = vsel %vm819_vm3, %v8288_v46, %v4058_v2  ;;  %v6085_v7 = vpack.c.bf16 %v4942_v23, %v4941_v52  ;;  %v4943_v60 = vld [vmem:[%s8641_s8 + $0xf0] sm:$0xff]  ;;  %p6562_p3 = pnand %p6561_p2, %p6555_p13 }
0x13b0   : > { %5769 = vmatmul.mubr.msk.f32.gmra.mrb[120].mxu1 %vm582_vm1, %v4118_v11  ;;  %v4944_v11 = vld [vmem:[%s8641_s8 + $0xf8] sm:$0xff] }
0x13b1   : > { %5771 = vmatprep.mubr.msk.f32.mxu1 %vm6617_vm2, %v6618_v24  ;;  %v6088_v2 = vpack.c.bf16 %v4944_v11, %v4943_v60 }
0x13b2   : > { %v4078_v18 = vpop.permute.xlu0 %4077 }
0x13b3   : > { %v4114_v0 = vsel %vm2126_vm6, %v4109_v35, %v4078_v18 }
0x13b6   : > { %v4060_v40 = vpop.permute.xlu0 %4059 }
0x13b7   : > { %v4110_v25 = vsel %vm819_vm3, %v8290_v48, %v4060_v40  ;;  %v8441_v48 = vrot.slane %v8355_v43, %v2332_v39  ;;  %v6067_v39 = vpack.c.bf16 %v4930_v59, %v4929_v62 }
0x13b9   : > { %6068 = vmatpush3.bf16.msra.mxu1 %v6067_v39 }
0x13ba   : > { %6069 = vmatprep.subr.bf16.mxu1 %v6616_v3 }
0x13bd   : > { %6071 = vmatpush3.bf16.msra.mxu1 %v6070_v20 }
0x13be   : > { %6072 = vmatprep.subr.bf16.mxu1 %v6616_v3 }
0x13db   : > { %v4098_v28 = vpop.permute.xlu1 %4097 }
0x13dc   : > { %v4119_v31 = vsel %vm2132_vm7, %v4114_v0, %v4098_v28 }
0x13dd   : > { %5772 = vmatmul.mubr.msk.f32.gmra.mrb[122].mxu1 %vm582_vm1, %v4119_v31 }
0x13de   : > { %5774 = vmatprep.mubr.msk.f32.mxu1 %vm6617_vm2, %v6618_v24 }
0x1416   : > { %v4100_v61 = vpop.permute.xlu0 %4099 }
0x141a   : > { %v4272_v15 = vpop.xlane.xlu1 %4271 }
0x141b   : > { %v4285_v33 = vmul.f32 0.03125, %v4272_v15 }
0x141d   : > { %v4290_v53 = vadd.f32 1e-05, %v4285_v33 }
0x141e   : > { %v4080_v6 = vpop.permute.xlu1 %4079 }
0x141f   : > { %6518 = vrsqrt.f32 %v4290_v53  ;;  %v4115_v46 = vsel %vm2126_vm6, %v4110_v25, %v4080_v6  ;;  %v8518_v6 = vrot.slane %v8355_v43, %v2345_v1 }
0x1420   : > { %v4120_v16 = vsel %vm2132_vm7, %v4115_v46, %v4100_v61 }
0x1421   : > { %5775 = vmatmul.mubr.msk.f32.gmra.mrb[124].mxu1 %vm582_vm1, %v4120_v16 }
0x1422   : > { %5832 = vmatprep.mubr.msk.f32.mxu1 %vm6617_vm2, %v6618_v24 }
0x1429   : > { %v6519_v36 = vpop.eup %6518 }
0x142a   : > { %v4300_v55 = vmul.f32 %v6519_v36, %v4260_v57  ;;  %v4934_v57 = vld [vmem:[%s8641_s8 + $0xa8] sm:$0xff] }
0x142b   : > { %v6073_v27 = vpack.c.bf16 %v4934_v57, %v4933_v56 }
0x142c   : > { %v4309_v45 = vmul.f32 %v8436_v13, %v4300_v55 }
0x142d   : > { %6074 = vmatpush3.bf16.msra.mxu1 %v6073_v27 }
0x142e   : > { %v4318_v14 = vadd.f32 %v8441_v48, %v4309_v45  ;;  %6075 = vmatprep.subr.bf16.mxu1 %v6616_v3 }
0x1430   : > { %5786 = vmatmul.mubr.msk.f32.vlgmr.msra.gmra.mrb[102].mxu0 %vm582_vm1, %v4318_v14 }
0x1431   : > { %5788 = vmatprep.mubr.msk.f32.mxu0 %vm6617_vm2, %v6618_v24  ;;  %6077 = vmatpush3.bf16.msra.mxu1 %v6076_v4 }
0x1432   : > { %6078 = vmatprep.subr.bf16.mxu1 %v6616_v3 }
0x1435   : > { %6080 = vmatpush3.bf16.msra.mxu1 %v6079_v34 }
0x1436   : > { %6081 = vmatprep.subr.bf16.mxu1 %v6616_v3 }
0x147b   : > { %v4216_v26 = vpop.f32.mrb[118].mxu1 }
0x147c   : > { %v4217_v44 = vadd.f32 %v4216_v26, %v8360_v38  ;;  %v5767_v5 = vpop.f32.mrb[119].mxu1 }
0x147e   : > { %v4236_v19 = vadd.f32 %v4217_v44, %v7734_v50 }
0x1480   : > { %v4243_v58 = vsel %vm582_vm1, %v4236_v19, 0.0 }
0x1481   : > { %4244 = vadd.xlane.f32.xlu1 %v4243_v58 }
0x1483   : > { %v4221_v37 = vpop.f32.mrb[120].mxu1 }
0x1484   : > { %v4222_v50 = vadd.f32 %v4221_v37, %v8360_v38  ;;  %v5770_v63 = vpop.f32.mrb[121].mxu1 }
0x1486   : > { %v4237_v22 = vadd.f32 %v4222_v50, %v7739_v41  ;;  %v4939_v41 = vld [vmem:[%s8641_s8 + $0xd0] sm:$0xff] }
0x1487   : > { %v6082_v8 = vpack.c.bf16 %v4940_v30, %v4939_v41 }
0x1488   : > { %v4246_v32 = vsel %vm582_vm1, %v4237_v22, 0.0 }
0x1489   : > { %4247 = vadd.xlane.f32.xlu0 %v4246_v32  ;;  %6083 = vmatpush3.bf16.msra.mxu1 %v6082_v8 }
0x148a   : > { %6084 = vmatprep.subr.bf16.mxu1 %v6616_v3 }
0x148d   : > { %6086 = vmatpush3.bf16.msra.mxu1 %v6085_v7 }
0x148e   : > { %6087 = vmatprep.subr.bf16.mxu1 %v6616_v3 }
0x1491   : > { %6089 = vmatpush3.bf16.msra.mxu1 %v6088_v2 }
0x14b0   : > { %v4226_v18 = vpop.f32.mrb[122].mxu1 }
0x14b1   : > { %v4227_v35 = vadd.f32 %v4226_v18, %v8360_v38  ;;  %v5773_v0 = vpop.f32.mrb[123].mxu1 }
0x14b3   : > { %v4238_v28 = vadd.f32 %v4227_v35, %v7744_v21  ;;  %v4482_v35 = vrot.slane %v8355_v43, %v2495_v12 }
0x14b5   : > { %v4249_v31 = vsel %vm582_vm1, %v4238_v28, 0.0 }
0x14b6   : > { %4250 = vadd.xlane.f32.xlu0 %v4249_v31 }
0x14f4   : > { %v4231_v15 = vpop.f32.mrb[124].mxu1 }
0x14f5   : > { %v4232_v40 = vadd.f32 %v4231_v15, %v8360_v38  ;;  %v5776_v33 = vpop.f32.mrb[125].mxu1 }
0x14f7   : > { %v4239_v53 = vadd.f32 %v4232_v40, %v7749_v10 }
0x14f9   : > { %v4252_v25 = vsel %vm582_vm1, %v4239_v53, 0.0 }
0x14fa   : > { %4253 = vadd.xlane.f32.xlu1 %v4252_v25 }
0x1503   : > { %v4413_v61 = vpop.f32.mrb[102].mxu0 }
0x1504   : > { %v4414_v21 = vadd.f32 %v4413_v61, %v8518_v6  ;;  %v5787_v46 = vpop.f32.mrb[103].mxu0 }
0x1506   : > { %v4442_v16 = vmul.f32 0.70710677, %v4414_v21  ;;  %v4437_v14 = vmul.f32 0.5, %v4414_v21 }
0x1508   : > { %6520 = verf.f32 %v4442_v16 }
0x150e   : > { %v4245_v36 = vpop.xlane.xlu1 %4244 }
0x150f   : > { %v4256_v55 = vmul.f32 0.03125, %v4245_v36 }
0x1511   : > { %v4261_v38 = vsub.f32 %v4236_v19, %v4256_v55 }
0x1512   : > { %v6521_v45 = vpop.eup %6520 }
0x1513   : > { %v4452_v10 = vadd.f32 1.0, %v6521_v45  ;;  %v4266_v62 = vmul.f32 %v4261_v38, %v4261_v38 }
0x1515   : > { %v4457_v59 = vmul.f32 %v4452_v10, %v4437_v14  ;;  %v4273_v39 = vsel %vm582_vm1, %v4266_v62, 0.0 }
0x1516   : > { %v4248_v51 = vpop.xlane.xlu0 %4247  ;;  %4274 = vadd.xlane.f32.xlu0 %v4273_v39 }
0x1517   : > { %v4257_v1 = vmul.f32 0.03125, %v4248_v51  ;;  %5833 = vmatmul.mubr.f32.vlgmr.msra.gmra.mrb[126].mxu1 %v4457_v59 }
0x1518   : > { %5835 = vmatprep.mubr.msk.f32.mxu1 %vm6617_vm2, %v6618_v24 }
0x1519   : > { %v4262_v47 = vsub.f32 %v4237_v22, %v4257_v1 }
0x151b   : > { %v4267_v26 = vmul.f32 %v4262_v47, %v4262_v47 }
0x151d   : > { %v4276_v20 = vsel %vm582_vm1, %v4267_v26, 0.0 }
0x151e   : > { %4277 = vadd.xlane.f32.xlu1 %v4276_v20 }
0x1543   : > { %v4251_v56 = vpop.xlane.xlu0 %4250 }
0x1544   : > { %v4258_v57 = vmul.f32 0.03125, %v4251_v56  ;;  %v4595_v56 = vld [vmem:[%s8644_s11] sm:$0xff] }
0x1546   : > { %v4263_v44 = vsub.f32 %v4238_v28, %v4258_v57  ;;  %v4596_v57 = vld [vmem:[%s8644_s11 + $0x8] sm:$0xff] }
0x1548   : > { %v4268_v5 = vmul.f32 %v4263_v44, %v4263_v44 }
0x154a   : > { %v4279_v19 = vsel %vm582_vm1, %v4268_v5, 0.0 }
0x154b   : > { %4280 = vadd.xlane.f32.xlu0 %v4279_v19 }
0x1587   : > { %v4254_v27 = vpop.xlane.xlu1 %4253 }
0x1588   : > { %v4259_v58 = vmul.f32 0.03125, %v4254_v27 }
0x158a   : > { %v4264_v37 = vsub.f32 %v4239_v53, %v4259_v58  ;;  %v4597_v58 = vld [vmem:[%s8644_s11 + $0x10] sm:$0xff] }
0x158c   : > { %v4269_v42 = vmul.f32 %v4264_v37, %v4264_v37 }
0x158e   : > { %v4282_v54 = vsel %vm582_vm1, %v4269_v42, 0.0 }
0x158f   : > { %4283 = vadd.xlane.f32.xlu1 %v4282_v54 }
0x15a3   : > { %v4275_v50 = vpop.xlane.xlu0 %4274 }
0x15a4   : > { %v4286_v63 = vmul.f32 0.03125, %v4275_v50 }
0x15a6   : > { %v4291_v4 = vadd.f32 1e-05, %v4286_v63 }
0x15a8   : > { %6522 = vrsqrt.f32 %v4291_v4 }
0x15ab   : > { %v4278_v22 = vpop.xlane.xlu1 %4277 }
0x15ac   : > { %v4287_v9 = vmul.f32 0.03125, %v4278_v22 }
0x15ae   : > { %v4292_v29 = vadd.f32 1e-05, %v4287_v9 }
0x15b0   : > { %6524 = vrsqrt.f32 %v4292_v29 }
0x15b2   : > { %v6523_v32 = vpop.eup %6522 }
0x15b3   : > { %v4301_v34 = vmul.f32 %v6523_v32, %v4261_v38 }
0x15b5   : > { %v4310_v41 = vmul.f32 %v8436_v13, %v4301_v34 }
0x15b7   : > { %v4319_v30 = vadd.f32 %v8441_v48, %v4310_v41 }
0x15b9   : > { %5789 = vmatmul.mubr.msk.f32.gmra.mrb[104].mxu0 %vm582_vm1, %v4319_v30 }
0x15ba   : > { %v6525_v8 = vpop.eup %6524  ;;  %5791 = vmatprep.mubr.msk.f32.mxu0 %vm6617_vm2, %v6618_v24 }
0x15bb   : > { %v4302_v52 = vmul.f32 %v6525_v8, %v4262_v47 }
0x15bd   : > { %v4311_v23 = vmul.f32 %v8436_v13, %v4302_v52 }
0x15bf   : > { %v4320_v7 = vadd.f32 %v8441_v48, %v4311_v23 }
0x15c1   : > { %5792 = vmatmul.mubr.msk.f32.gmra.mrb[106].mxu0 %vm582_vm1, %v4320_v7 }
0x15c2   : > { %5794 = vmatprep.mubr.msk.f32.mxu0 %vm6617_vm2, %v6618_v24 }
0x15d8   : > { %v4281_v60 = vpop.xlane.xlu0 %4280 }
0x15d9   : > { %v4288_v11 = vmul.f32 0.03125, %v4281_v60 }
0x15db   : > { %v4293_v2 = vadd.f32 1e-05, %v4288_v11 }
0x15dd   : > { %6526 = vrsqrt.f32 %v4293_v2 }
0x15e7   : > { %v6527_v18 = vpop.eup %6526 }
0x15e8   : > { %v4303_v0 = vmul.f32 %v6527_v18, %v4263_v44  ;;  %v6091_v44 = vpack.c.bf16 %v4596_v57, %v4595_v56 }
0x15ea   : > { %v4549_v28 = vpop.f32.mrb[126].mxu1  ;;  %v4312_v31 = vmul.f32 %v8436_v13, %v4303_v0  ;;  %6092 = vmatpush3.bf16.msra.mxu0 %v6091_v44 }
0x15eb   : > { %v4550_v15 = vadd.f32 %v4549_v28, %v4482_v35  ;;  %v5834_v40 = vpop.f32.mrb[127].mxu1  ;;  %6093 = vmatprep.subr.bf16.mxu0 %v6616_v3 }
0x15ec   : > { %v4321_v33 = vadd.f32 %v8441_v48, %v4312_v31 }
0x15ed   : > { %v4569_v53 = vadd.f32 %v4550_v15, %v8364_v17 }
0x15ee   : > { %5795 = vmatmul.mubr.msk.f32.gmra.mrb[108].mxu0 %vm582_vm1, %v4321_v33 }
0x15ef   : > { %v4572_v25 = vsel %vm582_vm1, %v4569_v53, 0.0  ;;  %5797 = vmatprep.mubr.msk.f32.mxu0 %vm6617_vm2, %v6618_v24 }
0x15f0   : > { %4573 = vadd.xlane.f32.xlu0 %v4572_v25 }
0x161c   : > { %v4284_v49 = vpop.xlane.xlu1 %4283 }
0x161d   : > { %v4289_v12 = vmul.f32 0.03125, %v4284_v49 }
0x161f   : > { %v4294_v43 = vadd.f32 1e-05, %v4289_v12 }
0x1621   : > { %6528 = vrsqrt.f32 %v4294_v43 }
0x162b   : > { %v6529_v61 = vpop.eup %6528 }
0x162c   : > { %v4304_v21 = vmul.f32 %v6529_v61, %v4264_v37  ;;  %v4598_v37 = vld [vmem:[%s8644_s11 + $0x18] sm:$0xff]  ;;  %v4947_v61 = vld [vmem:[%s8645_s12] ss:$0 sm:$0xff] }
0x162d   : > { %v6094_v42 = vpack.c.bf16 %v4598_v37, %v4597_v58 }
0x162e   : > { %v4313_v46 = vmul.f32 %v8436_v13, %v4304_v21 }
0x162f   : > { %6095 = vmatpush3.bf16.msra.mxu0 %v6094_v42 }
0x1630   : > { %v4322_v16 = vadd.f32 %v8441_v48, %v4313_v46 }
0x1632   : > { %5798 = vmatmul.mubr.msk.f32.gmra.mrb[110].mxu0 %vm582_vm1, %v4322_v16 }
0x1633   : > { %5855 = vmatprep.mubr.msk.f32.mxu0 %vm6617_vm2, %v6618_v24 }
0x167d   : > { %v4574_v17 = vpop.xlane.xlu0 %4573 }
0x167e   : > { %v4575_v36 = vmul.f32 0.03125, %v4574_v17 }
0x1680   : > { %v4576_v55 = vsub.f32 %v4569_v53, %v4575_v36 }
0x1682   : > { %v4577_v38 = vmul.f32 %v4576_v55, %v4576_v55 }
0x1684   : > { %v4578_v45 = vsel %vm582_vm1, %v4577_v38, 0.0 }
0x1685   : > { %4579 = vadd.xlane.f32.xlu1 %v4578_v45 }
0x168c   : > { %v4418_v14 = vpop.f32.mrb[104].mxu0 }
0x168d   : > { %v4419_v10 = vadd.f32 %v4418_v14, %v8518_v6  ;;  %v5790_v62 = vpop.f32.mrb[105].mxu0 }
0x168f   : > { %v4443_v59 = vmul.f32 0.70710677, %v4419_v10  ;;  %v4438_v47 = vmul.f32 0.5, %v4419_v10 }
0x1691   : > { %6530 = verf.f32 %v4443_v59 }
0x1694   : > { %v4423_v13 = vpop.f32.mrb[106].mxu0 }
0x1695   : > { %v4424_v48 = vadd.f32 %v4423_v13, %v8518_v6  ;;  %v5793_v39 = vpop.f32.mrb[107].mxu0 }
0x1697   : > { %v4444_v51 = vmul.f32 0.70710677, %v4424_v48  ;;  %v4439_v19 = vmul.f32 0.5, %v4424_v48 }
0x1699   : > { %6532 = verf.f32 %v4444_v51 }
0x169b   : > { %v6531_v1 = vpop.eup %6530 }
0x169c   : > { %v4453_v26 = vadd.f32 1.0, %v6531_v1 }
0x169e   : > { %v4458_v20 = vmul.f32 %v4453_v26, %v4438_v47 }
0x16a0   : > { %5836 = vmatmul.mubr.f32.gmra.mrb[128].mxu1 %v4458_v20 }
0x16a1   : > { %5838 = vmatprep.mubr.msk.f32.mxu1 %vm6617_vm2, %v6618_v24 }
0x16a3   : > { %v6533_v5 = vpop.eup %6532 }
0x16a4   : > { %v4454_v27 = vadd.f32 1.0, %v6533_v5 }
0x16a6   : > { %v4459_v54 = vmul.f32 %v4454_v27, %v4439_v19 }
0x16a8   : > { %5839 = vmatmul.mubr.f32.gmra.mrb[130].mxu1 %v4459_v54 }
0x16a9   : > { %5841 = vmatprep.mubr.msk.f32.mxu1 %vm6617_vm2, %v6618_v24 }
0x16c1   : > { %v4428_v50 = vpop.f32.mrb[108].mxu0 }
0x16c2   : > { %v4429_v63 = vadd.f32 %v4428_v50, %v8518_v6  ;;  %v5796_v4 = vpop.f32.mrb[109].mxu0 }
0x16c4   : > { %v4445_v3 = vmul.f32 0.70710677, %v4429_v63  ;;  %v4440_v9 = vmul.f32 0.5, %v4429_v63 }
0x16c6   : > { %6534 = verf.f32 %v4445_v3 }
0x16d0   : > { %v6535_v22 = vpop.eup %6534 }
0x16d1   : > { %v4455_v29 = vadd.f32 1.0, %v6535_v22 }
0x16d3   : > { %v4460_v32 = vmul.f32 %v4455_v29, %v4440_v9 }
0x16d5   : > { %5842 = vmatmul.mubr.f32.gmra.mrb[132].mxu1 %v4460_v32 }
0x16d6   : > { %5844 = vmatprep.mubr.msk.f32.mxu1 %vm6617_vm2, %v6618_v24  ;;  %v4945_v24 = vld [vmem:[%s8643_s10] ss:$0 sm:$0xff] }
0x1705   : > { %v4433_v34 = vpop.f32.mrb[110].mxu0 }
0x1706   : > { %v4434_v41 = vadd.f32 %v4433_v34, %v8518_v6  ;;  %v5799_v30 = vpop.f32.mrb[111].mxu0  ;;  %v4946_v6 = vld [vmem:[%s8643_s10 + $0x1] ss:$0 sm:$0xff] }
0x1708   : > { %v4446_v8 = vmul.f32 0.70710677, %v4434_v41  ;;  %v4441_v60 = vmul.f32 0.5, %v4434_v41 }
0x170a   : > { %6536 = verf.f32 %v4446_v8 }
0x1712   : > { %v4580_v52 = vpop.xlane.xlu1 %4579 }
0x1713   : > { %v4581_v23 = vmul.f32 0.03125, %v4580_v52 }
0x1714   : > { %v6537_v7 = vpop.eup %6536 }
0x1715   : > { %v4456_v11 = vadd.f32 1.0, %v6537_v7  ;;  %v4582_v2 = vadd.f32 1e-05, %v4581_v23 }
0x1717   : > { %6538 = vrsqrt.f32 %v4582_v2  ;;  %v4461_v18 = vmul.f32 %v4456_v11, %v4441_v60 }
0x1719   : > { %5845 = vmatmul.mubr.f32.gmra.mrb[134].mxu1 %v4461_v18 }
0x1721   : > { %v6539_v35 = vpop.eup %6538 }
0x1722   : > { %v4584_v0 = vmul.f32 %v6539_v35, %v4576_v55 }
0x1724   : > { %v4589_v28 = vmul.f32 %v4945_v24, %v4584_v0 }
0x1726   : > { %v4594_v31 = vadd.f32 %v4946_v6, %v4589_v28 }
0x1728   : > { %5856 = vmatmul.mubr.msk.f32.vlgmr.msra.gmra.mrb[112].mxu0 %vm582_vm1, %v4594_v31 }
0x1773   : > { %v4554_v15 = vpop.f32.mrb[128].mxu1 }
0x1774   : > { %v5837_v40 = vpop.f32.mrb[129].mxu1 }
0x177b   : > { %v4558_v33 = vpop.f32.mrb[130].mxu1 }
0x177c   : > { %v5840_v53 = vpop.f32.mrb[131].mxu1 }
0x17a8   : > { %v4562_v25 = vpop.f32.mrb[132].mxu1 }
0x17a9   : > { %v5843_v49 = vpop.f32.mrb[133].mxu1 }
0x17ec   : > { %v4566_v12 = vpop.f32.mrb[134].mxu1 }
0x17ed   : > { %v5846_v43 = vpop.f32.mrb[135].mxu1 }
0x17fb   : > { %v4675_v21 = vpop.f32.mrb[112].mxu0 }
0x17fc   : > { %v4676_v46 = vadd.f32 %v4947_v61, %v4675_v21  ;;  %v5857_v16 = vpop.f32.mrb[113].mxu0 }
0x17fe   : > { %4679 = vst [vmem:[%s436_s27] sm:$0xff] %v4676_v46 }
0x17ff   : > { %6565 = shalt.err (!%p6562_p3)
}
0x1800   : > { %s6566_s14 = scalar_lea.hbm %s8591_s22, 128  ;;  %s6570_s20 = scalar_lea.hbm %s8646_s13, 256 }
0x1801   : > { %p6567_p4 = scmp.ne.s32.totalorder %s8591_s22, %s6566_s14  ;;  %p6571_p9 = scmp.lt.u32.totalorder %s8591_s22, %s8646_s13 }
0x1802   : > { %p6572_p10 = scmp.lt.u32.totalorder %s6570_s20, %s6566_s14  ;;  %p6574_p12 = scmp.lt.u32.totalorder %s6566_s14, %s8591_s22 }
0x1803   : > { %p6568_p7 = pnand %p6567_p4, %p6742_p5 }
0x1804   : > { %p6573_p11 = por %p6572_p10, %p6571_p9 }
0x1805   : > { %p6569_p8 = pneg %p6568_p7 }
0x1806   : > { %p6575_p13 = por %p6574_p12, %p6573_p11 }
0x1808   : > { %p6576_p0 = pnand %p6575_p13, %p6569_p8 }
0x180a   : > { %6579 = shalt.err (!%p6576_p0)
}
0x180b   : > { %6102 = dma.vmem_to_hbm [thread:$0]  (%p6742_p5), %s8593_s17, 128, %s8591_s22, %s4681_s30  }
0x180c PF: > { %p6108_p1 = scmp.ge.s32.totalorder %s6614_s28, 2  ;;  %s4706_s15 = sand.u32 1, %s6602_s25  }
0x180d   : > { %s4707_s16 = scalar_lea.sflag [#allocation4], %s4706_s15 }
0x180e   : > { %p6105_p2 = pnand %p6108_p1, %p6746_p6 }
0x1810   : > { %6597 = dma.done.wait (!%p6105_p2), %s4707_s16, 128  }
0x1811   : > { %6599 = vsyncadd (!%p6105_p2), %s4707_s16, 4294967168  ;;  %s8693_s28 = sld [smem:[#allocation7_spill]]  ;;  %s8694_s23 = sld [smem:[#allocation6_spill]] }
0x1812   : > { %s8695_s27 = sld [smem:[#allocation8_spill]]  ;;  %s8696_s25 = smov %s6606_s26 }
0x1817   : > { %p23_p3 = scmp.ge.s32.totalorder %s8693_s28, 4   ;;  %s8697_s26 = smov %s8694_s23 }
0x1819   :  { %25 = sbr.rel (!%p23_p3) target bundleno = 3 (0x3), region = 112 }
0x1820   :  { %4712 = vsyncpa [#allocation4], 1 }
0x1821   :  { %4714 = vsyncpa [#allocation4 + $0x1], 1 }

</bundles_post_ra>
